<compile_context>
chip_gen: v7x
topology: tpu7x:2x2x1
jax: 0.10.0
libtpu: 0.0.40
codegen_flags: <defaults>
</compile_context>

<pallas_src>
import functools

import numpy as np
import jax
import jax.numpy as jnp
from jax import lax
from jax.experimental import pallas as pl
from jax.experimental.pallas import tpu as pltpu


def _conv3x3_from_padded(pad_ref, w_ref, b_ref, *, width, margin, p):
    """3x3 'same' convolution of the zero-padded flattened image in pad_ref.

    pad_ref : VMEM ref (P + 2*margin, C_in); rows [margin, margin+P) hold the
              row-major flattened image, margin rows are zero.
    w_ref   : VMEM ref (9, C_in, C_out); tap k = 3*dy + dx holds
              weight[:, :, dy, dx].T  (shape (C_in, C_out)).
    b_ref   : VMEM ref (1, C_out).
    returns : (P, C_out) float32.
    """
    c_out = w_ref.shape[2]
    # Destination-pixel column index, used to zero taps that would wrap across
    # image rows in the flattened layout (reproduces padding=1 at x==0 / x==W-1).
    col = lax.broadcasted_iota(jnp.int32, (p, c_out), 0) % width
    not_left_edge = col != 0            # dest x == 0     -> drop dx = -1 taps
    not_right_edge = col != width - 1   # dest x == W - 1 -> drop dx = +1 taps

    out = None
    for dx in range(3):
        part = None
        for dy in range(3):
            k = 3 * dy + dx
            start = margin + (dy - 1) * width + (dx - 1)
            tap = pad_ref[start:start + p, :]                    # (P, C_in)
            contrib = jnp.dot(tap, w_ref[k],
                              preferred_element_type=jnp.float32)
            part = contrib if part is None else part + contrib
        if dx == 0:
            part = jnp.where(not_left_edge, part, 0.0)
        elif dx == 2:
            part = jnp.where(not_right_edge, part, 0.0)
        out = part if out is None else out + part
    return out + b_ref[...]


def _segmenter_inpaint_kernel(x_ref, w1_ref, b1_ref, w2_ref, b2_ref,
                              o_ref, pad1_ref, pad2_ref, *, width, margin):
    p = x_ref.shape[1]
    cin = x_ref.shape[2]
    ch = pad2_ref.shape[1]

    # ---- conv1 (3x3, pad=1) + ReLU -----------------------------------------
    pad1_ref[0:margin, :] = jnp.zeros((margin, cin), jnp.float32)
    pad1_ref[margin + p:, :] = jnp.zeros((margin, cin), jnp.float32)
    pad1_ref[margin:margin + p, :] = x_ref[0].astype(jnp.float32)
    h = _conv3x3_from_padded(pad1_ref, w1_ref, b1_ref,
                             width=width, margin=margin, p=p)
    h = jnp.maximum(h, 0.0)                                      # (P, Ch)

    # ---- conv2 (3x3, pad=1), no activation ---------------------------------
    pad2_ref[0:margin, :] = jnp.zeros((margin, ch), jnp.float32)
    pad2_ref[margin + p:, :] = jnp.zeros((margin, ch), jnp.float32)
    pad2_ref[margin:margin + p, :] = h
    out = _conv3x3_from_padded(pad2_ref, w2_ref, b2_ref,
                               width=width, margin=margin, p=p)

    o_ref[0] = out.astype(o_ref.dtype)


def segmenter_net_inpaint(x_nchw, params):
    """x_nchw: (N, Cin, H, W) -> (N, Cout, H, W).  params in PyTorch layout:
    (w1 (Ch,Cin,3,3), b1 (Ch,), w2 (Cout,Ch,3,3), b2 (Cout,))."""
    w1, b1, w2, b2 = params
    n, cin, h, w = x_nchw.shape
    ch = w1.shape[0]
    cout = w2.shape[0]
    p = h * w
    margin = ((w + 1 + 7) // 8) * 8     # sublane-aligned zero-pad margin >= W+1

    # Layout glue on tiny arrays: NCHW -> (N, H*W, C); weights to per-tap
    # (9, Cin, Cout) matmul matrices; biases to broadcastable rows.
    x_flat = jnp.transpose(x_nchw, (0, 2, 3, 1)).reshape(n, p, cin)
    w1_k = jnp.transpose(w1, (2, 3, 1, 0)).reshape(9, cin, ch).astype(jnp.float32)
    w2_k = jnp.transpose(w2, (2, 3, 1, 0)).reshape(9, ch, cout).astype(jnp.float32)
    b1_r = b1.reshape(1, ch).astype(jnp.float32)
    b2_r = b2.reshape(1, cout).astype(jnp.float32)

    kernel = functools.partial(_segmenter_inpaint_kernel, width=w, margin=margin)

    out_flat = pl.pallas_call(
        kernel,
        out_shape=jax.ShapeDtypeStruct((n, p, cout), x_nchw.dtype),
        grid_spec=pltpu.PrefetchScalarGridSpec(
            num_scalar_prefetch=0,
            grid=(n,),
            in_specs=[
                pl.BlockSpec((1, p, cin), lambda b: (b, 0, 0)),
                pl.BlockSpec((9, cin, ch), lambda b: (0, 0, 0)),
                pl.BlockSpec((1, ch), lambda b: (0, 0)),
                pl.BlockSpec((9, ch, cout), lambda b: (0, 0, 0)),
                pl.BlockSpec((1, cout), lambda b: (0, 0)),
            ],
            out_specs=pl.BlockSpec((1, p, cout), lambda b: (b, 0, 0)),
            scratch_shapes=[
                pltpu.VMEM((p + 2 * margin, cin), jnp.float32),
                pltpu.VMEM((p + 2 * margin, ch), jnp.float32),
            ],
        ),
        compiler_params=pltpu.CompilerParams(
            dimension_semantics=("parallel",),
        ),
    )(x_flat, w1_k, b1_r, w2_k, b2_r)

    # TODO(synk): for large images add a spatial grid axis (row tiles with a
    # 1-row halo) instead of one (H*W, C) block per batch element.
    return jnp.transpose(out_flat.reshape(n, h, w, cout), (0, 3, 1, 2))


if __name__ == "__main__":
    # Small shapes consistent with the module: batch=2, input_dim=4,
    # spatial=16x16, hidden_dim=32, output_dim=3.
    N, CIN, H, W = 2, 4, 16, 16
    CH, COUT = 32, 3

    key = jax.random.PRNGKey(0)
    k = jax.random.split(key, 5)
    x = jax.random.normal(k[0], (N, CIN, H, W), jnp.float32)
    w1 = jax.random.normal(k[1], (CH, CIN, 3, 3), jnp.float32) / np.sqrt(CIN * 9)
    b1 = jax.random.normal(k[2], (CH,), jnp.float32) * 0.1
    w2 = jax.random.normal(k[3], (COUT, CH, 3, 3), jnp.float32) / np.sqrt(CH * 9)
    b2 = jax.random.normal(k[4], (COUT,), jnp.float32) * 0.1

    out = segmenter_net_inpaint(x, (w1, b1, w2, b2))
    out = jax.block_until_ready(out)

    assert out.shape == (N, COUT, H, W), out.shape
    assert bool(jnp.all(jnp.isfinite(out)))

    # Pure-JAX reference (same forward semantics as the PyTorch module).
    dn = ("NCHW", "OIHW", "NCHW")
    ref = jax.lax.conv_general_dilated(x, w1, (1, 1), "SAME",
                                       dimension_numbers=dn)
    ref = jax.nn.relu(ref + b1.reshape(1, CH, 1, 1))
    ref = jax.lax.conv_general_dilated(ref, w2, (1, 1), "SAME",
                                       dimension_numbers=dn)
    ref = ref + b2.reshape(1, COUT, 1, 1)
    err = float(jnp.max(jnp.abs(out - ref)))
    assert err < 5e-2, f"max abs error vs reference: {err}"

    print("KERNEL_OK")
</pallas_src>

<mosaic_0001>
module attributes {stable_mosaic.version = 11 : i64} {
  func.func @_segmenter_inpaint_kernel(%arg0: i32, %arg1: memref<1x256x4xf32, #tpu.memory_space<vmem>>, %arg2: memref<9x4x32xf32, #tpu.memory_space<vmem>>, %arg3: memref<1x32xf32, #tpu.memory_space<vmem>>, %arg4: memref<9x32x3xf32, #tpu.memory_space<vmem>>, %arg5: memref<1x3xf32, #tpu.memory_space<vmem>>, %arg6: memref<1x256x3xf32, #tpu.memory_space<vmem>>, %arg7: memref<304x4xf32, #tpu.memory_space<vmem>>, %arg8: memref<304x32xf32, #tpu.memory_space<vmem>>) attributes {dimension_semantics = [#tpu.dimension_semantics<parallel>], iteration_bounds = array<i64: 2>, scalar_prefetch = 0 : i64, scratch_operands = 2 : i64, tpu.core_type = #tpu.core_type<tc>, window_params = [{transform_indices = @transform_0, window_bounds = array<i64: 1, 256, 4>}, {pipeline_mode = #tpu.pipeline_mode<synchronous>, transform_indices = @transform_1, window_bounds = array<i64: 9, 4, 32>}, {pipeline_mode = #tpu.pipeline_mode<synchronous>, transform_indices = @transform_2, window_bounds = array<i64: 1, 32>}, {pipeline_mode = #tpu.pipeline_mode<synchronous>, transform_indices = @transform_3, window_bounds = array<i64: 9, 32, 3>}, {pipeline_mode = #tpu.pipeline_mode<synchronous>, transform_indices = @transform_4, window_bounds = array<i64: 1, 3>}, {transform_indices = @transform_5, window_bounds = array<i64: 1, 256, 3>}]} {
    %cst = arith.constant 0.000000e+00 : f32
    %0 = vector.broadcast %cst : f32 to vector<24x4xf32>
    %c0 = arith.constant 0 : index
    %c0_0 = arith.constant 0 : index
    %1 = vector.load %arg7[%c0, %c0_0] : memref<304x4xf32, #tpu.memory_space<vmem>>, vector<24x4xf32>
    tpu.vector_store %arg7[%c0, %c0_0], %0 {strides = array<i32>} : memref<304x4xf32, #tpu.memory_space<vmem>>, vector<24x4xf32>,
    %cst_1 = arith.constant 0.000000e+00 : f32
    %2 = vector.broadcast %cst_1 : f32 to vector<24x4xf32>
    %c280 = arith.constant 280 : index
    %c0_2 = arith.constant 0 : index
    %3 = vector.load %arg7[%c280, %c0_2] : memref<304x4xf32, #tpu.memory_space<vmem>>, vector<24x4xf32>
    tpu.vector_store %arg7[%c280, %c0_2], %2 {strides = array<i32>} : memref<304x4xf32, #tpu.memory_space<vmem>>, vector<24x4xf32>,
    %c0_3 = arith.constant 0 : index
    %c0_4 = arith.constant 0 : index
    %c0_5 = arith.constant 0 : index
    %4 = vector.load %arg1[%c0_3, %c0_4, %c0_5] : memref<1x256x4xf32, #tpu.memory_space<vmem>>, vector<1x256x4xf32>
    %5 = vector.shape_cast %4 : vector<1x256x4xf32> to vector<256x4xf32>
    %c24 = arith.constant 24 : index
    %c0_6 = arith.constant 0 : index
    %6 = vector.load %arg7[%c24, %c0_6] : memref<304x4xf32, #tpu.memory_space<vmem>>, vector<256x4xf32>
    tpu.vector_store %arg7[%c24, %c0_6], %5 {strides = array<i32>} : memref<304x4xf32, #tpu.memory_space<vmem>>, vector<256x4xf32>,
    %7 = tpu.iota {dimensions = array<i32: 0>} : vector<256x32xi32>
    %c16_i32 = arith.constant 16 : i32
    %c0_i32 = arith.constant 0 : i32
    %8 = arith.cmpi eq, %c16_i32, %c0_i32 : i32
    %c1_i32 = arith.constant 1 : i32
    %9 = arith.select %8, %c1_i32, %c16_i32 : i32
    %10 = vector.broadcast %9 : i32 to vector<256x32xi32>
    %11 = arith.remsi %7, %10 : vector<256x32xi32>
    %c0_i32_7 = arith.constant 0 : i32
    %12 = vector.broadcast %c0_i32_7 : i32 to vector<256x32xi32>
    %13 = arith.cmpi ne, %11, %12 : vector<256x32xi32>
    %c0_i32_8 = arith.constant 0 : i32
    %14 = vector.broadcast %c0_i32_8 : i32 to vector<256x32xi32>
    %15 = arith.cmpi slt, %11, %14 : vector<256x32xi32>
    %c0_i32_9 = arith.constant 0 : i32
    %16 = arith.cmpi slt, %9, %c0_i32_9 : i32
    %17 = vector.broadcast %16 : i1 to vector<256x32xi1>
    %18 = vector.broadcast %17 : vector<256x32xi1> to vector<256x32xi1>
    %19 = arith.xori %15, %18 : vector<256x32xi1>
    %20 = arith.andi %19, %13 : vector<256x32xi1>
    %21 = vector.broadcast %9 : i32 to vector<256x32xi32>
    %22 = arith.addi %11, %21 : vector<256x32xi32>
    %23 = arith.select %20, %22, %11 : vector<256x32xi1>, vector<256x32xi32>
    %c0_i32_10 = arith.constant 0 : i32
    %24 = vector.broadcast %c0_i32_10 : i32 to vector<256x32xi32>
    %25 = arith.cmpi ne, %23, %24 : vector<256x32xi32>
    %c15_i32 = arith.constant 15 : i32
    %26 = vector.broadcast %c15_i32 : i32 to vector<256x32xi32>
    %27 = arith.cmpi ne, %23, %26 : vector<256x32xi32>
    %c7 = arith.constant 7 : index
    %c0_11 = arith.constant 0 : index
    %28 = vector.load %arg7[%c7, %c0_11] : memref<304x4xf32, #tpu.memory_space<vmem>>, vector<256x4xf32>
    %c0_12 = arith.constant 0 : index
    %c0_13 = arith.constant 0 : index
    %c0_14 = arith.constant 0 : index
    %29 = vector.load %arg2[%c0_12, %c0_13, %c0_14] : memref<9x4x32xf32, #tpu.memory_space<vmem>>, vector<1x4x32xf32>
    %30 = vector.shape_cast %29 : vector<1x4x32xf32> to vector<4x32xf32>
    %cst_15 = arith.constant dense<0.000000e+00> : vector<256x32xf32>
    %31 = tpu.matmul %28, %30, %cst_15 {dimension_numbers = #tpu.dot_dimension_numbers<[1], [0], [0], [1], [0, 0, 1, 1], [], []>} : vector<256x4xf32>, vector<4x32xf32>, vector<256x32xf32> -> vector<256x32xf32>
    %c23 = arith.constant 23 : index
    %c0_16 = arith.constant 0 : index
    %32 = vector.load %arg7[%c23, %c0_16] : memref<304x4xf32, #tpu.memory_space<vmem>>, vector<256x4xf32>
    %c3 = arith.constant 3 : index
    %c0_17 = arith.constant 0 : index
    %c0_18 = arith.constant 0 : index
    %33 = vector.load %arg2[%c3, %c0_17, %c0_18] : memref<9x4x32xf32, #tpu.memory_space<vmem>>, vector<1x4x32xf32>
    %34 = vector.shape_cast %33 : vector<1x4x32xf32> to vector<4x32xf32>
    %cst_19 = arith.constant dense<0.000000e+00> : vector<256x32xf32>
    %35 = tpu.matmul %32, %34, %cst_19 {dimension_numbers = #tpu.dot_dimension_numbers<[1], [0], [0], [1], [0, 0, 1, 1], [], []>} : vector<256x4xf32>, vector<4x32xf32>, vector<256x32xf32> -> vector<256x32xf32>
    %36 = arith.addf %31, %35 : vector<256x32xf32>
    %c39 = arith.constant 39 : index
    %c0_20 = arith.constant 0 : index
    %37 = vector.load %arg7[%c39, %c0_20] : memref<304x4xf32, #tpu.memory_space<vmem>>, vector<256x4xf32>
    %c6 = arith.constant 6 : index
    %c0_21 = arith.constant 0 : index
    %c0_22 = arith.constant 0 : index
    %38 = vector.load %arg2[%c6, %c0_21, %c0_22] : memref<9x4x32xf32, #tpu.memory_space<vmem>>, vector<1x4x32xf32>
    %39 = vector.shape_cast %38 : vector<1x4x32xf32> to vector<4x32xf32>
    %cst_23 = arith.constant dense<0.000000e+00> : vector<256x32xf32>
    %40 = tpu.matmul %37, %39, %cst_23 {dimension_numbers = #tpu.dot_dimension_numbers<[1], [0], [0], [1], [0, 0, 1, 1], [], []>} : vector<256x4xf32>, vector<4x32xf32>, vector<256x32xf32> -> vector<256x32xf32>
    %41 = arith.addf %36, %40 : vector<256x32xf32>
    %cst_24 = arith.constant 0.000000e+00 : f32
    %42 = vector.broadcast %cst_24 : f32 to vector<256x32xf32>
    %43 = arith.select %25, %41, %42 : vector<256x32xi1>, vector<256x32xf32>
    %c8 = arith.constant 8 : index
    %c0_25 = arith.constant 0 : index
    %44 = vector.load %arg7[%c8, %c0_25] : memref<304x4xf32, #tpu.memory_space<vmem>>, vector<256x4xf32>
    %c1 = arith.constant 1 : index
    %c0_26 = arith.constant 0 : index
    %c0_27 = arith.constant 0 : index
    %45 = vector.load %arg2[%c1, %c0_26, %c0_27] : memref<9x4x32xf32, #tpu.memory_space<vmem>>, vector<1x4x32xf32>
    %46 = vector.shape_cast %45 : vector<1x4x32xf32> to vector<4x32xf32>
    %cst_28 = arith.constant dense<0.000000e+00> : vector<256x32xf32>
    %47 = tpu.matmul %44, %46, %cst_28 {dimension_numbers = #tpu.dot_dimension_numbers<[1], [0], [0], [1], [0, 0, 1, 1], [], []>} : vector<256x4xf32>, vector<4x32xf32>, vector<256x32xf32> -> vector<256x32xf32>
    %c24_29 = arith.constant 24 : index
    %c0_30 = arith.constant 0 : index
    %48 = vector.load %arg7[%c24_29, %c0_30] : memref<304x4xf32, #tpu.memory_space<vmem>>, vector<256x4xf32>
    %c4 = arith.constant 4 : index
    %c0_31 = arith.constant 0 : index
    %c0_32 = arith.constant 0 : index
    %49 = vector.load %arg2[%c4, %c0_31, %c0_32] : memref<9x4x32xf32, #tpu.memory_space<vmem>>, vector<1x4x32xf32>
    %50 = vector.shape_cast %49 : vector<1x4x32xf32> to vector<4x32xf32>
    %cst_33 = arith.constant dense<0.000000e+00> : vector<256x32xf32>
    %51 = tpu.matmul %48, %50, %cst_33 {dimension_numbers = #tpu.dot_dimension_numbers<[1], [0], [0], [1], [0, 0, 1, 1], [], []>} : vector<256x4xf32>, vector<4x32xf32>, vector<256x32xf32> -> vector<256x32xf32>
    %52 = arith.addf %47, %51 : vector<256x32xf32>
    %c40 = arith.constant 40 : index
    %c0_34 = arith.constant 0 : index
    %53 = vector.load %arg7[%c40, %c0_34] : memref<304x4xf32, #tpu.memory_space<vmem>>, vector<256x4xf32>
    %c7_35 = arith.constant 7 : index
    %c0_36 = arith.constant 0 : index
    %c0_37 = arith.constant 0 : index
    %54 = vector.load %arg2[%c7_35, %c0_36, %c0_37] : memref<9x4x32xf32, #tpu.memory_space<vmem>>, vector<1x4x32xf32>
    %55 = vector.shape_cast %54 : vector<1x4x32xf32> to vector<4x32xf32>
    %cst_38 = arith.constant dense<0.000000e+00> : vector<256x32xf32>
    %56 = tpu.matmul %53, %55, %cst_38 {dimension_numbers = #tpu.dot_dimension_numbers<[1], [0], [0], [1], [0, 0, 1, 1], [], []>} : vector<256x4xf32>, vector<4x32xf32>, vector<256x32xf32> -> vector<256x32xf32>
    %57 = arith.addf %52, %56 : vector<256x32xf32>
    %58 = arith.addf %43, %57 : vector<256x32xf32>
    %c9 = arith.constant 9 : index
    %c0_39 = arith.constant 0 : index
    %59 = vector.load %arg7[%c9, %c0_39] : memref<304x4xf32, #tpu.memory_space<vmem>>, vector<256x4xf32>
    %c2 = arith.constant 2 : index
    %c0_40 = arith.constant 0 : index
    %c0_41 = arith.constant 0 : index
    %60 = vector.load %arg2[%c2, %c0_40, %c0_41] : memref<9x4x32xf32, #tpu.memory_space<vmem>>, vector<1x4x32xf32>
    %61 = vector.shape_cast %60 : vector<1x4x32xf32> to vector<4x32xf32>
    %cst_42 = arith.constant dense<0.000000e+00> : vector<256x32xf32>
    %62 = tpu.matmul %59, %61, %cst_42 {dimension_numbers = #tpu.dot_dimension_numbers<[1], [0], [0], [1], [0, 0, 1, 1], [], []>} : vector<256x4xf32>, vector<4x32xf32>, vector<256x32xf32> -> vector<256x32xf32>
    %c25 = arith.constant 25 : index
    %c0_43 = arith.constant 0 : index
    %63 = vector.load %arg7[%c25, %c0_43] : memref<304x4xf32, #tpu.memory_space<vmem>>, vector<256x4xf32>
    %c5 = arith.constant 5 : index
    %c0_44 = arith.constant 0 : index
    %c0_45 = arith.constant 0 : index
    %64 = vector.load %arg2[%c5, %c0_44, %c0_45] : memref<9x4x32xf32, #tpu.memory_space<vmem>>, vector<1x4x32xf32>
    %65 = vector.shape_cast %64 : vector<1x4x32xf32> to vector<4x32xf32>
    %cst_46 = arith.constant dense<0.000000e+00> : vector<256x32xf32>
    %66 = tpu.matmul %63, %65, %cst_46 {dimension_numbers = #tpu.dot_dimension_numbers<[1], [0], [0], [1], [0, 0, 1, 1], [], []>} : vector<256x4xf32>, vector<4x32xf32>, vector<256x32xf32> -> vector<256x32xf32>
    %67 = arith.addf %62, %66 : vector<256x32xf32>
    %c41 = arith.constant 41 : index
    %c0_47 = arith.constant 0 : index
    %68 = vector.load %arg7[%c41, %c0_47] : memref<304x4xf32, #tpu.memory_space<vmem>>, vector<256x4xf32>
    %c8_48 = arith.constant 8 : index
    %c0_49 = arith.constant 0 : index
    %c0_50 = arith.constant 0 : index
    %69 = vector.load %arg2[%c8_48, %c0_49, %c0_50] : memref<9x4x32xf32, #tpu.memory_space<vmem>>, vector<1x4x32xf32>
    %70 = vector.shape_cast %69 : vector<1x4x32xf32> to vector<4x32xf32>
    %cst_51 = arith.constant dense<0.000000e+00> : vector<256x32xf32>
    %71 = tpu.matmul %68, %70, %cst_51 {dimension_numbers = #tpu.dot_dimension_numbers<[1], [0], [0], [1], [0, 0, 1, 1], [], []>} : vector<256x4xf32>, vector<4x32xf32>, vector<256x32xf32> -> vector<256x32xf32>
    %72 = arith.addf %67, %71 : vector<256x32xf32>
    %cst_52 = arith.constant 0.000000e+00 : f32
    %73 = vector.broadcast %cst_52 : f32 to vector<256x32xf32>
    %74 = arith.select %27, %72, %73 : vector<256x32xi1>, vector<256x32xf32>
    %75 = arith.addf %58, %74 : vector<256x32xf32>
    %c0_53 = arith.constant 0 : index
    %c0_54 = arith.constant 0 : index
    %76 = vector.load %arg3[%c0_53, %c0_54] : memref<1x32xf32, #tpu.memory_space<vmem>>, vector<1x32xf32>
    %77 = vector.broadcast %76 : vector<1x32xf32> to vector<256x32xf32>
    %78 = arith.addf %75, %77 : vector<256x32xf32>
    %cst_55 = arith.constant 0.000000e+00 : f32
    %79 = vector.broadcast %cst_55 : f32 to vector<256x32xf32>
    %80 = arith.maximumf %78, %79 : vector<256x32xf32>
    %cst_56 = arith.constant 0.000000e+00 : f32
    %81 = vector.broadcast %cst_56 : f32 to vector<24x32xf32>
    %c0_57 = arith.constant 0 : index
    %c0_58 = arith.constant 0 : index
    %82 = vector.load %arg8[%c0_57, %c0_58] : memref<304x32xf32, #tpu.memory_space<vmem>>, vector<24x32xf32>
    tpu.vector_store %arg8[%c0_57, %c0_58], %81 {strides = array<i32>} : memref<304x32xf32, #tpu.memory_space<vmem>>, vector<24x32xf32>,
    %cst_59 = arith.constant 0.000000e+00 : f32
    %83 = vector.broadcast %cst_59 : f32 to vector<24x32xf32>
    %c280_60 = arith.constant 280 : index
    %c0_61 = arith.constant 0 : index
    %84 = vector.load %arg8[%c280_60, %c0_61] : memref<304x32xf32, #tpu.memory_space<vmem>>, vector<24x32xf32>
    tpu.vector_store %arg8[%c280_60, %c0_61], %83 {strides = array<i32>} : memref<304x32xf32, #tpu.memory_space<vmem>>, vector<24x32xf32>,
    %c24_62 = arith.constant 24 : index
    %c0_63 = arith.constant 0 : index
    %85 = vector.load %arg8[%c24_62, %c0_63] : memref<304x32xf32, #tpu.memory_space<vmem>>, vector<256x32xf32>
    tpu.vector_store %arg8[%c24_62, %c0_63], %80 {strides = array<i32>} : memref<304x32xf32, #tpu.memory_space<vmem>>, vector<256x32xf32>,
    %86 = tpu.iota {dimensions = array<i32: 0>} : vector<256x3xi32>
    %c16_i32_64 = arith.constant 16 : i32
    %c0_i32_65 = arith.constant 0 : i32
    %87 = arith.cmpi eq, %c16_i32_64, %c0_i32_65 : i32
    %c1_i32_66 = arith.constant 1 : i32
    %88 = arith.select %87, %c1_i32_66, %c16_i32_64 : i32
    %89 = vector.broadcast %88 : i32 to vector<256x3xi32>
    %90 = arith.remsi %86, %89 : vector<256x3xi32>
    %c0_i32_67 = arith.constant 0 : i32
    %91 = vector.broadcast %c0_i32_67 : i32 to vector<256x3xi32>
    %92 = arith.cmpi ne, %90, %91 : vector<256x3xi32>
    %c0_i32_68 = arith.constant 0 : i32
    %93 = vector.broadcast %c0_i32_68 : i32 to vector<256x3xi32>
    %94 = arith.cmpi slt, %90, %93 : vector<256x3xi32>
    %c0_i32_69 = arith.constant 0 : i32
    %95 = arith.cmpi slt, %88, %c0_i32_69 : i32
    %96 = vector.broadcast %95 : i1 to vector<256x3xi1>
    %97 = vector.broadcast %96 : vector<256x3xi1> to vector<256x3xi1>
    %98 = arith.xori %94, %97 : vector<256x3xi1>
    %99 = arith.andi %98, %92 : vector<256x3xi1>
    %100 = vector.broadcast %88 : i32 to vector<256x3xi32>
    %101 = arith.addi %90, %100 : vector<256x3xi32>
    %102 = arith.select %99, %101, %90 : vector<256x3xi1>, vector<256x3xi32>
    %c0_i32_70 = arith.constant 0 : i32
    %103 = vector.broadcast %c0_i32_70 : i32 to vector<256x3xi32>
    %104 = arith.cmpi ne, %102, %103 : vector<256x3xi32>
    %c15_i32_71 = arith.constant 15 : i32
    %105 = vector.broadcast %c15_i32_71 : i32 to vector<256x3xi32>
    %106 = arith.cmpi ne, %102, %105 : vector<256x3xi32>
    %c7_72 = arith.constant 7 : index
    %c0_73 = arith.constant 0 : index
    %107 = vector.load %arg8[%c7_72, %c0_73] : memref<304x32xf32, #tpu.memory_space<vmem>>, vector<256x32xf32>
    %c0_74 = arith.constant 0 : index
    %c0_75 = arith.constant 0 : index
    %c0_76 = arith.constant 0 : index
    %108 = vector.load %arg4[%c0_74, %c0_75, %c0_76] : memref<9x32x3xf32, #tpu.memory_space<vmem>>, vector<1x32x3xf32>
    %109 = vector.shape_cast %108 : vector<1x32x3xf32> to vector<32x3xf32>
    %cst_77 = arith.constant dense<0.000000e+00> : vector<256x3xf32>
    %110 = tpu.matmul %107, %109, %cst_77 {dimension_numbers = #tpu.dot_dimension_numbers<[1], [0], [0], [1], [0, 0, 1, 1], [], []>} : vector<256x32xf32>, vector<32x3xf32>, vector<256x3xf32> -> vector<256x3xf32>
    %c23_78 = arith.constant 23 : index
    %c0_79 = arith.constant 0 : index
    %111 = vector.load %arg8[%c23_78, %c0_79] : memref<304x32xf32, #tpu.memory_space<vmem>>, vector<256x32xf32>
    %c3_80 = arith.constant 3 : index
    %c0_81 = arith.constant 0 : index
    %c0_82 = arith.constant 0 : index
    %112 = vector.load %arg4[%c3_80, %c0_81, %c0_82] : memref<9x32x3xf32, #tpu.memory_space<vmem>>, vector<1x32x3xf32>
    %113 = vector.shape_cast %112 : vector<1x32x3xf32> to vector<32x3xf32>
    %cst_83 = arith.constant dense<0.000000e+00> : vector<256x3xf32>
    %114 = tpu.matmul %111, %113, %cst_83 {dimension_numbers = #tpu.dot_dimension_numbers<[1], [0], [0], [1], [0, 0, 1, 1], [], []>} : vector<256x32xf32>, vector<32x3xf32>, vector<256x3xf32> -> vector<256x3xf32>
    %115 = arith.addf %110, %114 : vector<256x3xf32>
    %c39_84 = arith.constant 39 : index
    %c0_85 = arith.constant 0 : index
    %116 = vector.load %arg8[%c39_84, %c0_85] : memref<304x32xf32, #tpu.memory_space<vmem>>, vector<256x32xf32>
    %c6_86 = arith.constant 6 : index
    %c0_87 = arith.constant 0 : index
    %c0_88 = arith.constant 0 : index
    %117 = vector.load %arg4[%c6_86, %c0_87, %c0_88] : memref<9x32x3xf32, #tpu.memory_space<vmem>>, vector<1x32x3xf32>
    %118 = vector.shape_cast %117 : vector<1x32x3xf32> to vector<32x3xf32>
    %cst_89 = arith.constant dense<0.000000e+00> : vector<256x3xf32>
    %119 = tpu.matmul %116, %118, %cst_89 {dimension_numbers = #tpu.dot_dimension_numbers<[1], [0], [0], [1], [0, 0, 1, 1], [], []>} : vector<256x32xf32>, vector<32x3xf32>, vector<256x3xf32> -> vector<256x3xf32>
    %120 = arith.addf %115, %119 : vector<256x3xf32>
    %cst_90 = arith.constant 0.000000e+00 : f32
    %121 = vector.broadcast %cst_90 : f32 to vector<256x3xf32>
    %122 = arith.select %104, %120, %121 : vector<256x3xi1>, vector<256x3xf32>
    %c8_91 = arith.constant 8 : index
    %c0_92 = arith.constant 0 : index
    %123 = vector.load %arg8[%c8_91, %c0_92] : memref<304x32xf32, #tpu.memory_space<vmem>>, vector<256x32xf32>
    %c1_93 = arith.constant 1 : index
    %c0_94 = arith.constant 0 : index
    %c0_95 = arith.constant 0 : index
    %124 = vector.load %arg4[%c1_93, %c0_94, %c0_95] : memref<9x32x3xf32, #tpu.memory_space<vmem>>, vector<1x32x3xf32>
    %125 = vector.shape_cast %124 : vector<1x32x3xf32> to vector<32x3xf32>
    %cst_96 = arith.constant dense<0.000000e+00> : vector<256x3xf32>
    %126 = tpu.matmul %123, %125, %cst_96 {dimension_numbers = #tpu.dot_dimension_numbers<[1], [0], [0], [1], [0, 0, 1, 1], [], []>} : vector<256x32xf32>, vector<32x3xf32>, vector<256x3xf32> -> vector<256x3xf32>
    %c24_97 = arith.constant 24 : index
    %c0_98 = arith.constant 0 : index
    %127 = vector.load %arg8[%c24_97, %c0_98] : memref<304x32xf32, #tpu.memory_space<vmem>>, vector<256x32xf32>
    %c4_99 = arith.constant 4 : index
    %c0_100 = arith.constant 0 : index
    %c0_101 = arith.constant 0 : index
    %128 = vector.load %arg4[%c4_99, %c0_100, %c0_101] : memref<9x32x3xf32, #tpu.memory_space<vmem>>, vector<1x32x3xf32>
    %129 = vector.shape_cast %128 : vector<1x32x3xf32> to vector<32x3xf32>
    %cst_102 = arith.constant dense<0.000000e+00> : vector<256x3xf32>
    %130 = tpu.matmul %127, %129, %cst_102 {dimension_numbers = #tpu.dot_dimension_numbers<[1], [0], [0], [1], [0, 0, 1, 1], [], []>} : vector<256x32xf32>, vector<32x3xf32>, vector<256x3xf32> -> vector<256x3xf32>
    %131 = arith.addf %126, %130 : vector<256x3xf32>
    %c40_103 = arith.constant 40 : index
    %c0_104 = arith.constant 0 : index
    %132 = vector.load %arg8[%c40_103, %c0_104] : memref<304x32xf32, #tpu.memory_space<vmem>>, vector<256x32xf32>
    %c7_105 = arith.constant 7 : index
    %c0_106 = arith.constant 0 : index
    %c0_107 = arith.constant 0 : index
    %133 = vector.load %arg4[%c7_105, %c0_106, %c0_107] : memref<9x32x3xf32, #tpu.memory_space<vmem>>, vector<1x32x3xf32>
    %134 = vector.shape_cast %133 : vector<1x32x3xf32> to vector<32x3xf32>
    %cst_108 = arith.constant dense<0.000000e+00> : vector<256x3xf32>
    %135 = tpu.matmul %132, %134, %cst_108 {dimension_numbers = #tpu.dot_dimension_numbers<[1], [0], [0], [1], [0, 0, 1, 1], [], []>} : vector<256x32xf32>, vector<32x3xf32>, vector<256x3xf32> -> vector<256x3xf32>
    %136 = arith.addf %131, %135 : vector<256x3xf32>
    %137 = arith.addf %122, %136 : vector<256x3xf32>
    %c9_109 = arith.constant 9 : index
    %c0_110 = arith.constant 0 : index
    %138 = vector.load %arg8[%c9_109, %c0_110] : memref<304x32xf32, #tpu.memory_space<vmem>>, vector<256x32xf32>
    %c2_111 = arith.constant 2 : index
    %c0_112 = arith.constant 0 : index
    %c0_113 = arith.constant 0 : index
    %139 = vector.load %arg4[%c2_111, %c0_112, %c0_113] : memref<9x32x3xf32, #tpu.memory_space<vmem>>, vector<1x32x3xf32>
    %140 = vector.shape_cast %139 : vector<1x32x3xf32> to vector<32x3xf32>
    %cst_114 = arith.constant dense<0.000000e+00> : vector<256x3xf32>
    %141 = tpu.matmul %138, %140, %cst_114 {dimension_numbers = #tpu.dot_dimension_numbers<[1], [0], [0], [1], [0, 0, 1, 1], [], []>} : vector<256x32xf32>, vector<32x3xf32>, vector<256x3xf32> -> vector<256x3xf32>
    %c25_115 = arith.constant 25 : index
    %c0_116 = arith.constant 0 : index
    %142 = vector.load %arg8[%c25_115, %c0_116] : memref<304x32xf32, #tpu.memory_space<vmem>>, vector<256x32xf32>
    %c5_117 = arith.constant 5 : index
    %c0_118 = arith.constant 0 : index
    %c0_119 = arith.constant 0 : index
    %143 = vector.load %arg4[%c5_117, %c0_118, %c0_119] : memref<9x32x3xf32, #tpu.memory_space<vmem>>, vector<1x32x3xf32>
    %144 = vector.shape_cast %143 : vector<1x32x3xf32> to vector<32x3xf32>
    %cst_120 = arith.constant dense<0.000000e+00> : vector<256x3xf32>
    %145 = tpu.matmul %142, %144, %cst_120 {dimension_numbers = #tpu.dot_dimension_numbers<[1], [0], [0], [1], [0, 0, 1, 1], [], []>} : vector<256x32xf32>, vector<32x3xf32>, vector<256x3xf32> -> vector<256x3xf32>
    %146 = arith.addf %141, %145 : vector<256x3xf32>
    %c41_121 = arith.constant 41 : index
    %c0_122 = arith.constant 0 : index
    %147 = vector.load %arg8[%c41_121, %c0_122] : memref<304x32xf32, #tpu.memory_space<vmem>>, vector<256x32xf32>
    %c8_123 = arith.constant 8 : index
    %c0_124 = arith.constant 0 : index
    %c0_125 = arith.constant 0 : index
    %148 = vector.load %arg4[%c8_123, %c0_124, %c0_125] : memref<9x32x3xf32, #tpu.memory_space<vmem>>, vector<1x32x3xf32>
    %149 = vector.shape_cast %148 : vector<1x32x3xf32> to vector<32x3xf32>
    %cst_126 = arith.constant dense<0.000000e+00> : vector<256x3xf32>
    %150 = tpu.matmul %147, %149, %cst_126 {dimension_numbers = #tpu.dot_dimension_numbers<[1], [0], [0], [1], [0, 0, 1, 1], [], []>} : vector<256x32xf32>, vector<32x3xf32>, vector<256x3xf32> -> vector<256x3xf32>
    %151 = arith.addf %146, %150 : vector<256x3xf32>
    %cst_127 = arith.constant 0.000000e+00 : f32
    %152 = vector.broadcast %cst_127 : f32 to vector<256x3xf32>
    %153 = arith.select %106, %151, %152 : vector<256x3xi1>, vector<256x3xf32>
    %154 = arith.addf %137, %153 : vector<256x3xf32>
    %c0_128 = arith.constant 0 : index
    %c0_129 = arith.constant 0 : index
    %155 = vector.load %arg5[%c0_128, %c0_129] : memref<1x3xf32, #tpu.memory_space<vmem>>, vector<1x3xf32>
    %156 = vector.broadcast %155 : vector<1x3xf32> to vector<256x3xf32>
    %157 = arith.addf %154, %156 : vector<256x3xf32>
    %c0_130 = arith.constant 0 : index
    %c0_131 = arith.constant 0 : index
    %c0_132 = arith.constant 0 : index
    %158 = vector.load %arg6[%c0_130, %c0_131, %c0_132] : memref<1x256x3xf32, #tpu.memory_space<vmem>>, vector<1x256x3xf32>
    %159 = vector.shape_cast %158 : vector<1x256x3xf32> to vector<256x3xf32>
    %160 = vector.shape_cast %157 : vector<256x3xf32> to vector<1x256x3xf32>
    tpu.vector_store %arg6[%c0_130, %c0_131, %c0_132], %160 {strides = array<i32>} : memref<1x256x3xf32, #tpu.memory_space<vmem>>, vector<1x256x3xf32>,
    return
  }
  func.func @transform_0(%arg0: i32) -> (i32, i32, i32) {
    %c0_i32 = arith.constant 0 : i32
    %c0_i32_0 = arith.constant 0 : i32
    %c0_i32_1 = arith.constant 0 : i32
    return %arg0, %c0_i32, %c0_i32_0 : i32, i32, i32
  }
  func.func @transform_1(%arg0: i32) -> (i32, i32, i32) {
    %c0_i32 = arith.constant 0 : i32
    %c0_i32_0 = arith.constant 0 : i32
    %c0_i32_1 = arith.constant 0 : i32
    %c0_i32_2 = arith.constant 0 : i32
    return %c0_i32, %c0_i32_0, %c0_i32_1 : i32, i32, i32
  }
  func.func @transform_2(%arg0: i32) -> (i32, i32) {
    %c0_i32 = arith.constant 0 : i32
    %c0_i32_0 = arith.constant 0 : i32
    %c0_i32_1 = arith.constant 0 : i32
    return %c0_i32, %c0_i32_0 : i32, i32
  }
  func.func @transform_3(%arg0: i32) -> (i32, i32, i32) {
    %c0_i32 = arith.constant 0 : i32
    %c0_i32_0 = arith.constant 0 : i32
    %c0_i32_1 = arith.constant 0 : i32
    %c0_i32_2 = arith.constant 0 : i32
    return %c0_i32, %c0_i32_0, %c0_i32_1 : i32, i32, i32
  }
  func.func @transform_4(%arg0: i32) -> (i32, i32) {
    %c0_i32 = arith.constant 0 : i32
    %c0_i32_0 = arith.constant 0 : i32
    %c0_i32_1 = arith.constant 0 : i32
    return %c0_i32, %c0_i32_0 : i32, i32
  }
  func.func @transform_5(%arg0: i32) -> (i32, i32, i32) {
    %c0_i32 = arith.constant 0 : i32
    %c0_i32_0 = arith.constant 0 : i32
    %c0_i32_1 = arith.constant 0 : i32
    return %arg0, %c0_i32, %c0_i32_0 : i32, i32, i32
  }
}

</mosaic_0001>

<bundles_post_ra>
// kernel: tpu_custom_call.1
= control target key start
LH: loop header
LB: loop body
LE: loop exit
PB: predicated region body
PF: predicated region fallthrough
CT: control target
= control target key end

     0   :  { %s9904_s18 = smov 0   ;;  %s12393_s0 = inlined_call_operand.vmem [shape: f32[2,256,4], index: 0, kind: input, shape index: {}]   ;;  %s12394_s1 = inlined_call_operand.vmem [shape: f32[9,4,32], index: 1, kind: input, shape index: {}]   ;;  %s12395_s2 = inlined_call_operand.vmem [shape: f32[1,32], index: 2, kind: input, shape index: {}]   ;;  %s12396_s3 = inlined_call_operand.vmem [shape: f32[9,32,3], index: 3, kind: input, shape index: {}]   ;;  %s12397_s4 = inlined_call_operand.vmem [shape: f32[1,3], index: 4, kind: input, shape index: {}]   ;;  %s12398_s5 = inlined_call_operand.vmem [shape: f32[2,256,3], index: 5, kind: output, shape index: {}]  }
   0x1 LB: > { %s7185_s19 = sadd.s32 4294967295, %s9871_s18   ;;  %p7189_p0 = scmp.ge.s32.totalorder %s9871_s18, 1  ;;  %s9871_s18 = sphi %s9904_s18, %s15_s18  }
   0x2   : > { %p187_p1 = scmp.lt.s32.totalorder %s9871_s18, 3 }
   0x4   : > { %p188_p2 = pnand %p7189_p0, %p187_p1 }
   0x6   : > { %191 = sbr.rel (%p188_p2) target bundleno = 1188 (0x4a4), region = 40 }
   0xd   : > { %v7194_v0 = vld [vmem:[%s12394_s1 + $0xc] sm:$0xf]  ;;  %vm910_vm0 = vcmask 1043456   ;;  %v7296_v1 = vld [vmem:[%s12394_s1 + $0x10] sm:$0xf]  ;;  %p215_p3 = scmp.lt.s32.totalorder %s7185_s19, 1 }
   0xe   : > { %8446 = vmatprep.subr.msk.mxu0 %vm910_vm0, %v7194_v0  ;;  %8596 = vmatprep.subr.msk.mxu1 %vm910_vm0, %v7296_v1  ;;  %vm225_vm1 = vcmask 31744   ;;  %v9923_v2 = vld [vmem:[%s12394_s1] sm:$0xf]  ;;  %v9928_v3 = vld [vmem:[%s12394_s1 + $0x4] sm:$0xf]  ;;  %v12399_v4 = vmov 0.0  }
   0xf   : > { %8447 = vmatpush3.msk.msra.mxu0 %vm910_vm0, %v7194_v0  ;;  %s12945_s19 = smov (!%p215_p3, %s7185_s19), 1  ;;  %228 = vst.msk [vmem:[#allocation2 + $0x10] sm:$0xff] %vm225_vm1, %v12399_v4  ;;  %226 = vst.msk [vmem:[#allocation2] sm:$0xff] %vm225_vm1, %v12399_v4  ;;  %8597 = vmatpush3.msk.msra.mxu1 %vm910_vm0, %v7296_v1  ;;  %v10006_v29 = vld [vmem:[%s12394_s1 + $0x18] sm:$0xf] }
  0x10   : > { %227 = vst.msk [vmem:[#allocation2 + $0x8] sm:$0xff] %vm225_vm1, %v12399_v4  ;;  %229 = vst.msk [vmem:[#allocation2 + $0x118] sm:$0xff] %vm225_vm1, %v12399_v4  ;;  %8496 = vmatprep.subr.msk.mxu0 %vm910_vm0, %v9923_v2  ;;  %8646 = vmatprep.subr.msk.mxu1 %vm910_vm0, %v9928_v3  ;;  %s7823_s28 = sshll.u32 %s12945_s19, 8  ;;  %v10132_v0 = vld [vmem:[%s12394_s1 + $0x1c] sm:$0xf] }
  0x11   : > { %230 = vst.msk [vmem:[#allocation2 + $0x120] sm:$0xff] %vm225_vm1, %v12399_v4  ;;  %231 = vst.msk [vmem:[#allocation2 + $0x128] sm:$0xff] %vm225_vm1, %v12399_v4  ;;  %s9956_s6 = scalar_lea.vmem %s12393_s0, %s7823_s28  ;;  %s12232_s7 = scalar_lea.vmem %s12398_s5, %s7823_s28 }
  0x12   : > { %v232_v5 = vld [vmem:[%s9956_s6] sm:$0xff]  ;;  %v233_v6 = vld [vmem:[%s9956_s6 + $0x8] sm:$0xff]  ;;  %v234_v7 = vld [vmem:[%s9956_s6 + $0x10] sm:$0xff] }
  0x13   : > { %264 = vst.msk [vmem:[#allocation2 + $0x18] sm:$0xff] %vm225_vm1, %v232_v5  ;;  %265 = vst.msk [vmem:[#allocation2 + $0x20] sm:$0xff] %vm225_vm1, %v233_v6  ;;  %v235_v8 = vld [vmem:[%s9956_s6 + $0x18] sm:$0xff]  ;;  %v236_v9 = vld [vmem:[%s9956_s6 + $0x20] sm:$0xff] }
  0x14   : > { %266 = vst.msk [vmem:[#allocation2 + $0x28] sm:$0xff] %vm225_vm1, %v234_v7  ;;  %v237_v10 = vld [vmem:[%s9956_s6 + $0x28] sm:$0xff]  ;;  %267 = vst.msk [vmem:[#allocation2 + $0x30] sm:$0xff] %vm225_vm1, %v235_v8  ;;  %v238_v11 = vld [vmem:[%s9956_s6 + $0x30] sm:$0xff] }
  0x15   : > { %268 = vst.msk [vmem:[#allocation2 + $0x38] sm:$0xff] %vm225_vm1, %v236_v9  ;;  %269 = vst.msk [vmem:[#allocation2 + $0x40] sm:$0xff] %vm225_vm1, %v237_v10  ;;  %v239_v12 = vld [vmem:[%s9956_s6 + $0x38] sm:$0xff]  ;;  %v240_v13 = vld [vmem:[%s9956_s6 + $0x40] sm:$0xff] }
  0x16   : > { %270 = vst.msk [vmem:[#allocation2 + $0x48] sm:$0xff] %vm225_vm1, %v238_v11  ;;  %271 = vst.msk [vmem:[#allocation2 + $0x50] sm:$0xff] %vm225_vm1, %v239_v12  ;;  %v241_v14 = vld [vmem:[%s9956_s6 + $0x48] sm:$0xff]  ;;  %v242_v15 = vld [vmem:[%s9956_s6 + $0x50] sm:$0xff] }
  0x17   : > { %272 = vst.msk [vmem:[#allocation2 + $0x58] sm:$0xff] %vm225_vm1, %v240_v13  ;;  %v243_v16 = vld [vmem:[%s9956_s6 + $0x58] sm:$0xff]  ;;  %273 = vst.msk [vmem:[#allocation2 + $0x60] sm:$0xff] %vm225_vm1, %v241_v14  ;;  %v244_v17 = vld [vmem:[%s9956_s6 + $0x60] sm:$0xff] }
  0x18   : > { %274 = vst.msk [vmem:[#allocation2 + $0x68] sm:$0xff] %vm225_vm1, %v242_v15  ;;  %275 = vst.msk [vmem:[#allocation2 + $0x70] sm:$0xff] %vm225_vm1, %v243_v16  ;;  %v245_v18 = vld [vmem:[%s9956_s6 + $0x68] sm:$0xff]  ;;  %v246_v19 = vld [vmem:[%s9956_s6 + $0x70] sm:$0xff] }
  0x19   : > { %276 = vst.msk [vmem:[#allocation2 + $0x78] sm:$0xff] %vm225_vm1, %v244_v17  ;;  %277 = vst.msk [vmem:[#allocation2 + $0x80] sm:$0xff] %vm225_vm1, %v245_v18  ;;  %v247_v20 = vld [vmem:[%s9956_s6 + $0x78] sm:$0xff]  ;;  %v248_v21 = vld [vmem:[%s9956_s6 + $0x80] sm:$0xff] }
  0x1a   : > { %278 = vst.msk [vmem:[#allocation2 + $0x88] sm:$0xff] %vm225_vm1, %v246_v19  ;;  %v249_v22 = vld [vmem:[%s9956_s6 + $0x88] sm:$0xff]  ;;  %279 = vst.msk [vmem:[#allocation2 + $0x90] sm:$0xff] %vm225_vm1, %v247_v20  ;;  %v250_v23 = vld [vmem:[%s9956_s6 + $0x90] sm:$0xff] }
  0x1b   : > { %280 = vst.msk [vmem:[#allocation2 + $0x98] sm:$0xff] %vm225_vm1, %v248_v21  ;;  %281 = vst.msk [vmem:[#allocation2 + $0xa0] sm:$0xff] %vm225_vm1, %v249_v22  ;;  %v251_v24 = vld [vmem:[%s9956_s6 + $0x98] sm:$0xff]  ;;  %v252_v25 = vld [vmem:[%s9956_s6 + $0xa0] sm:$0xff] }
  0x1c   : > { %282 = vst.msk [vmem:[#allocation2 + $0xa8] sm:$0xff] %vm225_vm1, %v250_v23  ;;  %283 = vst.msk [vmem:[#allocation2 + $0xb0] sm:$0xff] %vm225_vm1, %v251_v24  ;;  %v253_v26 = vld [vmem:[%s9956_s6 + $0xa8] sm:$0xff]  ;;  %v254_v27 = vld [vmem:[%s9956_s6 + $0xb0] sm:$0xff] }
  0x1d   : > { %284 = vst.msk [vmem:[#allocation2 + $0xb8] sm:$0xff] %vm225_vm1, %v252_v25  ;;  %v255_v28 = vld [vmem:[%s9956_s6 + $0xb8] sm:$0xff]  ;;  %285 = vst.msk [vmem:[#allocation2 + $0xc0] sm:$0xff] %vm225_vm1, %v253_v26  ;;  %v10021_v33 = vld [vmem:[#allocation2 + $0x20] sm:$0xff] }
  0x1e   : > { %v10008_v30 = vld [vmem:[#allocation2 + $0x17] sm:$0xff]  ;;  %v10012_v32 = vld [vmem:[#allocation2 + $0x1f] sm:$0xff]  ;;  %286 = vst.msk [vmem:[#allocation2 + $0xc8] sm:$0xff] %vm225_vm1, %v254_v27  ;;  %287 = vst.msk [vmem:[#allocation2 + $0xd0] sm:$0xff] %vm225_vm1, %v255_v28 }
  0x1f   : > { %v10010_v31 = vld [vmem:[#allocation2 + $0x18] sm:$0xff]  ;;  %8448 = vmatprep.mubr.msk.f32.mxu0 %vm225_vm1, %v10008_v30  ;;  %v10023_v34 = vld [vmem:[#allocation2 + $0x27] sm:$0xff]  ;;  %v10035_v36 = vld [vmem:[#allocation2 + $0x2f] sm:$0xff] }
  0x20   : > { %8598 = vmatprep.mubr.msk.f32.mxu1 %vm225_vm1, %v10010_v31  ;;  %v10025_v35 = vld [vmem:[#allocation2 + $0x28] sm:$0xff]  ;;  %8449 = vmatmul.mubr.msk.f32.vlgmr.msra.gmra.mrb[0].mxu0 %vm225_vm1, %v10012_v32  ;;  %v10037_v37 = vld [vmem:[#allocation2 + $0x30] sm:$0xff]  ;;  %v10043_v39 = vld [vmem:[#allocation2 + $0x38] sm:$0xff] }
  0x21   : > { %8599 = vmatmul.mubr.msk.f32.vlgmr.msra.gmra.mrb[0].mxu1 %vm225_vm1, %v10021_v33  ;;  %8497 = vmatpush3.msk.msra.mxu0 %vm910_vm0, %v9923_v2  ;;  %v10041_v38 = vld [vmem:[#allocation2 + $0x37] sm:$0xff]  ;;  %v10057_v40 = vld [vmem:[#allocation2 + $0x3f] sm:$0xff]  ;;  %v10061_v42 = vld [vmem:[#allocation2 + $0x47] sm:$0xff] }
  0x22   : > { %8451 = vmatprep.mubr.msk.f32.mxu0 %vm225_vm1, %v10023_v34  ;;  %8601 = vmatprep.mubr.msk.f32.mxu1 %vm225_vm1, %v10025_v35  ;;  %v10059_v41 = vld [vmem:[#allocation2 + $0x40] sm:$0xff]  ;;  %v10063_v43 = vld [vmem:[#allocation2 + $0x48] sm:$0xff]  ;;  %v10075_v45 = vld [vmem:[#allocation2 + $0x50] sm:$0xff] }
  0x23   : > { %8546 = vmatprep.subr.msk.mxu0 %vm910_vm0, %v10006_v29  ;;  %8647 = vmatpush3.msk.msra.mxu1 %vm910_vm0, %v9928_v3  ;;  %v10073_v44 = vld [vmem:[#allocation2 + $0x4f] sm:$0xff]  ;;  %v10077_v46 = vld [vmem:[#allocation2 + $0x57] sm:$0xff]  ;;  %v10085_v48 = vld [vmem:[#allocation2 + $0x5f] sm:$0xff] }
  0x24   : > { %8452 = vmatmul.mubr.msk.f32.gmra.mrb[2].mxu0 %vm225_vm1, %v10035_v36  ;;  %v10079_v47 = vld [vmem:[#allocation2 + $0x58] sm:$0xff]  ;;  %v10091_v49 = vld [vmem:[#allocation2 + $0x60] sm:$0xff]  ;;  %v10095_v51 = vld [vmem:[#allocation2 + $0x68] sm:$0xff]  ;;  %8696 = vmatprep.subr.msk.mxu1 %vm910_vm0, %v10132_v0 }
  0x25   : > { %8602 = vmatmul.mubr.msk.f32.gmra.mrb[2].mxu1 %vm225_vm1, %v10037_v37  ;;  %8454 = vmatprep.mubr.msk.f32.mxu0 %vm225_vm1, %v10041_v38  ;;  %v10093_v50 = vld [vmem:[#allocation2 + $0x67] sm:$0xff]  ;;  %v258_v54 = vld [vmem:[%s9956_s6 + $0xd0] sm:$0xff]  ;;  %v259_v55 = vld [vmem:[%s9956_s6 + $0xd8] sm:$0xff] }
  0x26   : > { %8604 = vmatprep.mubr.msk.f32.mxu1 %vm225_vm1, %v10043_v39  ;;  %v256_v52 = vld [vmem:[%s9956_s6 + $0xc0] sm:$0xff]  ;;  %v257_v53 = vld [vmem:[%s9956_s6 + $0xc8] sm:$0xff]  ;;  %290 = vst.msk [vmem:[#allocation2 + $0xe8] sm:$0xff] %vm225_vm1, %v258_v54  ;;  %291 = vst.msk [vmem:[#allocation2 + $0xf0] sm:$0xff] %vm225_vm1, %v259_v55 }
  0x27   : > { %288 = vst.msk [vmem:[#allocation2 + $0xd8] sm:$0xff] %vm225_vm1, %v256_v52  ;;  %289 = vst.msk [vmem:[#allocation2 + $0xe0] sm:$0xff] %vm225_vm1, %v257_v53  ;;  %v260_v56 = vld [vmem:[%s9956_s6 + $0xe0] sm:$0xff]  ;;  %v261_v57 = vld [vmem:[%s9956_s6 + $0xe8] sm:$0xff] }
  0x28   : > { %8455 = vmatmul.mubr.msk.f32.gmra.mrb[4].mxu0 %vm225_vm1, %v10057_v40  ;;  %292 = vst.msk [vmem:[#allocation2 + $0xf8] sm:$0xff] %vm225_vm1, %v260_v56  ;;  %293 = vst.msk [vmem:[#allocation2 + $0x100] sm:$0xff] %vm225_vm1, %v261_v57  ;;  %v262_v58 = vld [vmem:[%s9956_s6 + $0xf0] sm:$0xff]  ;;  %v263_v59 = vld [vmem:[%s9956_s6 + $0xf8] sm:$0xff] }
  0x29   : > { %8605 = vmatmul.mubr.msk.f32.gmra.mrb[4].mxu1 %vm225_vm1, %v10059_v41  ;;  %8457 = vmatprep.mubr.msk.f32.mxu0 %vm225_vm1, %v10061_v42  ;;  %v10119_v60 = vld [vmem:[#allocation2 + $0x6f] sm:$0xff]  ;;  %294 = vst.msk [vmem:[#allocation2 + $0x108] sm:$0xff] %vm225_vm1, %v262_v58  ;;  %295 = vst.msk [vmem:[#allocation2 + $0x110] sm:$0xff] %vm225_vm1, %v263_v59  ;;  %v10125_v62 = vld [vmem:[#allocation2 + $0x77] sm:$0xff] }
  0x2a   : > { %8607 = vmatprep.mubr.msk.f32.mxu1 %vm225_vm1, %v10063_v43  ;;  %v10121_v61 = vld [vmem:[#allocation2 + $0x70] sm:$0xff]  ;;  %v10127_v63 = vld [vmem:[#allocation2 + $0x78] sm:$0xff]  ;;  %v10146_v2 = vld [vmem:[#allocation2 + $0x80] sm:$0xff] }
  0x2b   : > { %v10144_v1 = vld [vmem:[#allocation2 + $0x7f] sm:$0xff]  ;;  %v10148_v3 = vld [vmem:[#allocation2 + $0x87] sm:$0xff]  ;;  %v10160_v6 = vld [vmem:[#allocation2 + $0x8f] sm:$0xff] }
  0x2c   : > { %8458 = vmatmul.mubr.msk.f32.gmra.mrb[6].mxu0 %vm225_vm1, %v10073_v44  ;;  %v10150_v5 = vld [vmem:[#allocation2 + $0x88] sm:$0xff]  ;;  %v10162_v7 = vld [vmem:[#allocation2 + $0x90] sm:$0xff]  ;;  %v10166_v9 = vld [vmem:[#allocation2 + $0x98] sm:$0xff] }
  0x2d   : > { %8608 = vmatmul.mubr.msk.f32.gmra.mrb[6].mxu1 %vm225_vm1, %v10075_v45  ;;  %8460 = vmatprep.mubr.msk.f32.mxu0 %vm225_vm1, %v10077_v46  ;;  %v10164_v8 = vld [vmem:[#allocation2 + $0x97] sm:$0xff]  ;;  %v10176_v10 = vld [vmem:[#allocation2 + $0x9f] sm:$0xff]  ;;  %v10180_v12 = vld [vmem:[#allocation2 + $0xa7] sm:$0xff] }
  0x2e   : > { %8610 = vmatprep.mubr.msk.f32.mxu1 %vm225_vm1, %v10079_v47  ;;  %v10178_v11 = vld [vmem:[#allocation2 + $0xa0] sm:$0xff]  ;;  %v10182_v13 = vld [vmem:[#allocation2 + $0xa8] sm:$0xff]  ;;  %v10194_v15 = vld [vmem:[#allocation2 + $0xb0] sm:$0xff] }
  0x2f   : > { %v10192_v14 = vld [vmem:[#allocation2 + $0xaf] sm:$0xff]  ;;  %v10196_v16 = vld [vmem:[#allocation2 + $0xb7] sm:$0xff]  ;;  %v10208_v18 = vld [vmem:[#allocation2 + $0xbf] sm:$0xff] }
  0x30   : > { %8461 = vmatmul.mubr.msk.f32.gmra.mrb[8].mxu0 %vm225_vm1, %v10085_v48  ;;  %v10198_v17 = vld [vmem:[#allocation2 + $0xb8] sm:$0xff]  ;;  %v10210_v19 = vld [vmem:[#allocation2 + $0xc0] sm:$0xff]  ;;  %v10214_v21 = vld [vmem:[#allocation2 + $0xc8] sm:$0xff] }
  0x31   : > { %8611 = vmatmul.mubr.msk.f32.gmra.mrb[8].mxu1 %vm225_vm1, %v10091_v49  ;;  %8463 = vmatprep.mubr.msk.f32.mxu0 %vm225_vm1, %v10093_v50  ;;  %v10212_v20 = vld [vmem:[#allocation2 + $0xc7] sm:$0xff]  ;;  %v10224_v22 = vld [vmem:[#allocation2 + $0xcf] sm:$0xff]  ;;  %v10228_v24 = vld [vmem:[#allocation2 + $0xd7] sm:$0xff] }
  0x32   : > { %8613 = vmatprep.mubr.msk.f32.mxu1 %vm225_vm1, %v10095_v51  ;;  %v10226_v23 = vld [vmem:[#allocation2 + $0xd0] sm:$0xff]  ;;  %v10230_v25 = vld [vmem:[#allocation2 + $0xd8] sm:$0xff]  ;;  %v10242_v27 = vld [vmem:[#allocation2 + $0xe0] sm:$0xff] }
  0x33   : > { %v10240_v26 = vld [vmem:[#allocation2 + $0xdf] sm:$0xff]  ;;  %v10244_v28 = vld [vmem:[#allocation2 + $0xe7] sm:$0xff]  ;;  %v10256_v53 = vld [vmem:[#allocation2 + $0xef] sm:$0xff] }
  0x34   : > { %8464 = vmatmul.mubr.msk.f32.gmra.mrb[10].mxu0 %vm225_vm1, %v10119_v60  ;;  %v10246_v52 = vld [vmem:[#allocation2 + $0xe8] sm:$0xff]  ;;  %12489 = vst [vmem:[#allocation4_spill] sm:$0xff] %v10256_v53  ;;  %v10258_v54 = vld [vmem:[#allocation2 + $0xf0] sm:$0xff]  ;;  %v10262_v56 = vld [vmem:[#allocation2 + $0xf8] sm:$0xff] }
  0x35   : > { %8614 = vmatmul.mubr.msk.f32.gmra.mrb[10].mxu1 %vm225_vm1, %v10121_v61  ;;  %8466 = vmatprep.mubr.msk.f32.mxu0 %vm225_vm1, %v10125_v62  ;;  %12490 = vst [vmem:[#allocation5_spill] sm:$0xff] %v10258_v54  ;;  %v10260_v55 = vld [vmem:[#allocation2 + $0xf7] sm:$0xff]  ;;  %12492 = vst [vmem:[#allocation7_spill] sm:$0xff] %v10262_v56  ;;  %v10272_v57 = vld [vmem:[#allocation2 + $0xff] sm:$0xff] }
  0x36   : > { %8616 = vmatprep.mubr.msk.f32.mxu1 %vm225_vm1, %v10127_v63  ;;  %12491 = vst [vmem:[#allocation6_spill] sm:$0xff] %v10260_v55  ;;  %v10274_v58 = vld [vmem:[#allocation2 + $0x100] sm:$0xff]  ;;  %v10278_v4 = vld [vmem:[#allocation2 + $0x108] sm:$0xff] }
  0x37   : > { %12493 = vst [vmem:[#allocation8_spill] sm:$0xff] %v10274_v58  ;;  %v10276_v59 = vld [vmem:[#allocation2 + $0x107] sm:$0xff]  ;;  %12495 = vst [vmem:[#allocation10_spill] sm:$0xff] %v10278_v4 }
  0x38   : > { %8467 = vmatmul.mubr.msk.f32.gmra.mrb[12].mxu0 %vm225_vm1, %v10144_v1  ;;  %12494 = vst [vmem:[#allocation9_spill] sm:$0xff] %v10276_v59 }
  0x39   : > { %8617 = vmatmul.mubr.msk.f32.gmra.mrb[12].mxu1 %vm225_vm1, %v10146_v2  ;;  %8469 = vmatprep.mubr.msk.f32.mxu0 %vm225_vm1, %v10148_v3 }
  0x3a   : > { %8619 = vmatprep.mubr.msk.f32.mxu1 %vm225_vm1, %v10150_v5 }
  0x3c   : > { %8470 = vmatmul.mubr.msk.f32.gmra.mrb[14].mxu0 %vm225_vm1, %v10160_v6 }
  0x3d   : > { %8620 = vmatmul.mubr.msk.f32.gmra.mrb[14].mxu1 %vm225_vm1, %v10162_v7  ;;  %8472 = vmatprep.mubr.msk.f32.mxu0 %vm225_vm1, %v10164_v8 }
  0x3e   : > { %8622 = vmatprep.mubr.msk.f32.mxu1 %vm225_vm1, %v10166_v9 }
  0x40   : > { %8473 = vmatmul.mubr.msk.f32.gmra.mrb[16].mxu0 %vm225_vm1, %v10176_v10 }
  0x41   : > { %8623 = vmatmul.mubr.msk.f32.gmra.mrb[16].mxu1 %vm225_vm1, %v10178_v11  ;;  %8475 = vmatprep.mubr.msk.f32.mxu0 %vm225_vm1, %v10180_v12 }
  0x42   : > { %8625 = vmatprep.mubr.msk.f32.mxu1 %vm225_vm1, %v10182_v13 }
  0x44   : > { %8476 = vmatmul.mubr.msk.f32.gmra.mrb[18].mxu0 %vm225_vm1, %v10192_v14 }
  0x45   : > { %8626 = vmatmul.mubr.msk.f32.gmra.mrb[18].mxu1 %vm225_vm1, %v10194_v15  ;;  %8478 = vmatprep.mubr.msk.f32.mxu0 %vm225_vm1, %v10196_v16 }
  0x46   : > { %8628 = vmatprep.mubr.msk.f32.mxu1 %vm225_vm1, %v10198_v17 }
  0x48   : > { %8479 = vmatmul.mubr.msk.f32.gmra.mrb[20].mxu0 %vm225_vm1, %v10208_v18 }
  0x49   : > { %8629 = vmatmul.mubr.msk.f32.gmra.mrb[20].mxu1 %vm225_vm1, %v10210_v19  ;;  %8481 = vmatprep.mubr.msk.f32.mxu0 %vm225_vm1, %v10212_v20 }
  0x4a   : > { %8631 = vmatprep.mubr.msk.f32.mxu1 %vm225_vm1, %v10214_v21 }
  0x4c   : > { %8482 = vmatmul.mubr.msk.f32.gmra.mrb[22].mxu0 %vm225_vm1, %v10224_v22 }
  0x4d   : > { %8632 = vmatmul.mubr.msk.f32.gmra.mrb[22].mxu1 %vm225_vm1, %v10226_v23  ;;  %8484 = vmatprep.mubr.msk.f32.mxu0 %vm225_vm1, %v10228_v24 }
  0x4e   : > { %8634 = vmatprep.mubr.msk.f32.mxu1 %vm225_vm1, %v10230_v25 }
  0x50   : > { %8485 = vmatmul.mubr.msk.f32.gmra.mrb[24].mxu0 %vm225_vm1, %v10240_v26 }
  0x51   : > { %8635 = vmatmul.mubr.msk.f32.gmra.mrb[24].mxu1 %vm225_vm1, %v10242_v27  ;;  %8487 = vmatprep.mubr.msk.f32.mxu0 %vm225_vm1, %v10244_v28 }
  0x52   : > { %8637 = vmatprep.mubr.msk.f32.mxu1 %vm225_vm1, %v10246_v52 }
  0x54   : > { %8488 = vmatmul.mubr.msk.f32.gmra.mrb[26].mxu0 %vm225_vm1, %v10256_v53  ;;  %v1795_v53 = vld [vmem:[#allocation2 + $0x8] sm:$0xff] }
  0x55   : > { %8638 = vmatmul.mubr.msk.f32.gmra.mrb[26].mxu1 %vm225_vm1, %v10258_v54  ;;  %8490 = vmatprep.mubr.msk.f32.mxu0 %vm225_vm1, %v10260_v55  ;;  %v10290_v55 = vld [vmem:[#allocation2 + $0x110] sm:$0xff]  ;;  %v777_v54 = vld [vmem:[#allocation2 + $0x7] sm:$0xff] }
  0x56   : > { %8640 = vmatprep.mubr.msk.f32.mxu1 %vm225_vm1, %v10262_v56  ;;  %v10288_v56 = vld [vmem:[#allocation2 + $0x10f] sm:$0xff] }
  0x58   : > { %8491 = vmatmul.mubr.msk.f32.gmra.mrb[28].mxu0 %vm225_vm1, %v10272_v57 }
  0x59   : > { %8641 = vmatmul.mubr.msk.f32.gmra.mrb[28].mxu1 %vm225_vm1, %v10274_v58  ;;  %8493 = vmatprep.mubr.msk.f32.mxu0 %vm225_vm1, %v10276_v59  ;;  %v778_v59 = vld [vmem:[#allocation2 + $0xf] sm:$0xff] }
  0x5a   : > { %8643 = vmatprep.mubr.msk.f32.mxu1 %vm225_vm1, %v10278_v4  ;;  %v1796_v58 = vld [vmem:[#allocation2 + $0x10] sm:$0xff] }
  0x5b   : > { %v10303_v4 = vld [vmem:[%s12394_s1 + $0x14] sm:$0xf] }
  0x5c   : > { %8494 = vmatmul.mubr.msk.f32.gmra.mrb[30].mxu0 %vm225_vm1, %v10288_v56 }
  0x5d   : > { %8644 = vmatmul.mubr.msk.f32.gmra.mrb[30].mxu1 %vm225_vm1, %v10290_v55  ;;  %8498 = vmatprep.mubr.msk.f32.mxu0 %vm225_vm1, %v777_v54 }
  0x5e   : > { %8648 = vmatprep.mubr.msk.f32.mxu1 %vm225_vm1, %v1795_v53  ;;  %v12503_v53 = vmov 0 }
  0x60   : > { %8499 = vmatmul.mubr.msk.f32.vlgmr.msra.gmra.mrb[0].mxu0 %vm225_vm1, %v778_v59 }
  0x61   : > { %8649 = vmatmul.mubr.msk.f32.vlgmr.msra.gmra.mrb[0].mxu1 %vm225_vm1, %v1796_v58  ;;  %8547 = vmatpush3.msk.msra.mxu0 %vm910_vm0, %v10006_v29  ;;  %v12496_v29 = vld [vmem:[#allocation4_spill] sm:$0xff] }
  0x62   : > { %8501 = vmatprep.mubr.msk.f32.mxu0 %vm225_vm1, %v10008_v30  ;;  %8651 = vmatprep.mubr.msk.f32.mxu1 %vm225_vm1, %v10010_v31  ;;  %v12497_v30 = vld [vmem:[#allocation5_spill] sm:$0xff]  ;;  %v12498_v31 = vld [vmem:[#allocation6_spill] sm:$0xff] }
  0x63   : > { %8697 = vmatpush3.msk.msra.mxu1 %vm910_vm0, %v10132_v0  ;;  %8746 = vmatprep.subr.msk.mxu0 %vm910_vm0, %v10303_v4  ;;  %v10438_v0 = vld [vmem:[%s12394_s1 + $0x8] sm:$0xf] }
  0x64   : > { %8502 = vmatmul.mubr.msk.f32.gmra.mrb[2].mxu0 %vm225_vm1, %v10012_v32  ;;  %v12499_v32 = vld [vmem:[#allocation7_spill] sm:$0xff] }
  0x65   : > { %8652 = vmatmul.mubr.msk.f32.gmra.mrb[2].mxu1 %vm225_vm1, %v10021_v33  ;;  %8504 = vmatprep.mubr.msk.f32.mxu0 %vm225_vm1, %v10023_v34  ;;  %v12500_v33 = vld [vmem:[#allocation8_spill] sm:$0xff] }
  0x66   : > { %8654 = vmatprep.mubr.msk.f32.mxu1 %vm225_vm1, %v10025_v35 }
  0x68   : > { %8505 = vmatmul.mubr.msk.f32.gmra.mrb[4].mxu0 %vm225_vm1, %v10035_v36 }
  0x69   : > { %8655 = vmatmul.mubr.msk.f32.gmra.mrb[4].mxu1 %vm225_vm1, %v10037_v37  ;;  %8507 = vmatprep.mubr.msk.f32.mxu0 %vm225_vm1, %v10041_v38 }
  0x6a   : > { %8657 = vmatprep.mubr.msk.f32.mxu1 %vm225_vm1, %v10043_v39 }
  0x6c   : > { %8508 = vmatmul.mubr.msk.f32.gmra.mrb[6].mxu0 %vm225_vm1, %v10057_v40 }
  0x6d   : > { %8658 = vmatmul.mubr.msk.f32.gmra.mrb[6].mxu1 %vm225_vm1, %v10059_v41  ;;  %8510 = vmatprep.mubr.msk.f32.mxu0 %vm225_vm1, %v10061_v42 }
  0x6e   : > { %8660 = vmatprep.mubr.msk.f32.mxu1 %vm225_vm1, %v10063_v43 }
  0x70   : > { %8511 = vmatmul.mubr.msk.f32.gmra.mrb[8].mxu0 %vm225_vm1, %v10073_v44 }
  0x71   : > { %8661 = vmatmul.mubr.msk.f32.gmra.mrb[8].mxu1 %vm225_vm1, %v10075_v45  ;;  %8513 = vmatprep.mubr.msk.f32.mxu0 %vm225_vm1, %v10077_v46 }
  0x72   : > { %8663 = vmatprep.mubr.msk.f32.mxu1 %vm225_vm1, %v10079_v47 }
  0x74   : > { %8514 = vmatmul.mubr.msk.f32.gmra.mrb[10].mxu0 %vm225_vm1, %v10085_v48 }
  0x75   : > { %8664 = vmatmul.mubr.msk.f32.gmra.mrb[10].mxu1 %vm225_vm1, %v10091_v49  ;;  %8516 = vmatprep.mubr.msk.f32.mxu0 %vm225_vm1, %v10093_v50 }
  0x76   : > { %8666 = vmatprep.mubr.msk.f32.mxu1 %vm225_vm1, %v10095_v51 }
  0x78   : > { %8517 = vmatmul.mubr.msk.f32.gmra.mrb[12].mxu0 %vm225_vm1, %v10119_v60 }
  0x79   : > { %8667 = vmatmul.mubr.msk.f32.gmra.mrb[12].mxu1 %vm225_vm1, %v10121_v61  ;;  %8519 = vmatprep.mubr.msk.f32.mxu0 %vm225_vm1, %v10125_v62 }
  0x7a   : > { %8669 = vmatprep.mubr.msk.f32.mxu1 %vm225_vm1, %v10127_v63 }
  0x7c   : > { %8520 = vmatmul.mubr.msk.f32.gmra.mrb[14].mxu0 %vm225_vm1, %v10144_v1 }
  0x7d   : > { %8670 = vmatmul.mubr.msk.f32.gmra.mrb[14].mxu1 %vm225_vm1, %v10146_v2  ;;  %8522 = vmatprep.mubr.msk.f32.mxu0 %vm225_vm1, %v10148_v3 }
  0x7e   : > { %8672 = vmatprep.mubr.msk.f32.mxu1 %vm225_vm1, %v10150_v5 }
  0x80   : > { %8523 = vmatmul.mubr.msk.f32.gmra.mrb[16].mxu0 %vm225_vm1, %v10160_v6 }
  0x81   : > { %8673 = vmatmul.mubr.msk.f32.gmra.mrb[16].mxu1 %vm225_vm1, %v10162_v7  ;;  %8525 = vmatprep.mubr.msk.f32.mxu0 %vm225_vm1, %v10164_v8 }
  0x82   : > { %8675 = vmatprep.mubr.msk.f32.mxu1 %vm225_vm1, %v10166_v9 }
  0x84   : > { %8526 = vmatmul.mubr.msk.f32.gmra.mrb[18].mxu0 %vm225_vm1, %v10176_v10 }
  0x85   : > { %8676 = vmatmul.mubr.msk.f32.gmra.mrb[18].mxu1 %vm225_vm1, %v10178_v11  ;;  %8528 = vmatprep.mubr.msk.f32.mxu0 %vm225_vm1, %v10180_v12 }
  0x86   : > { %8678 = vmatprep.mubr.msk.f32.mxu1 %vm225_vm1, %v10182_v13 }
  0x88   : > { %8529 = vmatmul.mubr.msk.f32.gmra.mrb[20].mxu0 %vm225_vm1, %v10192_v14 }
  0x89   : > { %8679 = vmatmul.mubr.msk.f32.gmra.mrb[20].mxu1 %vm225_vm1, %v10194_v15  ;;  %8531 = vmatprep.mubr.msk.f32.mxu0 %vm225_vm1, %v10196_v16 }
  0x8a   : > { %8681 = vmatprep.mubr.msk.f32.mxu1 %vm225_vm1, %v10198_v17 }
  0x8c   : > { %8532 = vmatmul.mubr.msk.f32.gmra.mrb[22].mxu0 %vm225_vm1, %v10208_v18 }
  0x8d   : > { %8682 = vmatmul.mubr.msk.f32.gmra.mrb[22].mxu1 %vm225_vm1, %v10210_v19  ;;  %8534 = vmatprep.mubr.msk.f32.mxu0 %vm225_vm1, %v10212_v20 }
  0x8e   : > { %8684 = vmatprep.mubr.msk.f32.mxu1 %vm225_vm1, %v10214_v21 }
  0x90   : > { %8535 = vmatmul.mubr.msk.f32.gmra.mrb[24].mxu0 %vm225_vm1, %v10224_v22 }
  0x91   : > { %8685 = vmatmul.mubr.msk.f32.gmra.mrb[24].mxu1 %vm225_vm1, %v10226_v23  ;;  %8537 = vmatprep.mubr.msk.f32.mxu0 %vm225_vm1, %v10228_v24 }
  0x92   : > { %8687 = vmatprep.mubr.msk.f32.mxu1 %vm225_vm1, %v10230_v25 }
  0x94   : > { %8538 = vmatmul.mubr.msk.f32.gmra.mrb[26].mxu0 %vm225_vm1, %v10240_v26 }
  0x95   : > { %8688 = vmatmul.mubr.msk.f32.gmra.mrb[26].mxu1 %vm225_vm1, %v10242_v27  ;;  %8540 = vmatprep.mubr.msk.f32.mxu0 %vm225_vm1, %v10244_v28 }
  0x96   : > { %8690 = vmatprep.mubr.msk.f32.mxu1 %vm225_vm1, %v10246_v52 }
  0x98   : > { %8541 = vmatmul.mubr.msk.f32.gmra.mrb[28].mxu0 %vm225_vm1, %v12496_v29 }
  0x99   : > { %8691 = vmatmul.mubr.msk.f32.gmra.mrb[28].mxu1 %vm225_vm1, %v12497_v30  ;;  %8543 = vmatprep.mubr.msk.f32.mxu0 %vm225_vm1, %v12498_v31 }
  0x9a   : > { %8693 = vmatprep.mubr.msk.f32.mxu1 %vm225_vm1, %v12499_v32 }
  0x9c   : > { %8544 = vmatmul.mubr.msk.f32.gmra.mrb[30].mxu0 %vm225_vm1, %v10272_v57 }
  0x9d   : > { %8694 = vmatmul.mubr.msk.f32.gmra.mrb[30].mxu1 %vm225_vm1, %v12500_v33  ;;  %8548 = vmatprep.mubr.msk.f32.mxu0 %vm225_vm1, %v10023_v34  ;;  %v12502_v34 = vld [vmem:[#allocation10_spill] sm:$0xff] }
  0x9e   : > { %8698 = vmatprep.mubr.msk.f32.mxu1 %vm225_vm1, %v10025_v35  ;;  %v1403_v35 = vld [vmem:[#allocation2 + $0x117] sm:$0xff] }
  0xa0   : > { %8549 = vmatmul.mubr.msk.f32.vlgmr.msra.gmra.mrb[0].mxu0 %vm225_vm1, %v10035_v36  ;;  %v2421_v36 = vld [vmem:[#allocation2 + $0x118] sm:$0xff] }
  0xa1   : > { %8699 = vmatmul.mubr.msk.f32.vlgmr.msra.gmra.mrb[0].mxu1 %vm225_vm1, %v10037_v37  ;;  %8747 = vmatpush3.msk.msra.mxu0 %vm910_vm0, %v10303_v4  ;;  %v12501_v4 = vld [vmem:[#allocation9_spill] sm:$0xff]  ;;  %v1404_v37 = vld [vmem:[#allocation2 + $0x11f] sm:$0xff] }
  0xa2   : > { %8551 = vmatprep.mubr.msk.f32.mxu0 %vm225_vm1, %v10041_v38  ;;  %8701 = vmatprep.mubr.msk.f32.mxu1 %vm225_vm1, %v10043_v39  ;;  %v2422_v38 = vld [vmem:[#allocation2 + $0x120] sm:$0xff] }
  0xa3   : > { %8796 = vmatprep.subr.msk.mxu0 %vm910_vm0, %v10438_v0  ;;  %v10562_v39 = vld [vmem:[#allocation2 + $0x19] sm:$0xff] }
  0xa4   : > { %8552 = vmatmul.mubr.msk.f32.gmra.mrb[2].mxu0 %vm225_vm1, %v10057_v40  ;;  %v10568_v40 = vld [vmem:[#allocation2 + $0x21] sm:$0xff] }
  0xa5   : > { %8702 = vmatmul.mubr.msk.f32.gmra.mrb[2].mxu1 %vm225_vm1, %v10059_v41  ;;  %8554 = vmatprep.mubr.msk.f32.mxu0 %vm225_vm1, %v10061_v42  ;;  %v10570_v41 = vld [vmem:[#allocation2 + $0x29] sm:$0xff]  ;;  %v10575_v42 = vld [vmem:[%s12394_s1 + $0x20] sm:$0xf] }
  0xa6   : > { %8704 = vmatprep.mubr.msk.f32.mxu1 %vm225_vm1, %v10063_v43  ;;  %v10583_v43 = vld [vmem:[#allocation2 + $0x31] sm:$0xff] }
  0xa8   : > { %8555 = vmatmul.mubr.msk.f32.gmra.mrb[4].mxu0 %vm225_vm1, %v10073_v44  ;;  %v10585_v44 = vld [vmem:[#allocation2 + $0x39] sm:$0xff] }
  0xa9   : > { %8705 = vmatmul.mubr.msk.f32.gmra.mrb[4].mxu1 %vm225_vm1, %v10075_v45  ;;  %8557 = vmatprep.mubr.msk.f32.mxu0 %vm225_vm1, %v10077_v46  ;;  %v10593_v45 = vld [vmem:[#allocation2 + $0x41] sm:$0xff]  ;;  %v10595_v46 = vld [vmem:[#allocation2 + $0x49] sm:$0xff] }
  0xaa   : > { %8707 = vmatprep.mubr.msk.f32.mxu1 %vm225_vm1, %v10079_v47  ;;  %v10601_v47 = vld [vmem:[#allocation2 + $0x51] sm:$0xff] }
  0xac   : > { %8558 = vmatmul.mubr.msk.f32.gmra.mrb[6].mxu0 %vm225_vm1, %v10085_v48  ;;  %v10603_v48 = vld [vmem:[#allocation2 + $0x59] sm:$0xff] }
  0xad   : > { %8708 = vmatmul.mubr.msk.f32.gmra.mrb[6].mxu1 %vm225_vm1, %v10091_v49  ;;  %8560 = vmatprep.mubr.msk.f32.mxu0 %vm225_vm1, %v10093_v50  ;;  %v10609_v49 = vld [vmem:[#allocation2 + $0x61] sm:$0xff]  ;;  %v10611_v50 = vld [vmem:[#allocation2 + $0x69] sm:$0xff] }
  0xae   : > { %8710 = vmatprep.mubr.msk.f32.mxu1 %vm225_vm1, %v10095_v51  ;;  %v10617_v51 = vld [vmem:[#allocation2 + $0x71] sm:$0xff] }
  0xb0   : > { %8561 = vmatmul.mubr.msk.f32.gmra.mrb[8].mxu0 %vm225_vm1, %v10119_v60  ;;  %v10619_v60 = vld [vmem:[#allocation2 + $0x79] sm:$0xff] }
  0xb1   : > { %8711 = vmatmul.mubr.msk.f32.gmra.mrb[8].mxu1 %vm225_vm1, %v10121_v61  ;;  %8563 = vmatprep.mubr.msk.f32.mxu0 %vm225_vm1, %v10125_v62  ;;  %v10625_v61 = vld [vmem:[#allocation2 + $0x81] sm:$0xff]  ;;  %v10627_v62 = vld [vmem:[#allocation2 + $0x89] sm:$0xff] }
  0xb2   : > { %8713 = vmatprep.mubr.msk.f32.mxu1 %vm225_vm1, %v10127_v63  ;;  %v10633_v63 = vld [vmem:[#allocation2 + $0x91] sm:$0xff] }
  0xb4   : > { %8564 = vmatmul.mubr.msk.f32.gmra.mrb[10].mxu0 %vm225_vm1, %v10144_v1  ;;  %v10635_v1 = vld [vmem:[#allocation2 + $0x99] sm:$0xff] }
  0xb5   : > { %8714 = vmatmul.mubr.msk.f32.gmra.mrb[10].mxu1 %vm225_vm1, %v10146_v2  ;;  %8566 = vmatprep.mubr.msk.f32.mxu0 %vm225_vm1, %v10148_v3  ;;  %v10641_v2 = vld [vmem:[#allocation2 + $0xa1] sm:$0xff]  ;;  %v10643_v3 = vld [vmem:[#allocation2 + $0xa9] sm:$0xff] }
  0xb6   : > { %8716 = vmatprep.mubr.msk.f32.mxu1 %vm225_vm1, %v10150_v5  ;;  %v10649_v5 = vld [vmem:[#allocation2 + $0xb1] sm:$0xff] }
  0xb8   : > { %8567 = vmatmul.mubr.msk.f32.gmra.mrb[12].mxu0 %vm225_vm1, %v10160_v6  ;;  %v10651_v6 = vld [vmem:[#allocation2 + $0xb9] sm:$0xff] }
  0xb9   : > { %8717 = vmatmul.mubr.msk.f32.gmra.mrb[12].mxu1 %vm225_vm1, %v10162_v7  ;;  %8569 = vmatprep.mubr.msk.f32.mxu0 %vm225_vm1, %v10164_v8  ;;  %v10657_v7 = vld [vmem:[#allocation2 + $0xc1] sm:$0xff]  ;;  %v10659_v8 = vld [vmem:[#allocation2 + $0xc9] sm:$0xff] }
  0xba   : > { %8719 = vmatprep.mubr.msk.f32.mxu1 %vm225_vm1, %v10166_v9  ;;  %v10665_v9 = vld [vmem:[#allocation2 + $0xd1] sm:$0xff] }
  0xbc   : > { %8570 = vmatmul.mubr.msk.f32.gmra.mrb[14].mxu0 %vm225_vm1, %v10176_v10  ;;  %v10667_v10 = vld [vmem:[#allocation2 + $0xd9] sm:$0xff] }
  0xbd   : > { %8720 = vmatmul.mubr.msk.f32.gmra.mrb[14].mxu1 %vm225_vm1, %v10178_v11  ;;  %8572 = vmatprep.mubr.msk.f32.mxu0 %vm225_vm1, %v10180_v12  ;;  %v10673_v11 = vld [vmem:[#allocation2 + $0xe1] sm:$0xff]  ;;  %v10675_v12 = vld [vmem:[#allocation2 + $0xe9] sm:$0xff] }
  0xbe   : > { %8722 = vmatprep.mubr.msk.f32.mxu1 %vm225_vm1, %v10182_v13  ;;  %v10681_v13 = vld [vmem:[#allocation2 + $0xf1] sm:$0xff] }
  0xc0   : > { %8573 = vmatmul.mubr.msk.f32.gmra.mrb[16].mxu0 %vm225_vm1, %v10192_v14  ;;  %v10683_v14 = vld [vmem:[#allocation2 + $0xf9] sm:$0xff] }
  0xc1   : > { %8723 = vmatmul.mubr.msk.f32.gmra.mrb[16].mxu1 %vm225_vm1, %v10194_v15  ;;  %8575 = vmatprep.mubr.msk.f32.mxu0 %vm225_vm1, %v10196_v16  ;;  %v10689_v15 = vld [vmem:[#allocation2 + $0x101] sm:$0xff]  ;;  %v10691_v16 = vld [vmem:[#allocation2 + $0x109] sm:$0xff] }
  0xc2   : > { %8725 = vmatprep.mubr.msk.f32.mxu1 %vm225_vm1, %v10198_v17  ;;  %v10697_v17 = vld [vmem:[#allocation2 + $0x111] sm:$0xff] }
  0xc4   : > { %8576 = vmatmul.mubr.msk.f32.gmra.mrb[18].mxu0 %vm225_vm1, %v10208_v18  ;;  %v2813_v18 = vld [vmem:[#allocation2 + $0x9] sm:$0xff] }
  0xc5   : > { %8726 = vmatmul.mubr.msk.f32.gmra.mrb[18].mxu1 %vm225_vm1, %v10210_v19  ;;  %8578 = vmatprep.mubr.msk.f32.mxu0 %vm225_vm1, %v10212_v20  ;;  %v2814_v19 = vld [vmem:[#allocation2 + $0x11] sm:$0xff]  ;;  %v7500_v20 = vld [vmem:[%s12396_s3 + $0x60] sm:$0xff] }
  0xc6   : > { %8728 = vmatprep.mubr.msk.f32.mxu1 %vm225_vm1, %v10214_v21  ;;  %v7501_v21 = vld [vmem:[%s12396_s3 + $0x68] sm:$0xff] }
  0xc8   : > { %8579 = vmatmul.mubr.msk.f32.gmra.mrb[20].mxu0 %vm225_vm1, %v10224_v22  ;;  %v7502_v22 = vld [vmem:[%s12396_s3 + $0x70] sm:$0xff] }
  0xc9   : > { %8729 = vmatmul.mubr.msk.f32.gmra.mrb[20].mxu1 %vm225_vm1, %v10226_v23  ;;  %8581 = vmatprep.mubr.msk.f32.mxu0 %vm225_vm1, %v10228_v24  ;;  %v9400_v23 = vpack.c.bf16 %v7501_v21, %v7500_v20  ;;  %v7503_v24 = vld [vmem:[%s12396_s3 + $0x78] sm:$0xff] }
  0xca   : > { %8731 = vmatprep.mubr.msk.f32.mxu1 %vm225_vm1, %v10230_v25  ;;  %v9404_v25 = vpack.c.bf16 %v7503_v24, %v7502_v22 }
  0xcb   : > { %9401 = vmatprep.subr.bf16.mxu1 %v9400_v23 }
  0xcc   : > { %8582 = vmatmul.mubr.msk.f32.gmra.mrb[22].mxu0 %vm225_vm1, %v10240_v26  ;;  %9403 = vmatpush3.bf16.msra.mxu1 %v9400_v23  ;;  %v296_v26 = vlaneseq }
  0xcd   : > { %8732 = vmatmul.mubr.msk.f32.gmra.mrb[22].mxu1 %vm225_vm1, %v10242_v27  ;;  %8584 = vmatprep.mubr.msk.f32.mxu0 %vm225_vm1, %v10244_v28 }
  0xce   : > { %8734 = vmatprep.mubr.msk.f32.mxu1 %vm225_vm1, %v10246_v52  ;;  %9405 = vmatprep.subr.bf16.mxu1 %v9404_v25  ;;  %v10791_v27 = vshrl.u32 %v296_v26, 7 }
  0xd0   : > { %8585 = vmatmul.mubr.msk.f32.gmra.mrb[24].mxu0 %vm225_vm1, %v12496_v29  ;;  %9407 = vmatpush3.bf16.msra.mxu1 %v9404_v25  ;;  %v333_v28 = vand.u32 15, %v10791_v27  ;;  %v299_v52 = vadd.s32 16, %v10791_v27  ;;  %v309_v21 = vadd.s32 96, %v10791_v27 }
  0xd1   : > { %8735 = vmatmul.mubr.msk.f32.gmra.mrb[24].mxu1 %vm225_vm1, %v12497_v30  ;;  %8587 = vmatprep.mubr.msk.f32.mxu0 %vm225_vm1, %v12498_v31 }
  0xd2   : > { %8737 = vmatprep.mubr.msk.f32.mxu1 %vm225_vm1, %v12499_v32  ;;  %vm10803_vm2 = vcmp.ne.s32.totalorder %v333_v28, 0  ;;  %v347_v54 = vand.u32 15, %v299_v52  ;;  %v12506_v32 = vmov 0  ;;  %v12518_v28 = vmov 0 }
  0xd3   : > { %v12504_v53 = vsel %vm10803_vm2, 4294967295, %v12503_v53  ;;  %v417_v52 = vand.u32 15, %v309_v21 }
  0xd4   : > { %8588 = vmatmul.mubr.msk.f32.gmra.mrb[26].mxu0 %vm225_vm1, %v10272_v57  ;;  %12505 = vst [vmem:[#allocation4_spill] sm:$0xff] %v12504_v53  ;;  %vm10818_vm3 = vcmp.ne.s32.totalorder %v347_v54, 0  ;;  %v311_v54 = vadd.s32 112, %v10791_v27 }
  0xd5   : > { %8738 = vmatmul.mubr.msk.f32.gmra.mrb[26].mxu1 %vm225_vm1, %v12500_v33  ;;  %8590 = vmatprep.mubr.msk.f32.mxu0 %vm225_vm1, %v12501_v4  ;;  %v12507_v32 = vsel %vm10818_vm3, 4294967295, %v12506_v32  ;;  %vm10893_vm8 = vcmp.ne.s32.totalorder %v417_v52, 0 }
  0xd6   : > { %8740 = vmatprep.mubr.msk.f32.mxu1 %vm225_vm1, %v12502_v34  ;;  %12508 = vst [vmem:[#allocation5_spill] sm:$0xff] %v12507_v32 }
  0xd8   : > { %8591 = vmatmul.mubr.msk.f32.gmra.mrb[28].mxu0 %vm225_vm1, %v10288_v56 }
  0xd9   : > { %8741 = vmatmul.mubr.msk.f32.gmra.mrb[28].mxu1 %vm225_vm1, %v10290_v55  ;;  %8593 = vmatprep.mubr.msk.f32.mxu0 %vm225_vm1, %v1403_v35  ;;  %v301_v55 = vadd.s32 32, %v10791_v27 }
  0xda   : > { %8743 = vmatprep.mubr.msk.f32.mxu1 %vm225_vm1, %v2421_v36 }
  0xdb   : > { %v361_v33 = vand.u32 15, %v301_v55 }
  0xdc   : > { %8594 = vmatmul.mubr.msk.f32.gmra.mrb[30].mxu0 %vm225_vm1, %v1404_v37 }
  0xdd   : > { %8744 = vmatmul.mubr.msk.f32.gmra.mrb[30].mxu1 %vm225_vm1, %v2422_v38  ;;  %8748 = vmatprep.mubr.msk.f32.mxu0 %vm225_vm1, %v10562_v39  ;;  %vm10833_vm4 = vcmp.ne.s32.totalorder %v361_v33, 0  ;;  %v431_v33 = vand.u32 15, %v311_v54 }
  0xdf   : > { %vm10908_vm9 = vcmp.ne.s32.totalorder %v431_v33, 0  ;;  %v321_v33 = vadd.s32 192, %v10791_v27 }
  0xe0   : > { %8749 = vmatmul.mubr.msk.f32.vlgmr.msra.gmra.mrb[32].mxu0 %vm225_vm1, %v10568_v40 }
  0xe1   : > { %8797 = vmatpush3.msk.msra.mxu0 %vm910_vm0, %v10438_v0  ;;  %8751 = vmatprep.mubr.msk.f32.mxu0 %vm225_vm1, %v10570_v41  ;;  %v303_v0 = vadd.s32 48, %v10791_v27 }
  0xe2   : > { %8846 = vmatprep.subr.msk.mxu0 %vm910_vm0, %v10575_v42 }
  0xe4   : > { %8752 = vmatmul.mubr.msk.f32.gmra.mrb[34].mxu0 %vm225_vm1, %v10583_v43 }
  0xe5   : > { %8754 = vmatprep.mubr.msk.f32.mxu0 %vm225_vm1, %v10585_v44 }
  0xe8   : > { %8755 = vmatmul.mubr.msk.f32.gmra.mrb[36].mxu0 %vm225_vm1, %v10593_v45 }
  0xe9   : > { %8757 = vmatprep.mubr.msk.f32.mxu0 %vm225_vm1, %v10595_v46 }
  0xec   : > { %8758 = vmatmul.mubr.msk.f32.gmra.mrb[38].mxu0 %vm225_vm1, %v10601_v47 }
  0xed   : > { %8760 = vmatprep.mubr.msk.f32.mxu0 %vm225_vm1, %v10603_v48 }
  0xf0   : > { %8761 = vmatmul.mubr.msk.f32.gmra.mrb[40].mxu0 %vm225_vm1, %v10609_v49 }
  0xf1   : > { %8763 = vmatprep.mubr.msk.f32.mxu0 %vm225_vm1, %v10611_v50 }
  0xf4   : > { %8764 = vmatmul.mubr.msk.f32.gmra.mrb[42].mxu0 %vm225_vm1, %v10617_v51 }
  0xf5   : > { %8766 = vmatprep.mubr.msk.f32.mxu0 %vm225_vm1, %v10619_v60 }
  0xf8   : > { %8767 = vmatmul.mubr.msk.f32.gmra.mrb[44].mxu0 %vm225_vm1, %v10625_v61 }
  0xf9   : > { %8769 = vmatprep.mubr.msk.f32.mxu0 %vm225_vm1, %v10627_v62 }
  0xfc   : > { %8770 = vmatmul.mubr.msk.f32.gmra.mrb[46].mxu0 %vm225_vm1, %v10633_v63 }
  0xfd   : > { %8772 = vmatprep.mubr.msk.f32.mxu0 %vm225_vm1, %v10635_v1 }
 0x100   : > { %8773 = vmatmul.mubr.msk.f32.gmra.mrb[48].mxu0 %vm225_vm1, %v10641_v2 }
 0x101   : > { %8775 = vmatprep.mubr.msk.f32.mxu0 %vm225_vm1, %v10643_v3 }
 0x104   : > { %8776 = vmatmul.mubr.msk.f32.gmra.mrb[50].mxu0 %vm225_vm1, %v10649_v5 }
 0x105   : > { %8778 = vmatprep.mubr.msk.f32.mxu0 %vm225_vm1, %v10651_v6 }
 0x108   : > { %8779 = vmatmul.mubr.msk.f32.gmra.mrb[52].mxu0 %vm225_vm1, %v10657_v7 }
 0x109   : > { %8781 = vmatprep.mubr.msk.f32.mxu0 %vm225_vm1, %v10659_v8 }
 0x10c   : > { %8782 = vmatmul.mubr.msk.f32.gmra.mrb[54].mxu0 %vm225_vm1, %v10665_v9 }
 0x10d   : > { %8784 = vmatprep.mubr.msk.f32.mxu0 %vm225_vm1, %v10667_v10 }
 0x110   : > { %8785 = vmatmul.mubr.msk.f32.gmra.mrb[56].mxu0 %vm225_vm1, %v10673_v11 }
 0x111   : > { %8787 = vmatprep.mubr.msk.f32.mxu0 %vm225_vm1, %v10675_v12 }
 0x114   : > { %8788 = vmatmul.mubr.msk.f32.gmra.mrb[58].mxu0 %vm225_vm1, %v10681_v13 }
 0x115   : > { %8790 = vmatprep.mubr.msk.f32.mxu0 %vm225_vm1, %v10683_v14 }
 0x118   : > { %8791 = vmatmul.mubr.msk.f32.gmra.mrb[60].mxu0 %vm225_vm1, %v10689_v15 }
 0x119   : > { %8793 = vmatprep.mubr.msk.f32.mxu0 %vm225_vm1, %v10691_v16 }
 0x11c   : > { %8794 = vmatmul.mubr.msk.f32.gmra.mrb[62].mxu0 %vm225_vm1, %v10697_v17 }
 0x11d   : > { %8798 = vmatprep.mubr.msk.f32.mxu0 %vm225_vm1, %v2813_v18 }
 0x120   : > { %8799 = vmatmul.mubr.msk.f32.vlgmr.msra.gmra.mrb[32].mxu0 %vm225_vm1, %v2814_v19  ;;  %v12515_v19 = vmov 0 }
 0x121   : > { %8847 = vmatpush3.msk.msra.mxu0 %vm910_vm0, %v10575_v42  ;;  %8801 = vmatprep.mubr.msk.f32.mxu0 %vm225_vm1, %v10562_v39  ;;  %v305_v42 = vadd.s32 64, %v10791_v27 }
 0x124   : > { %8802 = vmatmul.mubr.msk.f32.gmra.mrb[34].mxu0 %vm225_vm1, %v10568_v40  ;;  %v12509_v40 = vmov 0 }
 0x125   : > { %8804 = vmatprep.mubr.msk.f32.mxu0 %vm225_vm1, %v10570_v41  ;;  %v12510_v40 = vsel %vm10833_vm4, 4294967295, %v12509_v40 }
 0x126   : > { %12511 = vst [vmem:[#allocation6_spill] sm:$0xff] %v12510_v40 }
 0x128   : > { %8805 = vmatmul.mubr.msk.f32.gmra.mrb[36].mxu0 %vm225_vm1, %v10583_v43 }
 0x129   : > { %8807 = vmatprep.mubr.msk.f32.mxu0 %vm225_vm1, %v10585_v44 }
 0x12c   : > { %8808 = vmatmul.mubr.msk.f32.gmra.mrb[38].mxu0 %vm225_vm1, %v10593_v45 }
 0x12d   : > { %8810 = vmatprep.mubr.msk.f32.mxu0 %vm225_vm1, %v10595_v46 }
 0x130   : > { %8811 = vmatmul.mubr.msk.f32.gmra.mrb[40].mxu0 %vm225_vm1, %v10601_v47 }
 0x131   : > { %8813 = vmatprep.mubr.msk.f32.mxu0 %vm225_vm1, %v10603_v48 }
 0x134   : > { %8814 = vmatmul.mubr.msk.f32.gmra.mrb[42].mxu0 %vm225_vm1, %v10609_v49 }
 0x135   : > { %8816 = vmatprep.mubr.msk.f32.mxu0 %vm225_vm1, %v10611_v50 }
 0x138   : > { %8817 = vmatmul.mubr.msk.f32.gmra.mrb[44].mxu0 %vm225_vm1, %v10617_v51 }
 0x139   : > { %8819 = vmatprep.mubr.msk.f32.mxu0 %vm225_vm1, %v10619_v60 }
 0x13c   : > { %8820 = vmatmul.mubr.msk.f32.gmra.mrb[46].mxu0 %vm225_vm1, %v10625_v61 }
 0x13d   : > { %8822 = vmatprep.mubr.msk.f32.mxu0 %vm225_vm1, %v10627_v62 }
 0x140   : > { %8823 = vmatmul.mubr.msk.f32.gmra.mrb[48].mxu0 %vm225_vm1, %v10633_v63 }
 0x141   : > { %8825 = vmatprep.mubr.msk.f32.mxu0 %vm225_vm1, %v10635_v1 }
 0x144   : > { %8826 = vmatmul.mubr.msk.f32.gmra.mrb[50].mxu0 %vm225_vm1, %v10641_v2 }
 0x145   : > { %8828 = vmatprep.mubr.msk.f32.mxu0 %vm225_vm1, %v10643_v3 }
 0x148   : > { %8829 = vmatmul.mubr.msk.f32.gmra.mrb[52].mxu0 %vm225_vm1, %v10649_v5 }
 0x149   : > { %8831 = vmatprep.mubr.msk.f32.mxu0 %vm225_vm1, %v10651_v6 }
 0x14c   : > { %8832 = vmatmul.mubr.msk.f32.gmra.mrb[54].mxu0 %vm225_vm1, %v10657_v7 }
 0x14d   : > { %8834 = vmatprep.mubr.msk.f32.mxu0 %vm225_vm1, %v10659_v8 }
 0x150   : > { %8835 = vmatmul.mubr.msk.f32.gmra.mrb[56].mxu0 %vm225_vm1, %v10665_v9 }
 0x151   : > { %8837 = vmatprep.mubr.msk.f32.mxu0 %vm225_vm1, %v10667_v10 }
 0x154   : > { %8838 = vmatmul.mubr.msk.f32.gmra.mrb[58].mxu0 %vm225_vm1, %v10673_v11 }
 0x155   : > { %8840 = vmatprep.mubr.msk.f32.mxu0 %vm225_vm1, %v10675_v12 }
 0x158   : > { %8841 = vmatmul.mubr.msk.f32.gmra.mrb[60].mxu0 %vm225_vm1, %v10681_v13 }
 0x159   : > { %8843 = vmatprep.mubr.msk.f32.mxu0 %vm225_vm1, %v10683_v14 }
 0x15c   : > { %8844 = vmatmul.mubr.msk.f32.gmra.mrb[62].mxu0 %vm225_vm1, %v10689_v15 }
 0x15d   : > { %8848 = vmatprep.mubr.msk.f32.mxu0 %vm225_vm1, %v10570_v41  ;;  %v375_v41 = vand.u32 15, %v303_v0  ;;  %v313_v0 = vadd.s32 128, %v10791_v27 }
 0x15f   : > { %vm10848_vm5 = vcmp.ne.s32.totalorder %v375_v41, 0  ;;  %v12524_v41 = vmov 0 }
 0x160   : > { %8849 = vmatmul.mubr.msk.f32.vlgmr.msra.gmra.mrb[32].mxu0 %vm225_vm1, %v10583_v43  ;;  %v12525_v41 = vsel %vm10908_vm9, 4294967295, %v12524_v41 }
 0x161   : > { %8851 = vmatprep.mubr.msk.f32.mxu0 %vm225_vm1, %v10585_v44  ;;  %12526 = vst [vmem:[#allocation11_spill] sm:$0xff] %v12525_v41 }
 0x164   : > { %8852 = vmatmul.mubr.msk.f32.gmra.mrb[34].mxu0 %vm225_vm1, %v10593_v45 }
 0x165   : > { %8854 = vmatprep.mubr.msk.f32.mxu0 %vm225_vm1, %v10595_v46 }
 0x168   : > { %8855 = vmatmul.mubr.msk.f32.gmra.mrb[36].mxu0 %vm225_vm1, %v10601_v47 }
 0x169   : > { %8857 = vmatprep.mubr.msk.f32.mxu0 %vm225_vm1, %v10603_v48 }
 0x16c   : > { %8858 = vmatmul.mubr.msk.f32.gmra.mrb[38].mxu0 %vm225_vm1, %v10609_v49 }
 0x16d   : > { %8860 = vmatprep.mubr.msk.f32.mxu0 %vm225_vm1, %v10611_v50  ;;  %v12512_v50 = vmov 0 }
 0x16e   : > { %v12513_v50 = vsel %vm10848_vm5, 4294967295, %v12512_v50 }
 0x16f   : > { %12514 = vst [vmem:[#allocation7_spill] sm:$0xff] %v12513_v50 }
 0x170   : > { %8861 = vmatmul.mubr.msk.f32.gmra.mrb[40].mxu0 %vm225_vm1, %v10617_v51  ;;  %v389_v51 = vand.u32 15, %v305_v42  ;;  %v445_v42 = vand.u32 15, %v313_v0 }
 0x171   : > { %8863 = vmatprep.mubr.msk.f32.mxu0 %vm225_vm1, %v10619_v60  ;;  %v307_v60 = vadd.s32 80, %v10791_v27 }
 0x172   : > { %vm10863_vm6 = vcmp.ne.s32.totalorder %v389_v51, 0  ;;  %vm10923_vm10 = vcmp.ne.s32.totalorder %v445_v42, 0  ;;  %v12536_v42 = vmov 0 }
 0x173   : > { %v8550_v56 = vpop.f32.mrb[0].mxu0  ;;  %v12516_v19 = vsel %vm10863_vm6, 4294967295, %v12515_v19  ;;  %v403_v20 = vand.u32 15, %v307_v60  ;;  %v12527_v60 = vmov 0 }
 0x174   : > { %v8700_v57 = vpop.f32.mrb[0].mxu1  ;;  %v1572_v59 = vpop.f32.mrb[1].mxu0  ;;  %8864 = vmatmul.mubr.msk.f32.gmra.mrb[42].mxu0 %vm225_vm1, %v10625_v61  ;;  %12517 = vst [vmem:[#allocation8_spill] sm:$0xff] %v12516_v19  ;;  %v12528_v60 = vsel %vm10923_vm10, 4294967295, %v12527_v60 }
 0x175   : > { %v10808_v58 = vadd.f32 %v8700_v57, %v8550_v56  ;;  %v2590_v29 = vpop.f32.mrb[1].mxu1  ;;  %v1763_v30 = vsel %vm10803_vm2, %v1572_v59, 0.0  ;;  %8866 = vmatprep.mubr.msk.f32.mxu0 %vm225_vm1, %v10627_v62  ;;  %vm10878_vm7 = vcmp.ne.s32.totalorder %v403_v20, 0  ;;  %12529 = vst [vmem:[#allocation12_spill] sm:$0xff] %v12528_v60 }
 0x176   : > { %v10816_v31 = vadd.f32 %v2590_v29, %v1763_v30  ;;  %v12519_v28 = vsel %vm10878_vm7, 4294967295, %v12518_v28  ;;  %v12521_v30 = vmov 0 }
 0x177   : > { %v8553_v4 = vpop.f32.mrb[2].mxu0  ;;  %12520 = vst [vmem:[#allocation9_spill] sm:$0xff] %v12519_v28  ;;  %v12522_v30 = vsel %vm10893_vm8, 4294967295, %v12521_v30 }
 0x178   : > { %v8703_v34 = vpop.f32.mrb[2].mxu1  ;;  %v1582_v36 = vpop.f32.mrb[3].mxu0  ;;  %8867 = vmatmul.mubr.msk.f32.gmra.mrb[44].mxu0 %vm225_vm1, %v10633_v63  ;;  %12523 = vst [vmem:[#allocation10_spill] sm:$0xff] %v12522_v30 }
 0x179   : > { %v10823_v35 = vadd.f32 %v8703_v34, %v8553_v4  ;;  %v2600_v37 = vpop.f32.mrb[3].mxu1  ;;  %v1765_v38 = vsel %vm10818_vm3, %v1582_v36, 0.0  ;;  %8869 = vmatprep.mubr.msk.f32.mxu0 %vm225_vm1, %v10635_v1 }
 0x17a   : > { %v10831_v39 = vadd.f32 %v2600_v37, %v1765_v38 }
 0x17b   : > { %v8556_v43 = vpop.f32.mrb[4].mxu0 }
 0x17c   : > { %v8706_v44 = vpop.f32.mrb[4].mxu1  ;;  %v1592_v46 = vpop.f32.mrb[5].mxu0  ;;  %8870 = vmatmul.mubr.msk.f32.gmra.mrb[46].mxu0 %vm225_vm1, %v10641_v2 }
 0x17d   : > { %v10838_v45 = vadd.f32 %v8706_v44, %v8556_v43  ;;  %v2610_v47 = vpop.f32.mrb[5].mxu1  ;;  %v1767_v48 = vsel %vm10833_vm4, %v1592_v46, 0.0  ;;  %8872 = vmatprep.mubr.msk.f32.mxu0 %vm225_vm1, %v10643_v3  ;;  %v315_v43 = vadd.s32 144, %v10791_v27 }
 0x17e   : > { %v10846_v49 = vadd.f32 %v2610_v47, %v1767_v48 }
 0x17f   : > { %v8559_v61 = vpop.f32.mrb[6].mxu0 }
 0x180   : > { %v8709_v62 = vpop.f32.mrb[6].mxu1  ;;  %v1602_v1 = vpop.f32.mrb[7].mxu0  ;;  %8873 = vmatmul.mubr.msk.f32.gmra.mrb[48].mxu0 %vm225_vm1, %v10649_v5 }
 0x181   : > { %v10853_v63 = vadd.f32 %v8709_v62, %v8559_v61  ;;  %v2620_v2 = vpop.f32.mrb[7].mxu1  ;;  %v1769_v3 = vsel %vm10848_vm5, %v1602_v1, 0.0  ;;  %8875 = vmatprep.mubr.msk.f32.mxu0 %vm225_vm1, %v10651_v6  ;;  %v459_v61 = vand.u32 15, %v315_v43  ;;  %v317_v62 = vadd.s32 160, %v10791_v27 }
 0x182   : > { %v10861_v18 = vadd.f32 %v2620_v2, %v1769_v3  ;;  %v501_v43 = vand.u32 15, %v321_v33 }
 0x183   : > { %v8562_v22 = vpop.f32.mrb[8].mxu0  ;;  %vm10938_vm11 = vcmp.ne.s32.totalorder %v459_v61, 0 }
 0x184   : > { %v8712_v23 = vpop.f32.mrb[8].mxu1  ;;  %v1612_v5 = vpop.f32.mrb[9].mxu0  ;;  %8876 = vmatmul.mubr.msk.f32.gmra.mrb[50].mxu0 %vm225_vm1, %v10657_v7  ;;  %vm10975_vm14 = vcmp.ne.s32.totalorder %v501_v43, 0  ;;  %v12545_v43 = vmov 0 }
 0x185   : > { %v10868_v24 = vadd.f32 %v8712_v23, %v8562_v22  ;;  %v2630_v25 = vpop.f32.mrb[9].mxu1  ;;  %v1771_v6 = vsel %vm10863_vm6, %v1612_v5, 0.0  ;;  %8878 = vmatprep.mubr.msk.f32.mxu0 %vm225_vm1, %v10659_v8  ;;  %v12530_v22 = vmov 0  ;;  %v3439_v23 = vld [vmem:[#allocation2 + $0x119] sm:$0xff]  ;;  %v473_v5 = vand.u32 15, %v317_v62 }
 0x186   : > { %v10876_v26 = vadd.f32 %v2630_v25, %v1771_v6  ;;  %v12531_v22 = vsel %vm10938_vm11, 4294967295, %v12530_v22  ;;  %v319_v25 = vadd.s32 176, %v10791_v27 }
 0x187   : > { %v8565_v55 = vpop.f32.mrb[10].mxu0  ;;  %12532 = vst [vmem:[#allocation13_spill] sm:$0xff] %v12531_v22  ;;  %vm10952_vm12 = vcmp.ne.s32.totalorder %v473_v5, 0 }
 0x188   : > { %v8715_v56 = vpop.f32.mrb[10].mxu1  ;;  %v1622_v7 = vpop.f32.mrb[11].mxu0  ;;  %8879 = vmatmul.mubr.msk.f32.gmra.mrb[52].mxu0 %vm225_vm1, %v10665_v9 }
 0x189   : > { %v10883_v57 = vadd.f32 %v8715_v56, %v8565_v55  ;;  %v2640_v59 = vpop.f32.mrb[11].mxu1  ;;  %v1773_v8 = vsel %vm10878_vm7, %v1622_v7, 0.0  ;;  %8881 = vmatprep.mubr.msk.f32.mxu0 %vm225_vm1, %v10667_v10  ;;  %v3440_v56 = vld [vmem:[#allocation2 + $0x121] sm:$0xff] }
 0x18a   : > { %v10891_v29 = vadd.f32 %v2640_v59, %v1773_v8  ;;  %v12533_v59 = vmov 0  ;;  %v487_v8 = vand.u32 15, %v319_v25 }
 0x18b   : > { %v8568_v4 = vpop.f32.mrb[12].mxu0  ;;  %v12534_v59 = vsel %vm10952_vm12, 4294967295, %v12533_v59 }
 0x18c   : > { %v8718_v34 = vpop.f32.mrb[12].mxu1  ;;  %v1632_v9 = vpop.f32.mrb[13].mxu0  ;;  %8882 = vmatmul.mubr.msk.f32.gmra.mrb[54].mxu0 %vm225_vm1, %v10673_v11  ;;  %12535 = vst [vmem:[#allocation14_spill] sm:$0xff] %v12534_v59  ;;  %vm10964_vm13 = vcmp.ne.s32.totalorder %v487_v8, 0 }
 0x18d   : > { %v10898_v36 = vadd.f32 %v8718_v34, %v8568_v4  ;;  %v2650_v37 = vpop.f32.mrb[13].mxu1  ;;  %v1775_v10 = vsel %vm10893_vm8, %v1632_v9, 0.0  ;;  %8884 = vmatprep.mubr.msk.f32.mxu0 %vm225_vm1, %v10675_v12  ;;  %v12537_v42 = vsel %vm10964_vm13, 4294967295, %v12536_v42 }
 0x18e   : > { %v10906_v38 = vadd.f32 %v2650_v37, %v1775_v10  ;;  %12538 = vst [vmem:[#allocation15_spill] sm:$0xff] %v12537_v42 }
 0x18f   : > { %v8571_v44 = vpop.f32.mrb[14].mxu0 }
 0x190   : > { %v8721_v46 = vpop.f32.mrb[14].mxu1  ;;  %v1642_v11 = vpop.f32.mrb[15].mxu0  ;;  %8885 = vmatmul.mubr.msk.f32.gmra.mrb[56].mxu0 %vm225_vm1, %v10681_v13 }
 0x191   : > { %v10913_v47 = vadd.f32 %v8721_v46, %v8571_v44  ;;  %v2660_v48 = vpop.f32.mrb[15].mxu1  ;;  %v1777_v12 = vsel %vm10908_vm9, %v1642_v11, 0.0  ;;  %8887 = vmatprep.mubr.msk.f32.mxu0 %vm225_vm1, %v10683_v14  ;;  %v323_v44 = vadd.s32 208, %v10791_v27 }
 0x192   : > { %v10921_v51 = vadd.f32 %v2660_v48, %v1777_v12 }
 0x193   : > { %v8574_v1 = vpop.f32.mrb[16].mxu0 }
 0x194   : > { %v8724_v2 = vpop.f32.mrb[16].mxu1  ;;  %v1652_v13 = vpop.f32.mrb[17].mxu0  ;;  %8888 = vmatmul.mubr.msk.f32.gmra.mrb[58].mxu0 %vm225_vm1, %v10689_v15 }
 0x195   : > { %v10928_v3 = vadd.f32 %v8724_v2, %v8574_v1  ;;  %v2670_v20 = vpop.f32.mrb[17].mxu1  ;;  %v1779_v14 = vsel %vm10923_vm10, %v1652_v13, 0.0  ;;  %8890 = vmatprep.mubr.msk.f32.mxu0 %vm225_vm1, %v10691_v16  ;;  %v12539_v2 = vmov 0  ;;  %v515_v13 = vand.u32 15, %v323_v44 }
 0x196   : > { %v10936_v21 = vadd.f32 %v2670_v20, %v1779_v14  ;;  %v12540_v2 = vsel %vm10975_vm14, 4294967295, %v12539_v2  ;;  %v325_v20 = vadd.s32 224, %v10791_v27 }
 0x197   : > { %v8577_v6 = vpop.f32.mrb[18].mxu0  ;;  %12541 = vst [vmem:[#allocation16_spill] sm:$0xff] %v12540_v2  ;;  %vm10986_vm15 = vcmp.ne.s32.totalorder %v515_v13, 0 }
 0x198   : > { %v8727_v52 = vpop.f32.mrb[18].mxu1  ;;  %v1662_v54 = vpop.f32.mrb[19].mxu0  ;;  %8891 = vmatmul.mubr.msk.f32.gmra.mrb[60].mxu0 %vm225_vm1, %v10697_v17 }
 0x199   : > { %v10943_v15 = vadd.f32 %v8727_v52, %v8577_v6  ;;  %v2680_v55 = vpop.f32.mrb[19].mxu1  ;;  %v1781_v16 = vsel %vm10938_vm11, %v1662_v54, 0.0  ;;  %8893 = vmatprep.mubr.msk.f32.mxu0 %vm225_vm1, %v3439_v23 }
 0x19a   : > { %v10950_v7 = vadd.f32 %v2680_v55, %v1781_v16  ;;  %v12542_v55 = vmov 0  ;;  %v529_v16 = vand.u32 15, %v325_v20 }
 0x19b   : > { %v8580_v0 = vpop.f32.mrb[20].mxu0  ;;  %v12543_v55 = vsel %vm10986_vm15, 4294967295, %v12542_v55 }
 0x19c   : > { %v8730_v4 = vpop.f32.mrb[20].mxu1  ;;  %v1672_v17 = vpop.f32.mrb[21].mxu0  ;;  %8894 = vmatmul.mubr.msk.f32.gmra.mrb[62].mxu0 %vm225_vm1, %v3440_v56  ;;  %12544 = vst [vmem:[#allocation17_spill] sm:$0xff] %v12543_v55  ;;  %v327_v56 = vadd.s32 240, %v10791_v27  ;;  %vm10997_vm0 = vcmp.ne.s32.totalorder %v529_v16, 0 }
 0x19d   : > { %v10957_v34 = vadd.f32 %v8730_v4, %v8580_v0  ;;  %v2690_v9 = vpop.f32.mrb[21].mxu1  ;;  %v1783_v37 = vsel %vm10952_vm12, %v1672_v17, 0.0  ;;  %v12546_v43 = vsel %vm10997_vm0, 4294967295, %v12545_v43 }
 0x19e   : > { %v10962_v10 = vadd.f32 %v2690_v9, %v1783_v37  ;;  %12547 = vst [vmem:[#allocation18_spill] sm:$0xff] %v12546_v43  ;;  %v543_v44 = vand.u32 15, %v327_v56 }
 0x19f   : > { %v8583_v46 = vpop.f32.mrb[22].mxu0 }
 0x1a0   : > { %v8733_v11 = vpop.f32.mrb[22].mxu1  ;;  %v1682_v12 = vpop.f32.mrb[23].mxu0  ;;  %vm11007_vm1 = vcmp.ne.s32.totalorder %v543_v44, 0  ;;  %v7610_v44 = vld [vmem:[%s12396_s3 + $0x90] sm:$0xff] }
 0x1a1   : > { %v10969_v48 = vadd.f32 %v8733_v11, %v8583_v46  ;;  %v2700_v61 = vpop.f32.mrb[23].mxu1  ;;  %v1785_v62 = vsel %vm10964_vm13, %v1682_v12, 0.0 }
 0x1a2   : > { %v10973_v1 = vadd.f32 %v2700_v61, %v1785_v62 }
 0x1a3   : > { %v8586_v14 = vpop.f32.mrb[24].mxu0 }
 0x1a4   : > { %v8736_v23 = vpop.f32.mrb[24].mxu1  ;;  %v1692_v25 = vpop.f32.mrb[25].mxu0 }
 0x1a5   : > { %v10980_v5 = vadd.f32 %v8736_v23, %v8586_v14  ;;  %v2710_v6 = vpop.f32.mrb[25].mxu1  ;;  %v1787_v52 = vsel %vm10975_vm14, %v1692_v25, 0.0  ;;  %v12548_v14 = vmov 0 }
 0x1a6   : > { %v10984_v54 = vadd.f32 %v2710_v6, %v1787_v52  ;;  %v12549_v14 = vsel %vm11007_vm1, 4294967295, %v12548_v14 }
 0x1a7   : > { %v8589_v8 = vpop.f32.mrb[26].mxu0  ;;  %12550 = vst [vmem:[#allocation19_spill] sm:$0xff] %v12549_v14 }
 0x1a8   : > { %v8739_v33 = vpop.f32.mrb[26].mxu1  ;;  %v1702_v4 = vpop.f32.mrb[27].mxu0 }
 0x1a9   : > { %v10991_v0 = vadd.f32 %v8739_v33, %v8589_v8  ;;  %v2720_v17 = vpop.f32.mrb[27].mxu1  ;;  %v1789_v9 = vsel %vm10986_vm15, %v1702_v4, 0.0  ;;  %vm12414_vm15 = vcmask 261120   ;;  %v7608_v33 = vld [vmem:[%s12396_s3 + $0x80] sm:$0xff]  ;;  %v7609_v4 = vld [vmem:[%s12396_s3 + $0x88] sm:$0xff] }
 0x1aa   : > { %v10995_v37 = vadd.f32 %v2720_v17, %v1789_v9  ;;  %v12551_v17 = vmov 0.0   ;;  %v9424_v9 = vpack.c.bf16 %v7609_v4, %v7608_v33  ;;  %v300_v33 = vadd.s32 24, %v10791_v27 }
 0x1ab   : > { %v8592_v46 = vpop.f32.mrb[28].mxu0  ;;  %3935 = vst.msk [vmem:[#allocation3] sm:$0xff] %vm12414_vm15, %v12551_v17  ;;  %3936 = vst.msk [vmem:[#allocation3 + $0x8] sm:$0xff] %vm12414_vm15, %v12551_v17  ;;  %v302_v4 = vadd.s32 40, %v10791_v27 }
 0x1ac   : > { %v8742_v11 = vpop.f32.mrb[28].mxu1  ;;  %v1712_v61 = vpop.f32.mrb[29].mxu0  ;;  %3937 = vst.msk [vmem:[#allocation3 + $0x10] sm:$0xff] %vm12414_vm15, %v12551_v17  ;;  %3938 = vst.msk [vmem:[#allocation3 + $0x118] sm:$0xff] %vm12414_vm15, %v12551_v17  ;;  %9425 = vmatprep.subr.bf16.mxu0 %v9424_v9 }
 0x1ad   : > { %v11001_v12 = vadd.f32 %v8742_v11, %v8592_v46  ;;  %v2730_v62 = vpop.f32.mrb[29].mxu1  ;;  %v1791_v13 = vsel %vm10997_vm0, %v1712_v61, 0.0  ;;  %3939 = vst.msk [vmem:[#allocation3 + $0x120] sm:$0xff] %vm12414_vm15, %v12551_v17  ;;  %3940 = vst.msk [vmem:[#allocation3 + $0x128] sm:$0xff] %vm12414_vm15, %v12551_v17  ;;  %9427 = vmatpush3.bf16.msra.mxu0 %v9424_v9  ;;  %v7611_v46 = vld [vmem:[%s12396_s3 + $0x98] sm:$0xff]  ;;  %v4005_v61 = vld [vmem:[%s12396_s3] sm:$0xff] }
 0x1ae   : > { %v11005_v20 = vadd.f32 %v2730_v62, %v1791_v13  ;;  %v9428_v11 = vpack.c.bf16 %v7611_v46, %v7610_v44  ;;  %v4006_v62 = vld [vmem:[%s12396_s3 + $0x8] sm:$0xff]  ;;  %v12552_v17 = vmov 0  ;;  %v354_v9 = vand.u32 15, %v300_v33 }
 0x1af   : > { %v8595_v23 = vpop.f32.mrb[30].mxu0  ;;  %v11047_v13 = vpack.c.bf16 %v4006_v62, %v4005_v61  ;;  %v368_v62 = vand.u32 15, %v302_v4  ;;  %v12558_v4 = vmov 0  ;;  %vm12561_vm0 = vcmask 261120  }
 0x1b0   : > { %v8745_v25 = vpop.f32.mrb[30].mxu1  ;;  %v1722_v52 = vpop.f32.mrb[31].mxu0  ;;  %9429 = vmatprep.subr.bf16.mxu0 %v9428_v11  ;;  %vm12562_vm14 = vmmov %vm12561_vm0 }
 0x1b1   : > { %v11011_v6 = vadd.f32 %v8745_v25, %v8595_v23  ;;  %v2740_v16 = vpop.f32.mrb[31].mxu1  ;;  %v1793_v56 = vsel %vm11007_vm1, %v1722_v52, 0.0  ;;  %9431 = vmatpush3.bf16.msra.mxu0 %v9428_v11  ;;  %9409 = vmatprep.subr.bf16.mxu1 %v11047_v13  ;;  %v7604_v23 = vld [vmem:[%s12396_s3 + $0x20] sm:$0xff]  ;;  %v7605_v25 = vld [vmem:[%s12396_s3 + $0x28] sm:$0xff]  ;;  %vm11076_vm1 = vcmp.ne.s32.totalorder %v354_v9, 15  ;;  %vm12572_vm13 = vmmov %vm12561_vm0 }
 0x1b2   : > { %v11015_v8 = vadd.f32 %v2740_v16, %v1793_v56  ;;  %v11056_v52 = vpack.c.bf16 %v7605_v25, %v7604_v23  ;;  %v298_v16 = vadd.s32 8, %v10791_v27  ;;  %v11071_v11 = vld [vmem:[%s12395_s2] ss:$0 sm:$0xff]  ;;  %v304_v23 = vadd.s32 56, %v10791_v27  ;;  %vm12698_vm11 = vmmov %vm12561_vm0 }
 0x1b4   : > { %9433 = vmatprep.subr.bf16.mxu0 %v11056_v52  ;;  %v340_v56 = vand.u32 15, %v298_v16 }
 0x1b6   : > { %vm11062_vm15 = vcmp.ne.s32.totalorder %v340_v56, 15  ;;  %v12555_v56 = vmov 0 }
 0x1b7   : > { %v12553_v17 = vsel %vm11062_vm15, 4294967295, %v12552_v17  ;;  %v12556_v56 = vsel %vm11076_vm1, 4294967295, %v12555_v56 }
 0x1b8   : > { %12554 = vst [vmem:[#allocation20_spill] sm:$0xff] %v12553_v17  ;;  %12557 = vst [vmem:[#allocation21_spill] sm:$0xff] %v12556_v56 }
 0x233   : > { %v8850_v44 = vpop.f32.mrb[32].mxu0 }
 0x234   : > { %v3800_v46 = vsel %vm11062_vm15, %v8850_v44, 0.0  ;;  %v3608_v61 = vpop.f32.mrb[33].mxu0  ;;  %vm11084_vm15 = vcmp.ne.s32.totalorder %v368_v62, 15 }
 0x235   : > { %v3832_v25 = vadd.f32 %v3800_v46, %v10808_v58  ;;  %v3831_v16 = vadd.f32 %v3608_v61, %v10816_v31  ;;  %v12559_v4 = vsel %vm11084_vm15, 4294967295, %v12558_v4  ;;  %v382_v58 = vand.u32 15, %v304_v23 }
 0x236   : > { %12560 = vst [vmem:[#allocation22_spill] sm:$0xff] %v12559_v4  ;;  %v306_v31 = vadd.s32 72, %v10791_v27  ;;  %v7568_v4 = vld [vmem:[%s12396_s3 + $0xc0] sm:$0xff] }
 0x237   : > { %v3871_v33 = vadd.f32 %v11071_v11, %v3832_v25  ;;  %v3870_v44 = vadd.f32 %v11071_v11, %v3831_v16  ;;  %v8853_v17 = vpop.f32.mrb[34].mxu0 }
 0x238   : > { %v3802_v14 = vsel %vm11076_vm1, %v8853_v17, 0.0  ;;  %v3618_v43 = vpop.f32.mrb[35].mxu0  ;;  %vm11097_vm1 = vcmp.ne.s32.totalorder %v382_v58, 15 }
 0x239   : > { %v3903_v9 = vmax.f32 %v3871_v33, 0.0  ;;  %v3902_v46 = vmax.f32 %v3870_v44, 0.0  ;;  %v3834_v61 = vadd.f32 %v3802_v14, %v10823_v35  ;;  %v3833_v25 = vadd.f32 %v3618_v43, %v10831_v39 }
 0x23a   : > { %v12563_v33 = vmov 0  ;;  %v396_v35 = vand.u32 15, %v306_v31  ;;  %v308_v39 = vadd.s32 88, %v10791_v27 }
 0x23b   : > { %3942 = vst.msk [vmem:[#allocation3 + $0x20] sm:$0xff] %vm12561_vm0, %v3903_v9  ;;  %v3873_v17 = vadd.f32 %v11071_v11, %v3834_v61  ;;  %v3872_v62 = vadd.f32 %v11071_v11, %v3833_v25  ;;  %v8856_v16 = vpop.f32.mrb[36].mxu0  ;;  %v12564_v33 = vsel %vm11097_vm1, 4294967295, %v12563_v33  ;;  %v4008_v25 = vld [vmem:[%s12396_s3 + $0x18] sm:$0xff] }
 0x23c   : > { %3941 = vst.msk [vmem:[#allocation3 + $0x18] sm:$0xff] %vm12562_vm14, %v3902_v46  ;;  %v3804_v23 = vsel %vm11084_vm15, %v8856_v16, 0.0  ;;  %v3628_v56 = vpop.f32.mrb[37].mxu0  ;;  %12565 = vst [vmem:[#allocation23_spill] sm:$0xff] %v12564_v33  ;;  %v4007_v46 = vld [vmem:[%s12396_s3 + $0x10] sm:$0xff]  ;;  %v410_v16 = vand.u32 15, %v308_v39 }
 0x23d   : > { %v3905_v43 = vmax.f32 %v3873_v17, 0.0  ;;  %v3904_v14 = vmax.f32 %v3872_v62, 0.0  ;;  %v3836_v44 = vadd.f32 %v3804_v23, %v10838_v45  ;;  %v3835_v9 = vadd.f32 %v3628_v56, %v10846_v49  ;;  %vm12566_vm14 = vmmov %vm12561_vm0  ;;  %v7606_v45 = vld [vmem:[%s12396_s3 + $0x30] sm:$0xff]  ;;  %v7607_v49 = vld [vmem:[%s12396_s3 + $0x38] sm:$0xff] }
 0x23e   : > { %v12567_v62 = vmov 0  ;;  %v310_v23 = vadd.s32 104, %v10791_v27  ;;  %vm12571_vm15 = vmmov %vm12561_vm0 }
 0x23f   : > { %3944 = vst.msk [vmem:[#allocation3 + $0x30] sm:$0xff] %vm12566_vm14, %v3905_v43  ;;  %v3875_v58 = vadd.f32 %v11071_v11, %v3836_v44  ;;  %v3874_v31 = vadd.f32 %v11071_v11, %v3835_v9  ;;  %v8859_v61 = vpop.f32.mrb[38].mxu0  ;;  %vm11122_vm14 = vcmp.ne.s32.totalorder %v396_v35, 15  ;;  %v7569_v35 = vld [vmem:[%s12396_s3 + $0xc8] sm:$0xff] }
 0x240   : > { %3943 = vst.msk [vmem:[#allocation3 + $0x28] sm:$0xff] %vm12561_vm0, %v3904_v14  ;;  %v3806_v56 = vsel %vm11097_vm1, %v8859_v61, 0.0  ;;  %v3638_v17 = vpop.f32.mrb[39].mxu0  ;;  %v12568_v62 = vsel %vm11122_vm14, 4294967295, %v12567_v62  ;;  %vm12570_vm1 = vmmov %vm12561_vm0 }
 0x241   : > { %12569 = vst [vmem:[#allocation24_spill] sm:$0xff] %v12568_v62  ;;  %v3907_v43 = vmax.f32 %v3875_v58, 0.0  ;;  %v3906_v14 = vmax.f32 %v3874_v31, 0.0  ;;  %v3838_v44 = vadd.f32 %v3806_v56, %v10853_v63  ;;  %v3837_v9 = vadd.f32 %v3638_v17, %v10861_v18 }
 0x242   : > { %v9412_v58 = vpack.c.bf16 %v4008_v25, %v4007_v46  ;;  %v9436_v31 = vpack.c.bf16 %v7607_v49, %v7606_v45  ;;  %v11149_v17 = vld [vmem:[#allocation3 + $0x20] sm:$0xff]  ;;  %v7676_v46 = vld [vmem:[%s12396_s3 + $0xe0] sm:$0xff]  ;;  %v7677_v25 = vld [vmem:[%s12396_s3 + $0xe8] sm:$0xff] }
 0x243   : > { %v11135_v61 = vld [vmem:[#allocation3 + $0x17] sm:$0xff]  ;;  %v11139_v39 = vld [vmem:[#allocation3 + $0x1f] sm:$0xff]  ;;  %3946 = vst.msk [vmem:[#allocation3 + $0x40] sm:$0xff] %vm12561_vm0, %v3907_v43  ;;  %v3877_v63 = vadd.f32 %v11071_v11, %v3838_v44  ;;  %v3876_v18 = vadd.f32 %v11071_v11, %v3837_v9  ;;  %v8862_v56 = vpop.f32.mrb[40].mxu0  ;;  %v12575_v43 = vmov 0  ;;  %v312_v44 = vadd.s32 120, %v10791_v27 }
 0x244   : > { %v11137_v33 = vld [vmem:[#allocation3 + $0x18] sm:$0xff]  ;;  %3945 = vst.msk [vmem:[#allocation3 + $0x38] sm:$0xff] %vm12570_vm1, %v3906_v14  ;;  %8904 = vmatprep.mubr.msk.f32.mxu1 %vm12571_vm15, %v11135_v61  ;;  %v3808_v45 = vsel %vm11122_vm14, %v8862_v56, 0.0  ;;  %v3648_v49 = vpop.f32.mrb[41].mxu0  ;;  %vm12573_vm1 = vmmov %vm12561_vm0  ;;  %v424_v14 = vand.u32 15, %v310_v23  ;;  %v11178_v23 = vpack.c.bf16 %v7569_v35, %v7568_v4 }
 0x245   : > { %9072 = vmatprep.mubr.msk.f32.mxu0 %vm12572_vm13, %v11137_v33  ;;  %8905 = vmatmul.mubr.msk.f32.vlgmr.msra.gmra.mrb[32].mxu1 %vm12573_vm1, %v11139_v39  ;;  %vm12574_vm15 = vmmov %vm12561_vm0  ;;  %vm11163_vm13 = vcmp.ne.s32.totalorder %v410_v16, 15  ;;  %v3909_v9 = vmax.f32 %v3877_v63, 0.0  ;;  %v3908_v55 = vmax.f32 %v3876_v18, 0.0  ;;  %v3840_v2 = vadd.f32 %v3808_v45, %v10868_v24 }
 0x246   : > { %9073 = vmatmul.mubr.msk.f32.vlgmr.msra.gmra.mrb[64].mxu0 %vm12574_vm15, %v11149_v17  ;;  %v12576_v43 = vsel %vm11163_vm13, 4294967295, %v12575_v43  ;;  %v3839_v56 = vadd.f32 %v3648_v49, %v10876_v26  ;;  %9411 = vmatpush3.bf16.msra.mxu1 %v11047_v13  ;;  %v11180_v63 = vpack.c.bf16 %v7677_v25, %v7676_v46  ;;  %vm12578_vm1 = vmmov %vm12561_vm0  ;;  %vm11198_vm12 = vcmp.ne.s32.totalorder %v424_v14, 15 }
 0x247   : > { %12577 = vst [vmem:[#allocation25_spill] sm:$0xff] %v12576_v43  ;;  %9435 = vmatpush3.bf16.msra.mxu0 %v11056_v52  ;;  %v11172_v62 = vld [vmem:[#allocation3 + $0x27] sm:$0xff]  ;;  %v11176_v16 = vld [vmem:[#allocation3 + $0x2f] sm:$0xff]  ;;  %9413 = vmatprep.subr.bf16.mxu1 %v9412_v58  ;;  %3948 = vst.msk [vmem:[#allocation3 + $0x50] sm:$0xff] %vm12561_vm0, %v3909_v9  ;;  %v3879_v24 = vadd.f32 %v11071_v11, %v3840_v2  ;;  %v8865_v13 = vpop.f32.mrb[42].mxu0  ;;  %v12582_v2 = vmov 0 }
 0x248   : > { %v11174_v42 = vld [vmem:[#allocation3 + $0x28] sm:$0xff]  ;;  %9437 = vmatprep.subr.bf16.mxu0 %v9436_v31  ;;  %3947 = vst.msk [vmem:[#allocation3 + $0x48] sm:$0xff] %vm12578_vm1, %v3908_v55  ;;  %v3878_v26 = vadd.f32 %v11071_v11, %v3839_v56  ;;  %vm12579_vm15 = vmmov %vm12561_vm0  ;;  %v11190_v52 = vld [vmem:[#allocation3 + $0x30] sm:$0xff]  ;;  %v3810_v4 = vsel %vm11163_vm13, %v8865_v13, 0.0  ;;  %v3658_v35 = vpop.f32.mrb[43].mxu0  ;;  %v12583_v2 = vsel %vm11198_vm12, 4294967295, %v12582_v2 }
 0x249   : > { %8907 = vmatprep.mubr.msk.f32.mxu1 %vm12579_vm15, %v11172_v62  ;;  %vm12580_vm14 = vmmov %vm12561_vm0  ;;  %12584 = vst [vmem:[#allocation26_spill] sm:$0xff] %v12583_v2  ;;  %v438_v55 = vand.u32 15, %v312_v44  ;;  %v314_v18 = vadd.s32 136, %v10791_v27  ;;  %v3911_v46 = vmax.f32 %v3879_v24, 0.0  ;;  %v3842_v45 = vadd.f32 %v3810_v4, %v10883_v57 }
 0x24a   : > { %9075 = vmatprep.mubr.msk.f32.mxu0 %vm12580_vm14, %v11174_v42  ;;  %8908 = vmatmul.mubr.msk.f32.gmra.mrb[34].mxu1 %vm12561_vm0, %v11176_v16  ;;  %vm12581_vm1 = vmmov %vm12561_vm0  ;;  %v3910_v25 = vmax.f32 %v3878_v26, 0.0  ;;  %v3841_v49 = vadd.f32 %v3658_v35, %v10891_v29  ;;  %v12590_v24 = vmov 0  ;;  %v316_v4 = vadd.s32 152, %v10791_v27 }
 0x24b   : > { %9076 = vmatmul.mubr.msk.f32.gmra.mrb[66].mxu0 %vm12581_vm1, %v11190_v52  ;;  %9415 = vmatpush3.bf16.msra.mxu1 %v9412_v58  ;;  %v11205_v9 = vld [vmem:[#allocation3 + $0x37] sm:$0xff]  ;;  %v11209_v13 = vld [vmem:[#allocation3 + $0x3f] sm:$0xff]  ;;  %vm12585_vm14 = vmmov %vm12561_vm0  ;;  %v3881_v57 = vadd.f32 %v11071_v11, %v3842_v45  ;;  %v8868_v58 = vpop.f32.mrb[44].mxu0  ;;  %vm11229_vm13 = vcmp.ne.s32.totalorder %v438_v55, 15  ;;  %v452_v26 = vand.u32 15, %v314_v18 }
 0x24c   : > { %9439 = vmatpush3.bf16.msra.mxu0 %v9436_v31  ;;  %v11207_v56 = vld [vmem:[#allocation3 + $0x38] sm:$0xff]  ;;  %9417 = vmatprep.subr.bf16.mxu1 %v11178_v23  ;;  %3950 = vst.msk [vmem:[#allocation3 + $0x60] sm:$0xff] %vm12585_vm14, %v3911_v46  ;;  %vm12586_vm15 = vmmov %vm12561_vm0  ;;  %v3880_v29 = vadd.f32 %v11071_v11, %v3841_v49  ;;  %v11221_v31 = vld [vmem:[#allocation3 + $0x40] sm:$0xff]  ;;  %v3812_v14 = vsel %vm11198_vm12, %v8868_v58, 0.0  ;;  %v3668_v44 = vpop.f32.mrb[45].mxu0  ;;  %v12591_v24 = vsel %vm11229_vm13, 4294967295, %v12590_v24 }
 0x24d   : > { %9441 = vmatprep.subr.bf16.mxu0 %v11180_v63  ;;  %3949 = vst.msk [vmem:[#allocation3 + $0x58] sm:$0xff] %vm12586_vm15, %v3910_v25  ;;  %8910 = vmatprep.mubr.msk.f32.mxu1 %vm12561_vm0, %v11205_v9  ;;  %vm12587_vm1 = vmmov %vm12561_vm0  ;;  %v3913_v35 = vmax.f32 %v3881_v57, 0.0  ;;  %v3844_v25 = vadd.f32 %v3812_v14, %v10898_v36  ;;  %v3843_v45 = vadd.f32 %v3668_v44, %v10906_v38  ;;  %vm11258_vm12 = vcmp.ne.s32.totalorder %v452_v26, 15 }
 0x24e   : > { %9078 = vmatprep.mubr.msk.f32.mxu0 %vm12587_vm1, %v11207_v56  ;;  %vm12588_vm14 = vmmov %vm12561_vm0  ;;  %12592 = vst [vmem:[#allocation27_spill] sm:$0xff] %v12591_v24  ;;  %v3912_v46 = vmax.f32 %v3880_v29, 0.0  ;;  %v11250_v36 = vld [vmem:[#allocation3 + $0x50] sm:$0xff]  ;;  %v12597_v14 = vmov 0  ;;  %v466_v44 = vand.u32 15, %v316_v4 }
 0x24f   : > { %8911 = vmatmul.mubr.msk.f32.gmra.mrb[36].mxu1 %vm12588_vm14, %v11209_v13  ;;  %vm12589_vm15 = vmmov %vm12561_vm0  ;;  %v11236_v49 = vld [vmem:[#allocation3 + $0x47] sm:$0xff]  ;;  %v11240_v2 = vld [vmem:[#allocation3 + $0x4f] sm:$0xff]  ;;  %3952 = vst.msk [vmem:[#allocation3 + $0x70] sm:$0xff] %vm12561_vm0, %v3913_v35  ;;  %v3883_v55 = vadd.f32 %v11071_v11, %v3844_v25  ;;  %v3882_v18 = vadd.f32 %v11071_v11, %v3843_v45  ;;  %v8871_v57 = vpop.f32.mrb[46].mxu0  ;;  %v12598_v14 = vsel %vm11258_vm12, 4294967295, %v12597_v14  ;;  %v318_v35 = vadd.s32 168, %v10791_v27 }
 0x250   : > { %9079 = vmatmul.mubr.msk.f32.gmra.mrb[68].mxu0 %vm12589_vm15, %v11221_v31  ;;  %v11238_v58 = vld [vmem:[#allocation3 + $0x48] sm:$0xff]  ;;  %vm12593_vm1 = vmmov %vm12561_vm0  ;;  %v3814_v38 = vsel %vm11229_vm13, %v8871_v57, 0.0  ;;  %v3678_v29 = vpop.f32.mrb[47].mxu0  ;;  %12599 = vst [vmem:[#allocation28_spill] sm:$0xff] %v12598_v14  ;;  %vm11287_vm13 = vcmp.ne.s32.totalorder %v466_v44, 15 }
 0x251   : > { %3951 = vst.msk [vmem:[#allocation3 + $0x68] sm:$0xff] %vm12593_vm1, %v3912_v46  ;;  %vm12594_vm14 = vmmov %vm12561_vm0  ;;  %v3915_v46 = vmax.f32 %v3883_v55, 0.0  ;;  %v3914_v25 = vmax.f32 %v3882_v18, 0.0  ;;  %v3846_v45 = vadd.f32 %v3814_v38, %v10913_v47  ;;  %v3845_v57 = vadd.f32 %v3678_v29, %v10921_v51 }
 0x252   : > { %8913 = vmatprep.mubr.msk.f32.mxu1 %vm12594_vm14, %v11236_v49  ;;  %vm12595_vm15 = vmmov %vm12561_vm0  ;;  %v12605_v38 = vmov 0  ;;  %v480_v29 = vand.u32 15, %v318_v35 }
 0x253   : > { %9081 = vmatprep.mubr.msk.f32.mxu0 %vm12595_vm15, %v11238_v58  ;;  %8914 = vmatmul.mubr.msk.f32.gmra.mrb[38].mxu1 %vm12561_vm0, %v11240_v2  ;;  %vm12596_vm1 = vmmov %vm12561_vm0  ;;  %v3885_v26 = vadd.f32 %v11071_v11, %v3846_v45  ;;  %v3884_v4 = vadd.f32 %v11071_v11, %v3845_v57  ;;  %v8874_v55 = vpop.f32.mrb[48].mxu0  ;;  %v11279_v47 = vld [vmem:[#allocation3 + $0x60] sm:$0xff]  ;;  %v12606_v38 = vsel %vm11287_vm13, 4294967295, %v12605_v38 }
 0x254   : > { %9082 = vmatmul.mubr.msk.f32.gmra.mrb[70].mxu0 %vm12596_vm1, %v11250_v36  ;;  %v11265_v24 = vld [vmem:[#allocation3 + $0x57] sm:$0xff]  ;;  %v11269_v59 = vld [vmem:[#allocation3 + $0x5f] sm:$0xff]  ;;  %vm12600_vm14 = vmmov %vm12561_vm0  ;;  %v3816_v51 = vsel %vm11258_vm12, %v8874_v55, 0.0  ;;  %v3688_v18 = vpop.f32.mrb[49].mxu0  ;;  %12607 = vst [vmem:[#allocation29_spill] sm:$0xff] %v12606_v38  ;;  %vm11316_vm12 = vcmp.ne.s32.totalorder %v480_v29, 15 }
 0x255   : > { %v11267_v43 = vld [vmem:[#allocation3 + $0x58] sm:$0xff]  ;;  %3954 = vst.msk [vmem:[#allocation3 + $0x80] sm:$0xff] %vm12600_vm14, %v3915_v46  ;;  %vm12601_vm15 = vmmov %vm12561_vm0  ;;  %8916 = vmatprep.mubr.msk.f32.mxu1 %vm12561_vm0, %v11265_v24  ;;  %v320_v46 = vadd.s32 184, %v10791_v27  ;;  %v3916_v45 = vmax.f32 %v3884_v4, 0.0  ;;  %v3848_v57 = vadd.f32 %v3816_v51, %v10928_v3  ;;  %v3847_v55 = vadd.f32 %v3688_v18, %v10936_v21 }
 0x256   : > { %3953 = vst.msk [vmem:[#allocation3 + $0x78] sm:$0xff] %vm12601_vm15, %v3914_v25  ;;  %vm12602_vm1 = vmmov %vm12561_vm0  ;;  %v3917_v25 = vmax.f32 %v3885_v26, 0.0  ;;  %v11308_v3 = vld [vmem:[#allocation3 + $0x70] sm:$0xff]  ;;  %v12612_v51 = vmov 0 }
 0x257   : > { %9084 = vmatprep.mubr.msk.f32.mxu0 %vm12602_vm1, %v11267_v43  ;;  %vm12603_vm14 = vmmov %vm12561_vm0  ;;  %v3887_v44 = vadd.f32 %v11071_v11, %v3848_v57  ;;  %v3886_v35 = vadd.f32 %v11071_v11, %v3847_v55  ;;  %v8877_v26 = vpop.f32.mrb[50].mxu0  ;;  %v12613_v51 = vsel %vm11316_vm12, 4294967295, %v12612_v51  ;;  %v494_v18 = vand.u32 15, %v320_v46 }
 0x258   : > { %8917 = vmatmul.mubr.msk.f32.gmra.mrb[40].mxu1 %vm12603_vm14, %v11269_v59  ;;  %vm12604_vm15 = vmmov %vm12561_vm0  ;;  %v11294_v14 = vld [vmem:[#allocation3 + $0x67] sm:$0xff]  ;;  %v11298_v60 = vld [vmem:[#allocation3 + $0x6f] sm:$0xff]  ;;  %3956 = vst.msk [vmem:[#allocation3 + $0x90] sm:$0xff] %vm12561_vm0, %v3917_v25  ;;  %v3818_v21 = vsel %vm11287_vm13, %v8877_v26, 0.0  ;;  %v3698_v4 = vpop.f32.mrb[51].mxu0  ;;  %v322_v25 = vadd.s32 200, %v10791_v27 }
 0x259   : > { %9085 = vmatmul.mubr.msk.f32.gmra.mrb[72].mxu0 %vm12604_vm15, %v11279_v47  ;;  %v11296_v22 = vld [vmem:[#allocation3 + $0x68] sm:$0xff]  ;;  %vm12608_vm1 = vmmov %vm12561_vm0  ;;  %12614 = vst [vmem:[#allocation30_spill] sm:$0xff] %v12613_v51  ;;  %v3918_v57 = vmax.f32 %v3886_v35, 0.0  ;;  %v3850_v55 = vadd.f32 %v3818_v21, %v10943_v15  ;;  %v3849_v26 = vadd.f32 %v3698_v4, %v10950_v7  ;;  %vm11345_vm13 = vcmp.ne.s32.totalorder %v494_v18, 15 }
 0x25a   : > { %3955 = vst.msk [vmem:[#allocation3 + $0x88] sm:$0xff] %vm12608_vm1, %v3916_v45  ;;  %vm12609_vm14 = vmmov %vm12561_vm0  ;;  %v3919_v45 = vmax.f32 %v3887_v44, 0.0  ;;  %v12620_v21 = vmov 0  ;;  %v508_v4 = vand.u32 15, %v322_v25 }
 0x25b   : > { %8919 = vmatprep.mubr.msk.f32.mxu1 %vm12609_vm14, %v11294_v14  ;;  %vm12610_vm15 = vmmov %vm12561_vm0  ;;  %v3889_v29 = vadd.f32 %v11071_v11, %v3850_v55  ;;  %v3888_v46 = vadd.f32 %v11071_v11, %v3849_v26  ;;  %v8880_v44 = vpop.f32.mrb[52].mxu0  ;;  %v12621_v21 = vsel %vm11345_vm13, 4294967295, %v12620_v21 }
 0x25c   : > { %9087 = vmatprep.mubr.msk.f32.mxu0 %vm12610_vm15, %v11296_v22  ;;  %8920 = vmatmul.mubr.msk.f32.gmra.mrb[42].mxu1 %vm12561_vm0, %v11298_v60  ;;  %vm12611_vm1 = vmmov %vm12561_vm0  ;;  %v11337_v15 = vld [vmem:[#allocation3 + $0x80] sm:$0xff]  ;;  %v3820_v7 = vsel %vm11316_vm12, %v8880_v44, 0.0  ;;  %v3708_v35 = vpop.f32.mrb[53].mxu0  ;;  %12622 = vst [vmem:[#allocation31_spill] sm:$0xff] %v12621_v21  ;;  %vm11374_vm12 = vcmp.ne.s32.totalorder %v508_v4, 15 }
 0x25d   : > { %9088 = vmatmul.mubr.msk.f32.gmra.mrb[74].mxu0 %vm12611_vm1, %v11308_v3  ;;  %v11323_v38 = vld [vmem:[#allocation3 + $0x77] sm:$0xff]  ;;  %v11327_v30 = vld [vmem:[#allocation3 + $0x7f] sm:$0xff]  ;;  %vm12615_vm14 = vmmov %vm12561_vm0  ;;  %v3920_v55 = vmax.f32 %v3888_v46, 0.0  ;;  %v3852_v26 = vadd.f32 %v3820_v7, %v10957_v34  ;;  %v3851_v44 = vadd.f32 %v3708_v35, %v10962_v10  ;;  %v12627_v7 = vmov 0 }
 0x25e   : > { %v11325_v41 = vld [vmem:[#allocation3 + $0x78] sm:$0xff]  ;;  %3958 = vst.msk [vmem:[#allocation3 + $0xa0] sm:$0xff] %vm12615_vm14, %v3919_v45  ;;  %vm12616_vm15 = vmmov %vm12561_vm0  ;;  %8922 = vmatprep.mubr.msk.f32.mxu1 %vm12561_vm0, %v11323_v38  ;;  %v324_v45 = vadd.s32 216, %v10791_v27  ;;  %v12628_v7 = vsel %vm11374_vm12, 4294967295, %v12627_v7 }
 0x25f   : > { %3957 = vst.msk [vmem:[#allocation3 + $0x98] sm:$0xff] %vm12616_vm15, %v3918_v57  ;;  %vm12617_vm1 = vmmov %vm12561_vm0  ;;  %v3921_v57 = vmax.f32 %v3889_v29, 0.0  ;;  %v3891_v18 = vadd.f32 %v11071_v11, %v3852_v26  ;;  %v3890_v25 = vadd.f32 %v11071_v11, %v3851_v44  ;;  %v8883_v29 = vpop.f32.mrb[54].mxu0  ;;  %v11366_v34 = vld [vmem:[#allocation3 + $0x90] sm:$0xff] }
 0x260   : > { %9090 = vmatprep.mubr.msk.f32.mxu0 %vm12617_vm1, %v11325_v41  ;;  %vm12618_vm14 = vmmov %vm12561_vm0  ;;  %v3822_v10 = vsel %vm11345_vm13, %v8883_v29, 0.0  ;;  %v3718_v46 = vpop.f32.mrb[55].mxu0  ;;  %12629 = vst [vmem:[#allocation32_spill] sm:$0xff] %v12628_v7  ;;  %v522_v35 = vand.u32 15, %v324_v45 }
 0x261   : > { %8923 = vmatmul.mubr.msk.f32.gmra.mrb[44].mxu1 %vm12618_vm14, %v11327_v30  ;;  %vm12619_vm15 = vmmov %vm12561_vm0  ;;  %v11352_v51 = vld [vmem:[#allocation3 + $0x87] sm:$0xff]  ;;  %v11356_v19 = vld [vmem:[#allocation3 + $0x8f] sm:$0xff]  ;;  %3960 = vst.msk [vmem:[#allocation3 + $0xb0] sm:$0xff] %vm12561_vm0, %v3921_v57  ;;  %v326_v57 = vadd.s32 232, %v10791_v27  ;;  %v3922_v26 = vmax.f32 %v3890_v25, 0.0  ;;  %v3854_v44 = vadd.f32 %v3822_v10, %v10969_v48  ;;  %v3853_v29 = vadd.f32 %v3718_v46, %v10973_v1 }
 0x262   : > { %9091 = vmatmul.mubr.msk.f32.gmra.mrb[76].mxu0 %vm12619_vm15, %v11337_v15  ;;  %v11354_v28 = vld [vmem:[#allocation3 + $0x88] sm:$0xff]  ;;  %vm12623_vm1 = vmmov %vm12561_vm0  ;;  %vm11403_vm13 = vcmp.ne.s32.totalorder %v522_v35, 15  ;;  %v12635_v10 = vmov 0 }
 0x263   : > { %3959 = vst.msk [vmem:[#allocation3 + $0xa8] sm:$0xff] %vm12623_vm1, %v3920_v55  ;;  %vm12624_vm14 = vmmov %vm12561_vm0  ;;  %v3923_v55 = vmax.f32 %v3891_v18, 0.0  ;;  %v3893_v4 = vadd.f32 %v11071_v11, %v3854_v44  ;;  %v3892_v45 = vadd.f32 %v11071_v11, %v3853_v29  ;;  %v8886_v18 = vpop.f32.mrb[56].mxu0  ;;  %v12636_v10 = vsel %vm11403_vm13, 4294967295, %v12635_v10 }
 0x264   : > { %8925 = vmatprep.mubr.msk.f32.mxu1 %vm12624_vm14, %v11352_v51  ;;  %vm12625_vm15 = vmmov %vm12561_vm0  ;;  %v3824_v1 = vsel %vm11374_vm12, %v8886_v18, 0.0  ;;  %v3728_v25 = vpop.f32.mrb[57].mxu0  ;;  %12637 = vst [vmem:[#allocation33_spill] sm:$0xff] %v12636_v10  ;;  %v536_v46 = vand.u32 15, %v326_v57 }
 0x265   : > { %9093 = vmatprep.mubr.msk.f32.mxu0 %vm12625_vm15, %v11354_v28  ;;  %8926 = vmatmul.mubr.msk.f32.gmra.mrb[46].mxu1 %vm12561_vm0, %v11356_v19  ;;  %vm12626_vm1 = vmmov %vm12561_vm0  ;;  %v11395_v48 = vld [vmem:[#allocation3 + $0xa0] sm:$0xff]  ;;  %v3924_v44 = vmax.f32 %v3892_v45, 0.0  ;;  %v3856_v29 = vadd.f32 %v3824_v1, %v10980_v5  ;;  %v3855_v18 = vadd.f32 %v3728_v25, %v10984_v54  ;;  %v12642_v45 = vmov 0 }
 0x266   : > { %9094 = vmatmul.mubr.msk.f32.gmra.mrb[78].mxu0 %vm12626_vm1, %v11366_v34  ;;  %v11381_v21 = vld [vmem:[#allocation3 + $0x97] sm:$0xff]  ;;  %v11385_v40 = vld [vmem:[#allocation3 + $0x9f] sm:$0xff]  ;;  %vm12630_vm14 = vmmov %vm12561_vm0  ;;  %vm11432_vm12 = vcmp.ne.s32.totalorder %v536_v46, 15 }
 0x267   : > { %v11383_v50 = vld [vmem:[#allocation3 + $0x98] sm:$0xff]  ;;  %3962 = vst.msk [vmem:[#allocation3 + $0xc0] sm:$0xff] %vm12630_vm14, %v3923_v55  ;;  %vm12631_vm15 = vmmov %vm12561_vm0  ;;  %8928 = vmatprep.mubr.msk.f32.mxu1 %vm12561_vm0, %v11381_v21  ;;  %v328_v55 = vadd.s32 248, %v10791_v27  ;;  %v3895_v35 = vadd.f32 %v11071_v11, %v3856_v29  ;;  %v3894_v27 = vadd.f32 %v11071_v11, %v3855_v18  ;;  %v8889_v57 = vpop.f32.mrb[58].mxu0  ;;  %v12643_v45 = vsel %vm11432_vm12, 4294967295, %v12642_v45 }
 0x268   : > { %3961 = vst.msk [vmem:[#allocation3 + $0xb8] sm:$0xff] %vm12631_vm15, %v3922_v26  ;;  %vm12632_vm1 = vmmov %vm12561_vm0  ;;  %v3925_v26 = vmax.f32 %v3893_v4, 0.0  ;;  %v11424_v5 = vld [vmem:[#allocation3 + $0xb0] sm:$0xff]  ;;  %v3826_v54 = vsel %vm11403_vm13, %v8889_v57, 0.0  ;;  %v3738_v4 = vpop.f32.mrb[59].mxu0 }
 0x269   : > { %9096 = vmatprep.mubr.msk.f32.mxu0 %vm12632_vm1, %v11383_v50  ;;  %vm12633_vm14 = vmmov %vm12561_vm0  ;;  %12644 = vst [vmem:[#allocation34_spill] sm:$0xff] %v12643_v45  ;;  %v550_v1 = vand.u32 15, %v328_v55  ;;  %v3927_v25 = vmax.f32 %v3895_v35, 0.0  ;;  %v3857_v29 = vadd.f32 %v3738_v4, %v10995_v37 }
 0x26a   : > { %8929 = vmatmul.mubr.msk.f32.gmra.mrb[48].mxu1 %vm12633_vm14, %v11385_v40  ;;  %vm12634_vm15 = vmmov %vm12561_vm0  ;;  %v11410_v7 = vld [vmem:[#allocation3 + $0xa7] sm:$0xff]  ;;  %v11414_v53 = vld [vmem:[#allocation3 + $0xaf] sm:$0xff]  ;;  %3964 = vst.msk [vmem:[#allocation3 + $0xd0] sm:$0xff] %vm12561_vm0, %v3925_v26  ;;  %v3926_v26 = vmax.f32 %v3894_v27, 0.0 }
 0x26b   : > { %9097 = vmatmul.mubr.msk.f32.gmra.mrb[80].mxu0 %vm12634_vm15, %v11395_v48  ;;  %v11412_v32 = vld [vmem:[#allocation3 + $0xa8] sm:$0xff]  ;;  %vm12638_vm1 = vmmov %vm12561_vm0  ;;  %v3896_v55 = vadd.f32 %v11071_v11, %v3857_v29  ;;  %v8892_v35 = vpop.f32.mrb[60].mxu0  ;;  %vm11460_vm13 = vcmp.ne.s32.totalorder %v550_v1, 15 }
 0x26c   : > { %3963 = vst.msk [vmem:[#allocation3 + $0xc8] sm:$0xff] %vm12638_vm1, %v3924_v44  ;;  %vm12639_vm14 = vmmov %vm12561_vm0  ;;  %v3858_v44 = vadd.f32 %v3826_v54, %v10991_v0  ;;  %v3828_v37 = vsel %vm11432_vm12, %v8892_v35, 0.0  ;;  %v3748_v27 = vpop.f32.mrb[61].mxu0  ;;  %v12651_v54 = vmov 0 }
 0x26d   : > { %8931 = vmatprep.mubr.msk.f32.mxu1 %vm12639_vm14, %v11410_v7  ;;  %vm12640_vm15 = vmmov %vm12561_vm0  ;;  %v12652_v54 = vsel %vm11460_vm13, 4294967295, %v12651_v54 }
 0x26e   : > { %9099 = vmatprep.mubr.msk.f32.mxu0 %vm12640_vm15, %v11412_v32  ;;  %8932 = vmatmul.mubr.msk.f32.gmra.mrb[50].mxu1 %vm12561_vm0, %v11414_v53  ;;  %vm12641_vm1 = vmmov %vm12561_vm0  ;;  %v3897_v46 = vadd.f32 %v11071_v11, %v3858_v44  ;;  %v11452_v0 = vld [vmem:[#allocation3 + $0xc0] sm:$0xff]  ;;  %12653 = vst [vmem:[#allocation36_spill] sm:$0xff] %v12652_v54  ;;  %v3859_v44 = vadd.f32 %v3748_v27, %v11005_v20 }
 0x26f   : > { %9100 = vmatmul.mubr.msk.f32.gmra.mrb[82].mxu0 %vm12641_vm1, %v11424_v5  ;;  %v11438_v18 = vld [vmem:[#allocation3 + $0xb7] sm:$0xff]  ;;  %v11442_v10 = vld [vmem:[#allocation3 + $0xbf] sm:$0xff]  ;;  %vm12645_vm14 = vmmov %vm12561_vm0  ;;  %12648 = vst [vmem:[#allocation35_spill] sm:$0xff] %v11452_v0 }
 0x270   : > { %v11440_v57 = vld [vmem:[#allocation3 + $0xb8] sm:$0xff]  ;;  %3966 = vst.msk [vmem:[#allocation3 + $0xe0] sm:$0xff] %vm12645_vm14, %v3927_v25  ;;  %vm12646_vm15 = vmmov %vm12561_vm0  ;;  %8934 = vmatprep.mubr.msk.f32.mxu1 %vm12561_vm0, %v11438_v18  ;;  %v3929_v4 = vmax.f32 %v3897_v46, 0.0  ;;  %v3928_v25 = vmax.f32 %v3896_v55, 0.0  ;;  %v8895_v46 = vpop.f32.mrb[62].mxu0 }
 0x271   : > { %3965 = vst.msk [vmem:[#allocation3 + $0xd8] sm:$0xff] %vm12646_vm15, %v3926_v26  ;;  %vm12647_vm1 = vmmov %vm12561_vm0  ;;  %v3860_v26 = vadd.f32 %v3828_v37, %v11001_v12  ;;  %v11480_v12 = vld [vmem:[#allocation3 + $0xd0] sm:$0xff]  ;;  %v3830_v20 = vsel %vm11460_vm13, %v8895_v46, 0.0  ;;  %v3758_v55 = vpop.f32.mrb[63].mxu0 }
 0x272   : > { %9102 = vmatprep.mubr.msk.f32.mxu0 %vm12647_vm1, %v11440_v57  ;;  %vm12649_vm14 = vmmov %vm12561_vm0  ;;  %3968 = vst.msk [vmem:[#allocation3 + $0xf0] sm:$0xff] %vm12561_vm0, %v3929_v4  ;;  %v3862_v4 = vadd.f32 %v3830_v20, %v11011_v6 }
 0x273   : > { %8935 = vmatmul.mubr.msk.f32.gmra.mrb[52].mxu1 %vm12649_vm14, %v11442_v10  ;;  %vm12650_vm15 = vmmov %vm12561_vm0  ;;  %v11466_v29 = vld [vmem:[#allocation3 + $0xc7] sm:$0xff]  ;;  %v11470_v45 = vld [vmem:[#allocation3 + $0xcf] sm:$0xff]  ;;  %v3899_v1 = vadd.f32 %v11071_v11, %v3860_v26 }
 0x274   : > { %9103 = vmatmul.mubr.msk.f32.gmra.mrb[84].mxu0 %vm12650_vm15, %v11452_v0  ;;  %v11468_v35 = vld [vmem:[#allocation3 + $0xc8] sm:$0xff]  ;;  %vm12655_vm1 = vmmov %vm12561_vm0  ;;  %v3898_v0 = vadd.f32 %v11071_v11, %v3859_v44  ;;  %v3901_v46 = vadd.f32 %v11071_v11, %v3862_v4 }
 0x275   : > { %12654 = vst [vmem:[#allocation37_spill] sm:$0xff] %v11468_v35  ;;  %3967 = vst.msk [vmem:[#allocation3 + $0xe8] sm:$0xff] %vm12655_vm1, %v3928_v25  ;;  %v3931_v37 = vmax.f32 %v3899_v1, 0.0  ;;  %v3861_v25 = vadd.f32 %v3758_v55, %v11015_v8 }
 0x276   : > { %vm12656_vm14 = vmmov %vm12561_vm0  ;;  %v3930_v27 = vmax.f32 %v3898_v0, 0.0  ;;  %v3933_v8 = vmax.f32 %v3901_v46, 0.0  ;;  %v4990_v46 = vld [vmem:[#allocation3 + $0x8] sm:$0xff] }
 0x277   : > { %8937 = vmatprep.mubr.msk.f32.mxu1 %vm12656_vm14, %v11466_v29  ;;  %vm12657_vm15 = vmmov %vm12561_vm0  ;;  %v3900_v54 = vadd.f32 %v11071_v11, %v3861_v25  ;;  %v11504_v6 = vld [vmem:[#allocation3 + $0xe0] sm:$0xff] }
 0x278   : > { %9105 = vmatprep.mubr.msk.f32.mxu0 %vm12657_vm15, %v11468_v35  ;;  %8938 = vmatmul.mubr.msk.f32.gmra.mrb[54].mxu1 %vm12561_vm0, %v11470_v45  ;;  %vm12658_vm1 = vmmov %vm12561_vm0  ;;  %v11490_v26 = vld [vmem:[#allocation3 + $0xd7] sm:$0xff]  ;;  %v11494_v35 = vld [vmem:[#allocation3 + $0xdf] sm:$0xff] }
 0x279   : > { %9106 = vmatmul.mubr.msk.f32.gmra.mrb[86].mxu0 %vm12658_vm1, %v11480_v12  ;;  %v11492_v44 = vld [vmem:[#allocation3 + $0xd8] sm:$0xff]  ;;  %vm12659_vm14 = vmmov %vm12561_vm0  ;;  %8940 = vmatprep.mubr.msk.f32.mxu1 %vm12561_vm0, %v11490_v26  ;;  %v3932_v0 = vmax.f32 %v3900_v54, 0.0  ;;  %v11522_v55 = vld [vmem:[#allocation3 + $0xf0] sm:$0xff] }
 0x27a   : > { %3970 = vst.msk [vmem:[#allocation3 + $0x100] sm:$0xff] %vm12659_vm14, %v3931_v37  ;;  %vm12660_vm15 = vmmov %vm12561_vm0  ;;  %v3973_v25 = vld [vmem:[#allocation3 + $0x7] sm:$0xff] }
 0x27b   : > { %3969 = vst.msk [vmem:[#allocation3 + $0xf8] sm:$0xff] %vm12660_vm15, %v3930_v27  ;;  %vm12661_vm1 = vmmov %vm12561_vm0 }
 0x27c   : > { %9108 = vmatprep.mubr.msk.f32.mxu0 %vm12661_vm1, %v11492_v44  ;;  %vm12662_vm13 = vmmov %vm12561_vm0  ;;  %v11510_v1 = vld [vmem:[#allocation3 + $0xe7] sm:$0xff]  ;;  %v11514_v11 = vld [vmem:[#allocation3 + $0xef] sm:$0xff]  ;;  %12669 = vst [vmem:[#allocation40_spill] sm:$0xff] %v11522_v55 }
 0x27d   : > { %8941 = vmatmul.mubr.msk.f32.gmra.mrb[56].mxu1 %vm12662_vm13, %v11494_v35  ;;  %vm12663_vm12 = vmmov %vm12561_vm0  ;;  %v11512_v20 = vld [vmem:[#allocation3 + $0xe8] sm:$0xff]  ;;  %12665 = vst [vmem:[#allocation39_spill] sm:$0xff] %v11514_v11 }
 0x27e   : > { %9109 = vmatmul.mubr.msk.f32.gmra.mrb[88].mxu0 %vm12663_vm12, %v11504_v6  ;;  %12664 = vst [vmem:[#allocation38_spill] sm:$0xff] %v11512_v20  ;;  %vm12666_vm14 = vmmov %vm12561_vm0  ;;  %8943 = vmatprep.mubr.msk.f32.mxu1 %vm12561_vm0, %v11510_v1 }
 0x27f   : > { %3972 = vst.msk [vmem:[#allocation3 + $0x110] sm:$0xff] %vm12666_vm14, %v3933_v8  ;;  %vm12667_vm15 = vmmov %vm12561_vm0 }
 0x280   : > { %3971 = vst.msk [vmem:[#allocation3 + $0x108] sm:$0xff] %vm12667_vm15, %v3932_v0  ;;  %vm12668_vm13 = vmmov %vm12561_vm0 }
 0x281   : > { %9111 = vmatprep.mubr.msk.f32.mxu0 %vm12668_vm13, %v11512_v20  ;;  %vm12670_vm12 = vmmov %vm12561_vm0  ;;  %v11538_v4 = vld [vmem:[#allocation3 + $0x100] sm:$0xff]  ;;  %v7679_v20 = vld [vmem:[%s12396_s3 + $0xf8] sm:$0xff] }
 0x282   : > { %8944 = vmatmul.mubr.msk.f32.gmra.mrb[58].mxu1 %vm12670_vm12, %v11514_v11  ;;  %vm12671_vm1 = vmmov %vm12561_vm0  ;;  %v11528_v54 = vld [vmem:[#allocation3 + $0xf7] sm:$0xff]  ;;  %v11532_v27 = vld [vmem:[#allocation3 + $0xff] sm:$0xff]  ;;  %12677 = vst [vmem:[#allocation44_spill] sm:$0xff] %v11538_v4 }
 0x283   : > { %9112 = vmatmul.mubr.msk.f32.gmra.mrb[90].mxu0 %vm12671_vm1, %v11522_v55  ;;  %12672 = vst [vmem:[#allocation41_spill] sm:$0xff] %v11528_v54  ;;  %v11530_v37 = vld [vmem:[#allocation3 + $0xf8] sm:$0xff]  ;;  %12674 = vst [vmem:[#allocation43_spill] sm:$0xff] %v11532_v27  ;;  %v7678_v11 = vld [vmem:[%s12396_s3 + $0xf0] sm:$0xff] }
 0x284   : > { %12673 = vst [vmem:[#allocation42_spill] sm:$0xff] %v11530_v37  ;;  %vm12675_vm14 = vmmov %vm12561_vm0 }
 0x285   : > { %8946 = vmatprep.mubr.msk.f32.mxu1 %vm12675_vm14, %v11528_v54  ;;  %vm12676_vm15 = vmmov %vm12561_vm0 }
 0x286   : > { %9114 = vmatprep.mubr.msk.f32.mxu0 %vm12676_vm15, %v11530_v37  ;;  %8947 = vmatmul.mubr.msk.f32.gmra.mrb[60].mxu1 %vm12561_vm0, %v11532_v27  ;;  %vm12678_vm13 = vmmov %vm12561_vm0  ;;  %v11554_v37 = vld [vmem:[#allocation3 + $0x110] sm:$0xff]  ;;  %v7571_v27 = vld [vmem:[%s12396_s3 + $0xd8] sm:$0xff] }
 0x287   : > { %9115 = vmatmul.mubr.msk.f32.gmra.mrb[92].mxu0 %vm12678_vm13, %v11538_v4  ;;  %v11544_v8 = vld [vmem:[#allocation3 + $0x107] sm:$0xff]  ;;  %v11548_v55 = vld [vmem:[#allocation3 + $0x10f] sm:$0xff]  ;;  %vm12681_vm12 = vmmov %vm12561_vm0 }
 0x288   : > { %12679 = vst [vmem:[#allocation45_spill] sm:$0xff] %v11544_v8  ;;  %v11546_v0 = vld [vmem:[#allocation3 + $0x108] sm:$0xff]  ;;  %8949 = vmatprep.mubr.msk.f32.mxu1 %vm12681_vm12, %v11544_v8  ;;  %vm12682_vm1 = vmmov %vm12561_vm0  ;;  %v7570_v4 = vld [vmem:[%s12396_s3 + $0xd0] sm:$0xff] }
 0x289   : > { %12680 = vst [vmem:[#allocation46_spill] sm:$0xff] %v11546_v0  ;;  %9117 = vmatprep.mubr.msk.f32.mxu0 %vm12682_vm1, %v11546_v0  ;;  %vm12683_vm14 = vmmov %vm12561_vm0  ;;  %v3974_v0 = vld [vmem:[#allocation3 + $0xf] sm:$0xff]  ;;  %v9420_v54 = vpack.c.bf16 %v7571_v27, %v7570_v4  ;;  %v7717_v27 = vld [vmem:[%s12396_s3 + $0xa8] sm:$0xff]  ;;  %v9444_v4 = vpack.c.bf16 %v7679_v20, %v7678_v11 }
 0x28a   : > { %8950 = vmatmul.mubr.msk.f32.gmra.mrb[62].mxu1 %vm12683_vm14, %v11548_v55  ;;  %vm12684_vm15 = vmmov %vm12561_vm0  ;;  %v4991_v8 = vld [vmem:[#allocation3 + $0x10] sm:$0xff]  ;;  %v7718_v11 = vld [vmem:[%s12396_s3 + $0xb0] sm:$0xff] }
 0x28b   : > { %9118 = vmatmul.mubr.msk.f32.gmra.mrb[94].mxu0 %vm12684_vm15, %v11554_v37  ;;  %8960 = vmatprep.mubr.msk.f32.mxu1 %vm12561_vm0, %v3973_v25  ;;  %vm12685_vm13 = vmmov %vm12561_vm0  ;;  %v7716_v25 = vld [vmem:[%s12396_s3 + $0xa0] sm:$0xff]  ;;  %v12743_v20 = vld [vmem:[#allocation42_spill] sm:$0xff] }
 0x28c   : > { %9128 = vmatprep.mubr.msk.f32.mxu0 %vm12685_vm13, %v4990_v46  ;;  %vm12686_vm12 = vmmov %vm12561_vm0  ;;  %v11588_v46 = vpack.c.bf16 %v7717_v27, %v7716_v25  ;;  %v7712_v27 = vld [vmem:[%s12396_s3 + $0x40] sm:$0xff] }
 0x28d   : > { %vm12687_vm1 = vmmov %vm12561_vm0 }
 0x28e   : > { %8961 = vmatmul.mubr.msk.f32.vlgmr.msra.gmra.mrb[32].mxu1 %vm12686_vm12, %v3974_v0  ;;  %vm12688_vm14 = vmmov %vm12561_vm0  ;;  %v12746_v0 = vld [vmem:[#allocation44_spill] sm:$0xff] }
 0x28f   : > { %9129 = vmatmul.mubr.msk.f32.vlgmr.msra.gmra.mrb[64].mxu0 %vm12687_vm1, %v4991_v8  ;;  %9419 = vmatpush3.bf16.msra.mxu1 %v11178_v23  ;;  %vm12689_vm15 = vmmov %vm12561_vm0  ;;  %v12739_v23 = vld [vmem:[#allocation40_spill] sm:$0xff]  ;;  %v12744_v8 = vld [vmem:[#allocation43_spill] sm:$0xff] }
 0x290   : > { %8963 = vmatprep.mubr.msk.f32.mxu1 %vm12688_vm14, %v11135_v61  ;;  %9131 = vmatprep.mubr.msk.f32.mxu0 %vm12689_vm15, %v11137_v33  ;;  %vm12690_vm13 = vmmov %vm12561_vm0  ;;  %v12725_v33 = vld [vmem:[#allocation35_spill] sm:$0xff]  ;;  %v12727_v61 = vld [vmem:[#allocation37_spill] sm:$0xff] }
 0x291   : > { %9421 = vmatprep.subr.bf16.mxu1 %v9420_v54  ;;  %9443 = vmatpush3.bf16.msra.mxu0 %v11180_v63  ;;  %vm12691_vm12 = vmmov %vm12561_vm0  ;;  %v12741_v63 = vld [vmem:[#allocation41_spill] sm:$0xff] }
 0x292   : > { %8964 = vmatmul.mubr.msk.f32.gmra.mrb[34].mxu1 %vm12561_vm0, %v11139_v39  ;;  %vm12692_vm1 = vmmov %vm12561_vm0  ;;  %9445 = vmatprep.subr.bf16.mxu0 %v9444_v4  ;;  %v12735_v39 = vld [vmem:[#allocation38_spill] sm:$0xff] }
 0x293   : > { %9132 = vmatmul.mubr.msk.f32.gmra.mrb[66].mxu0 %vm12690_vm13, %v11149_v17  ;;  %8966 = vmatprep.mubr.msk.f32.mxu1 %vm12691_vm12, %v11172_v62  ;;  %vm12693_vm14 = vmmov %vm12561_vm0  ;;  %v12737_v17 = vld [vmem:[#allocation39_spill] sm:$0xff] }
 0x294   : > { %9134 = vmatprep.mubr.msk.f32.mxu0 %vm12692_vm1, %v11174_v42  ;;  %9423 = vmatpush3.bf16.msra.mxu1 %v9420_v54  ;;  %vm12694_vm15 = vmmov %vm12561_vm0  ;;  %v7719_v54 = vld [vmem:[%s12396_s3 + $0xb8] sm:$0xff] }
 0x295   : > { %9447 = vmatpush3.bf16.msra.mxu0 %v9444_v4  ;;  %9449 = vmatprep.subr.bf16.mxu1 %v11588_v46  ;;  %vm12695_vm13 = vmmov %vm12561_vm0  ;;  %v9452_v25 = vpack.c.bf16 %v7719_v54, %v7718_v11  ;;  %v7713_v4 = vld [vmem:[%s12396_s3 + $0x48] sm:$0xff] }
 0x296   : > { %8967 = vmatmul.mubr.msk.f32.gmra.mrb[36].mxu1 %vm12693_vm14, %v11176_v16  ;;  %vm12696_vm12 = vmmov %vm12561_vm0 }
 0x297   : > { %9135 = vmatmul.mubr.msk.f32.gmra.mrb[68].mxu0 %vm12694_vm15, %v11190_v52  ;;  %8969 = vmatprep.mubr.msk.f32.mxu1 %vm12561_vm0, %v11205_v9  ;;  %vm12697_vm1 = vmmov %vm12561_vm0 }
 0x298   : > { %9137 = vmatprep.mubr.msk.f32.mxu0 %vm12695_vm13, %v11207_v56  ;;  %vm12699_vm14 = vmmov %vm12561_vm0 }
 0x299   : > { %vm12700_vm15 = vmmov %vm12561_vm0 }
 0x29a   : > { %8970 = vmatmul.mubr.msk.f32.gmra.mrb[38].mxu1 %vm12696_vm12, %v11209_v13  ;;  %vm12701_vm13 = vmmov %vm12561_vm0 }
 0x29b   : > { %9138 = vmatmul.mubr.msk.f32.gmra.mrb[70].mxu0 %vm12697_vm1, %v11221_v31  ;;  %8972 = vmatprep.mubr.msk.f32.mxu1 %vm12698_vm11, %v11236_v49  ;;  %vm12702_vm12 = vmmov %vm12561_vm0 }
 0x29c   : > { %9140 = vmatprep.mubr.msk.f32.mxu0 %vm12699_vm14, %v11238_v58  ;;  %vm12703_vm1 = vmmov %vm12561_vm0 }
 0x29d   : > { %vm12704_vm11 = vmmov %vm12561_vm0 }
 0x29e   : > { %8973 = vmatmul.mubr.msk.f32.gmra.mrb[40].mxu1 %vm12700_vm15, %v11240_v2  ;;  %vm12705_vm14 = vmmov %vm12561_vm0 }
 0x29f   : > { %9141 = vmatmul.mubr.msk.f32.gmra.mrb[72].mxu0 %vm12561_vm0, %v11250_v36  ;;  %8975 = vmatprep.mubr.msk.f32.mxu1 %vm12701_vm13, %v11265_v24  ;;  %vm12706_vm15 = vmmov %vm12561_vm0 }
 0x2a0   : > { %9143 = vmatprep.mubr.msk.f32.mxu0 %vm12702_vm12, %v11267_v43  ;;  %vm12707_vm13 = vmmov %vm12561_vm0 }
 0x2a1   : > { %vm12708_vm12 = vmmov %vm12561_vm0 }
 0x2a2   : > { %8976 = vmatmul.mubr.msk.f32.gmra.mrb[42].mxu1 %vm12703_vm1, %v11269_v59  ;;  %vm12709_vm1 = vmmov %vm12561_vm0 }
 0x2a3   : > { %9144 = vmatmul.mubr.msk.f32.gmra.mrb[74].mxu0 %vm12704_vm11, %v11279_v47  ;;  %8978 = vmatprep.mubr.msk.f32.mxu1 %vm12705_vm14, %v11294_v14  ;;  %vm12710_vm11 = vmmov %vm12561_vm0 }
 0x2a4   : > { %9146 = vmatprep.mubr.msk.f32.mxu0 %vm12706_vm15, %v11296_v22  ;;  %vm12711_vm14 = vmmov %vm12561_vm0 }
 0x2a5   : > { %vm12712_vm15 = vmmov %vm12561_vm0 }
 0x2a6   : > { %8979 = vmatmul.mubr.msk.f32.gmra.mrb[44].mxu1 %vm12561_vm0, %v11298_v60 }
 0x2a7   : > { %9147 = vmatmul.mubr.msk.f32.gmra.mrb[76].mxu0 %vm12707_vm13, %v11308_v3  ;;  %8981 = vmatprep.mubr.msk.f32.mxu1 %vm12708_vm12, %v11323_v38  ;;  %vm12713_vm13 = vmmov %vm12561_vm0 }
 0x2a8   : > { %9149 = vmatprep.mubr.msk.f32.mxu0 %vm12709_vm1, %v11325_v41  ;;  %vm12714_vm12 = vmmov %vm12561_vm0 }
 0x2a9   : > { %vm12715_vm1 = vmmov %vm12561_vm0 }
 0x2aa   : > { %8982 = vmatmul.mubr.msk.f32.gmra.mrb[46].mxu1 %vm12710_vm11, %v11327_v30  ;;  %vm12716_vm11 = vmmov %vm12561_vm0 }
 0x2ab   : > { %9150 = vmatmul.mubr.msk.f32.gmra.mrb[78].mxu0 %vm12711_vm14, %v11337_v15  ;;  %8984 = vmatprep.mubr.msk.f32.mxu1 %vm12712_vm15, %v11352_v51  ;;  %vm12717_vm14 = vmmov %vm12561_vm0 }
 0x2ac   : > { %9152 = vmatprep.mubr.msk.f32.mxu0 %vm12561_vm0, %v11354_v28  ;;  %vm12718_vm15 = vmmov %vm12561_vm0 }
 0x2ae   : > { %8985 = vmatmul.mubr.msk.f32.gmra.mrb[48].mxu1 %vm12713_vm13, %v11356_v19  ;;  %vm12719_vm13 = vmmov %vm12561_vm0 }
 0x2af   : > { %9153 = vmatmul.mubr.msk.f32.gmra.mrb[80].mxu0 %vm12714_vm12, %v11366_v34  ;;  %8987 = vmatprep.mubr.msk.f32.mxu1 %vm12715_vm1, %v11381_v21  ;;  %vm12720_vm12 = vmmov %vm12561_vm0 }
 0x2b0   : > { %9155 = vmatprep.mubr.msk.f32.mxu0 %vm12716_vm11, %v11383_v50  ;;  %vm12721_vm1 = vmmov %vm12561_vm0 }
 0x2b1   : > { %vm12722_vm11 = vmmov %vm12561_vm0 }
 0x2b2   : > { %8988 = vmatmul.mubr.msk.f32.gmra.mrb[50].mxu1 %vm12717_vm14, %v11385_v40  ;;  %vm12723_vm14 = vmmov %vm12561_vm0 }
 0x2b3   : > { %9156 = vmatmul.mubr.msk.f32.gmra.mrb[82].mxu0 %vm12718_vm15, %v11395_v48  ;;  %8990 = vmatprep.mubr.msk.f32.mxu1 %vm12561_vm0, %v11410_v7  ;;  %vm12724_vm15 = vmmov %vm12561_vm0 }
 0x2b4   : > { %9158 = vmatprep.mubr.msk.f32.mxu0 %vm12719_vm13, %v11412_v32  ;;  %vm12726_vm13 = vmmov %vm12561_vm0 }
 0x2b6   : > { %8991 = vmatmul.mubr.msk.f32.gmra.mrb[52].mxu1 %vm12720_vm12, %v11414_v53  ;;  %vm12728_vm12 = vmmov %vm12561_vm0 }
 0x2b7   : > { %9159 = vmatmul.mubr.msk.f32.gmra.mrb[84].mxu0 %vm12721_vm1, %v11424_v5  ;;  %8993 = vmatprep.mubr.msk.f32.mxu1 %vm12722_vm11, %v11438_v18  ;;  %vm12729_vm1 = vmmov %vm12561_vm0 }
 0x2b8   : > { %9161 = vmatprep.mubr.msk.f32.mxu0 %vm12723_vm14, %v11440_v57  ;;  %vm12730_vm11 = vmmov %vm12561_vm0 }
 0x2b9   : > { %vm12731_vm14 = vmmov %vm12561_vm0 }
 0x2ba   : > { %8994 = vmatmul.mubr.msk.f32.gmra.mrb[54].mxu1 %vm12724_vm15, %v11442_v10  ;;  %vm12732_vm15 = vmmov %vm12561_vm0 }
 0x2bb   : > { %9162 = vmatmul.mubr.msk.f32.gmra.mrb[86].mxu0 %vm12561_vm0, %v12725_v33  ;;  %8996 = vmatprep.mubr.msk.f32.mxu1 %vm12726_vm13, %v11466_v29  ;;  %vm12733_vm13 = vmmov %vm12561_vm0 }
 0x2bc   : > { %9164 = vmatprep.mubr.msk.f32.mxu0 %vm12728_vm12, %v12727_v61  ;;  %vm12734_vm12 = vmmov %vm12561_vm0 }
 0x2be   : > { %8997 = vmatmul.mubr.msk.f32.gmra.mrb[56].mxu1 %vm12729_vm1, %v11470_v45  ;;  %vm12736_vm1 = vmmov %vm12561_vm0 }
 0x2bf   : > { %9165 = vmatmul.mubr.msk.f32.gmra.mrb[88].mxu0 %vm12730_vm11, %v11480_v12  ;;  %8999 = vmatprep.mubr.msk.f32.mxu1 %vm12731_vm14, %v11490_v26  ;;  %vm12738_vm11 = vmmov %vm12561_vm0 }
 0x2c0   : > { %9167 = vmatprep.mubr.msk.f32.mxu0 %vm12732_vm15, %v11492_v44  ;;  %vm12740_vm14 = vmmov %vm12561_vm0 }
 0x2c1   : > { %vm12742_vm15 = vmmov %vm12561_vm0 }
 0x2c2   : > { %9000 = vmatmul.mubr.msk.f32.gmra.mrb[58].mxu1 %vm12561_vm0, %v11494_v35 }
 0x2c3   : > { %9168 = vmatmul.mubr.msk.f32.gmra.mrb[90].mxu0 %vm12733_vm13, %v11504_v6  ;;  %9002 = vmatprep.mubr.msk.f32.mxu1 %vm12734_vm12, %v11510_v1  ;;  %vm12745_vm13 = vmmov %vm12561_vm0 }
 0x2c4   : > { %9170 = vmatprep.mubr.msk.f32.mxu0 %vm12736_vm1, %v12735_v39  ;;  %vm12747_vm12 = vmmov %vm12561_vm0 }
 0x2c5   : > { %vm12748_vm1 = vmmov %vm12561_vm0 }
 0x2c6   : > { %9003 = vmatmul.mubr.msk.f32.gmra.mrb[60].mxu1 %vm12738_vm11, %v12737_v17  ;;  %vm12749_vm11 = vmmov %vm12561_vm0 }
 0x2c7   : > { %9171 = vmatmul.mubr.msk.f32.gmra.mrb[92].mxu0 %vm12740_vm14, %v12739_v23  ;;  %9005 = vmatprep.mubr.msk.f32.mxu1 %vm12742_vm15, %v12741_v63  ;;  %vm12750_vm14 = vmmov %vm12561_vm0 }
 0x2c8   : > { %9173 = vmatprep.mubr.msk.f32.mxu0 %vm12561_vm0, %v12743_v20  ;;  %vm12751_vm15 = vmmov %vm12561_vm0 }
 0x2ca   : > { %9006 = vmatmul.mubr.msk.f32.gmra.mrb[62].mxu1 %vm12745_vm13, %v12744_v8  ;;  %vm12752_vm13 = vmmov %vm12561_vm0 }
 0x2cb   : > { %9174 = vmatmul.mubr.msk.f32.gmra.mrb[94].mxu0 %vm12747_vm12, %v12746_v0  ;;  %9016 = vmatprep.mubr.msk.f32.mxu1 %vm12748_vm1, %v11172_v62  ;;  %vm12753_vm12 = vmmov %vm12561_vm0  ;;  %v7784_v62 = vld [vmem:[%s12396_s3 + $0x100] sm:$0xff] }
 0x2cc   : > { %9184 = vmatprep.mubr.msk.f32.mxu0 %vm12749_vm11, %v11174_v42  ;;  %v11732_v42 = vpack.c.bf16 %v7713_v4, %v7712_v27  ;;  %vm12754_vm1 = vmmov %vm12561_vm0 }
 0x2cd   : > { %vm12755_vm11 = vmmov %vm12561_vm0 }
 0x2ce   : > { %9017 = vmatmul.mubr.msk.f32.vlgmr.msra.gmra.mrb[32].mxu1 %vm12750_vm14, %v11176_v16  ;;  %vm12756_vm14 = vmmov %vm12561_vm0  ;;  %v11867_v16 = vld [vmem:[#allocation3 + $0x29] sm:$0xff] }
 0x2cf   : > { %9185 = vmatmul.mubr.msk.f32.vlgmr.msra.gmra.mrb[64].mxu0 %vm12751_vm15, %v11190_v52  ;;  %9451 = vmatpush3.bf16.msra.mxu1 %v11588_v46  ;;  %vm12757_vm15 = vmmov %vm12561_vm0  ;;  %v6009_v46 = vld [vmem:[#allocation3 + $0x11] sm:$0xff] }
 0x2d0   : > { %9019 = vmatprep.mubr.msk.f32.mxu1 %vm12561_vm0, %v11205_v9  ;;  %9187 = vmatprep.mubr.msk.f32.mxu0 %vm12752_vm13, %v11207_v56  ;;  %vm12758_vm13 = vmmov %vm12561_vm0  ;;  %v11878_v9 = vld [vmem:[#allocation3 + $0x39] sm:$0xff]  ;;  %v11883_v56 = vld [vmem:[#allocation3 + $0x41] sm:$0xff] }
 0x2d1   : > { %9453 = vmatprep.subr.bf16.mxu1 %v9452_v25 }
 0x2d2   : > { %9020 = vmatmul.mubr.msk.f32.gmra.mrb[34].mxu1 %vm12753_vm12, %v11209_v13  ;;  %vm12759_vm12 = vmmov %vm12561_vm0  ;;  %v11887_v13 = vld [vmem:[#allocation3 + $0x49] sm:$0xff] }
 0x2d3   : > { %9188 = vmatmul.mubr.msk.f32.gmra.mrb[66].mxu0 %vm12754_vm1, %v11221_v31  ;;  %9022 = vmatprep.mubr.msk.f32.mxu1 %vm12755_vm11, %v11236_v49  ;;  %vm12760_vm1 = vmmov %vm12561_vm0  ;;  %v11891_v31 = vld [vmem:[#allocation3 + $0x51] sm:$0xff]  ;;  %v11899_v49 = vld [vmem:[#allocation3 + $0x61] sm:$0xff] }
 0x2d4   : > { %9190 = vmatprep.mubr.msk.f32.mxu0 %vm12756_vm14, %v11238_v58  ;;  %9455 = vmatpush3.bf16.msra.mxu1 %v9452_v25  ;;  %vm12761_vm11 = vmmov %vm12561_vm0  ;;  %v11903_v58 = vld [vmem:[#allocation3 + $0x69] sm:$0xff] }
 0x2d5   : > { %9457 = vmatprep.subr.bf16.mxu1 %v11732_v42  ;;  %vm12762_vm14 = vmmov %vm12561_vm0 }
 0x2d6   : > { %9023 = vmatmul.mubr.msk.f32.gmra.mrb[36].mxu1 %vm12757_vm15, %v11240_v2  ;;  %vm12763_vm15 = vmmov %vm12561_vm0  ;;  %v11874_v2 = vld [vmem:[#allocation3 + $0x31] sm:$0xff] }
 0x2d7   : > { %9191 = vmatmul.mubr.msk.f32.gmra.mrb[68].mxu0 %vm12561_vm0, %v11250_v36  ;;  %9025 = vmatprep.mubr.msk.f32.mxu1 %vm12758_vm13, %v11265_v24  ;;  %vm12764_vm13 = vmmov %vm12561_vm0  ;;  %v11895_v24 = vld [vmem:[#allocation3 + $0x59] sm:$0xff]  ;;  %v11907_v36 = vld [vmem:[#allocation3 + $0x71] sm:$0xff] }
 0x2d8   : > { %9193 = vmatprep.mubr.msk.f32.mxu0 %vm12759_vm12, %v11267_v43  ;;  %vm12765_vm12 = vmmov %vm12561_vm0  ;;  %v7785_v43 = vld [vmem:[%s12396_s3 + $0x108] sm:$0xff] }
 0x2d9   : > { %v11872_v52 = vpack.c.bf16 %v7785_v43, %v7784_v62 }
 0x2da   : > { %9026 = vmatmul.mubr.msk.f32.gmra.mrb[38].mxu1 %vm12760_vm1, %v11269_v59  ;;  %vm12766_vm1 = vmmov %vm12561_vm0  ;;  %v11857_v59 = vld [vmem:[#allocation3 + $0x21] sm:$0xff] }
 0x2db   : > { %9194 = vmatmul.mubr.msk.f32.gmra.mrb[70].mxu0 %vm12761_vm11, %v11279_v47  ;;  %9028 = vmatprep.mubr.msk.f32.mxu1 %vm12762_vm14, %v11294_v14  ;;  %vm12767_vm11 = vmmov %vm12561_vm0  ;;  %v11911_v14 = vld [vmem:[#allocation3 + $0x79] sm:$0xff]  ;;  %v11915_v47 = vld [vmem:[#allocation3 + $0x81] sm:$0xff] }
 0x2dc   : > { %9196 = vmatprep.mubr.msk.f32.mxu0 %vm12763_vm15, %v11296_v22  ;;  %vm12768_vm14 = vmmov %vm12561_vm0 }
 0x2dd   : > { %vm12769_vm15 = vmmov %vm12561_vm0 }
 0x2de   : > { %9029 = vmatmul.mubr.msk.f32.gmra.mrb[40].mxu1 %vm12561_vm0, %v11298_v60  ;;  %v11853_v60 = vld [vmem:[#allocation3 + $0x19] sm:$0xff] }
 0x2df   : > { %9197 = vmatmul.mubr.msk.f32.gmra.mrb[72].mxu0 %vm12764_vm13, %v11308_v3  ;;  %9031 = vmatprep.mubr.msk.f32.mxu1 %vm12765_vm12, %v11323_v38  ;;  %vm12770_vm13 = vmmov %vm12561_vm0  ;;  %v11919_v38 = vld [vmem:[#allocation3 + $0x89] sm:$0xff]  ;;  %v11923_v3 = vld [vmem:[#allocation3 + $0x91] sm:$0xff] }
 0x2e0   : > { %9199 = vmatprep.mubr.msk.f32.mxu0 %vm12766_vm1, %v11325_v41  ;;  %vm12771_vm12 = vmmov %vm12561_vm0  ;;  %v7715_v41 = vld [vmem:[%s12396_s3 + $0x58] sm:$0xff] }
 0x2e1   : > { %vm12772_vm1 = vmmov %vm12561_vm0 }
 0x2e2   : > { %9032 = vmatmul.mubr.msk.f32.gmra.mrb[42].mxu1 %vm12767_vm11, %v11327_v30  ;;  %vm12773_vm11 = vmmov %vm12561_vm0  ;;  %v7714_v30 = vld [vmem:[%s12396_s3 + $0x50] sm:$0xff] }
 0x2e3   : > { %9200 = vmatmul.mubr.msk.f32.gmra.mrb[74].mxu0 %vm12768_vm14, %v11337_v15  ;;  %9034 = vmatprep.mubr.msk.f32.mxu1 %vm12769_vm15, %v11352_v51  ;;  %vm12774_vm14 = vmmov %vm12561_vm0  ;;  %v9460_v22 = vpack.c.bf16 %v7715_v41, %v7714_v30  ;;  %v11927_v51 = vld [vmem:[#allocation3 + $0x99] sm:$0xff]  ;;  %v11931_v15 = vld [vmem:[#allocation3 + $0xa1] sm:$0xff] }
 0x2e4   : > { %9202 = vmatprep.mubr.msk.f32.mxu0 %vm12561_vm0, %v11354_v28  ;;  %vm12775_vm15 = vmmov %vm12561_vm0  ;;  %v5617_v28 = vld [vmem:[#allocation3 + $0x120] sm:$0xff] }
 0x2e6   : > { %9035 = vmatmul.mubr.msk.f32.gmra.mrb[44].mxu1 %vm12770_vm13, %v11356_v19  ;;  %vm12776_vm13 = vmmov %vm12561_vm0  ;;  %v4599_v19 = vld [vmem:[#allocation3 + $0x11f] sm:$0xff] }
 0x2e7   : > { %9203 = vmatmul.mubr.msk.f32.gmra.mrb[76].mxu0 %vm12771_vm12, %v11366_v34  ;;  %9037 = vmatprep.mubr.msk.f32.mxu1 %vm12772_vm1, %v11381_v21  ;;  %vm12777_vm12 = vmmov %vm12561_vm0  ;;  %v11935_v21 = vld [vmem:[#allocation3 + $0xa9] sm:$0xff]  ;;  %v11939_v34 = vld [vmem:[#allocation3 + $0xb1] sm:$0xff] }
 0x2e8   : > { %9205 = vmatprep.mubr.msk.f32.mxu0 %vm12773_vm11, %v11383_v50  ;;  %vm12778_vm1 = vmmov %vm12561_vm0  ;;  %v4598_v50 = vld [vmem:[#allocation3 + $0x117] sm:$0xff] }
 0x2e9   : > { %vm12779_vm11 = vmmov %vm12561_vm0 }
 0x2ea   : > { %9038 = vmatmul.mubr.msk.f32.gmra.mrb[46].mxu1 %vm12774_vm14, %v11385_v40  ;;  %vm12780_vm14 = vmmov %vm12561_vm0  ;;  %v5616_v40 = vld [vmem:[#allocation3 + $0x118] sm:$0xff] }
 0x2eb   : > { %9206 = vmatmul.mubr.msk.f32.gmra.mrb[78].mxu0 %vm12775_vm15, %v11395_v48  ;;  %9040 = vmatprep.mubr.msk.f32.mxu1 %vm12561_vm0, %v11410_v7  ;;  %vm12781_vm15 = vmmov %vm12561_vm0  ;;  %v11943_v7 = vld [vmem:[#allocation3 + $0xb9] sm:$0xff]  ;;  %v11947_v48 = vld [vmem:[#allocation3 + $0xc1] sm:$0xff] }
 0x2ec   : > { %9208 = vmatprep.mubr.msk.f32.mxu0 %vm12776_vm13, %v11412_v32  ;;  %vm12782_vm13 = vmmov %vm12561_vm0  ;;  %v12798_v32 = vld [vmem:[#allocation46_spill] sm:$0xff] }
 0x2ee   : > { %9041 = vmatmul.mubr.msk.f32.gmra.mrb[48].mxu1 %vm12777_vm12, %v11414_v53  ;;  %vm12783_vm12 = vmmov %vm12561_vm0  ;;  %v12796_v53 = vld [vmem:[#allocation45_spill] sm:$0xff] }
 0x2ef   : > { %9209 = vmatmul.mubr.msk.f32.gmra.mrb[80].mxu0 %vm12778_vm1, %v11424_v5  ;;  %9043 = vmatprep.mubr.msk.f32.mxu1 %vm12779_vm11, %v11438_v18  ;;  %vm12784_vm1 = vmmov %vm12561_vm0  ;;  %v11955_v5 = vld [vmem:[#allocation3 + $0xd1] sm:$0xff]  ;;  %v11963_v18 = vld [vmem:[#allocation3 + $0xe1] sm:$0xff] }
 0x2f0   : > { %9211 = vmatprep.mubr.msk.f32.mxu0 %vm12780_vm14, %v11440_v57  ;;  %vm12785_vm11 = vmmov %vm12561_vm0  ;;  %v11967_v57 = vld [vmem:[#allocation3 + $0xe9] sm:$0xff] }
 0x2f1   : > { %vm12786_vm14 = vmmov %vm12561_vm0 }
 0x2f2   : > { %9044 = vmatmul.mubr.msk.f32.gmra.mrb[50].mxu1 %vm12781_vm15, %v11442_v10  ;;  %vm12787_vm15 = vmmov %vm12561_vm0  ;;  %v11951_v10 = vld [vmem:[#allocation3 + $0xc9] sm:$0xff] }
 0x2f3   : > { %9212 = vmatmul.mubr.msk.f32.gmra.mrb[82].mxu0 %vm12561_vm0, %v12725_v33  ;;  %9046 = vmatprep.mubr.msk.f32.mxu1 %vm12782_vm13, %v11466_v29  ;;  %vm12788_vm13 = vmmov %vm12561_vm0  ;;  %v11971_v29 = vld [vmem:[#allocation3 + $0xf1] sm:$0xff] }
 0x2f4   : > { %9214 = vmatprep.mubr.msk.f32.mxu0 %vm12783_vm12, %v12727_v61  ;;  %vm12789_vm12 = vmmov %vm12561_vm0 }
 0x2f6   : > { %9047 = vmatmul.mubr.msk.f32.gmra.mrb[52].mxu1 %vm12784_vm1, %v11470_v45  ;;  %vm12790_vm1 = vmmov %vm12561_vm0  ;;  %v11959_v45 = vld [vmem:[#allocation3 + $0xd9] sm:$0xff] }
 0x2f7   : > { %9215 = vmatmul.mubr.msk.f32.gmra.mrb[84].mxu0 %vm12785_vm11, %v11480_v12  ;;  %9049 = vmatprep.mubr.msk.f32.mxu1 %vm12786_vm14, %v11490_v26  ;;  %vm12791_vm11 = vmmov %vm12561_vm0  ;;  %v11979_v12 = vld [vmem:[#allocation3 + $0x101] sm:$0xff]  ;;  %v11983_v26 = vld [vmem:[#allocation3 + $0x109] sm:$0xff] }
 0x2f8   : > { %9217 = vmatprep.mubr.msk.f32.mxu0 %vm12787_vm15, %v11492_v44  ;;  %vm12792_vm14 = vmmov %vm12561_vm0  ;;  %v6008_v44 = vld [vmem:[#allocation3 + $0x9] sm:$0xff] }
 0x2f9   : > { %vm12793_vm15 = vmmov %vm12561_vm0 }
 0x2fa   : > { %9050 = vmatmul.mubr.msk.f32.gmra.mrb[54].mxu1 %vm12561_vm0, %v11494_v35  ;;  %v11975_v35 = vld [vmem:[#allocation3 + $0xf9] sm:$0xff] }
 0x2fb   : > { %9218 = vmatmul.mubr.msk.f32.gmra.mrb[86].mxu0 %vm12788_vm13, %v11504_v6  ;;  %9052 = vmatprep.mubr.msk.f32.mxu1 %vm12789_vm12, %v11510_v1  ;;  %vm12794_vm13 = vmmov %vm12561_vm0  ;;  %v11987_v6 = vld [vmem:[#allocation3 + $0x111] sm:$0xff]  ;;  %v7786_v1 = vld [vmem:[%s12396_s3 + $0x110] sm:$0xff] }
 0x2fc   : > { %9220 = vmatprep.mubr.msk.f32.mxu0 %vm12790_vm1, %v12735_v39  ;;  %vm12795_vm12 = vmmov %vm12561_vm0 }
 0x2fd   : > { %vm12797_vm1 = vmmov %vm12561_vm0 }
 0x2fe   : > { %9053 = vmatmul.mubr.msk.f32.gmra.mrb[56].mxu1 %vm12791_vm11, %v12737_v17  ;;  %vm12799_vm11 = vmmov %vm12561_vm0 }
 0x2ff   : > { %9221 = vmatmul.mubr.msk.f32.gmra.mrb[88].mxu0 %vm12792_vm14, %v12739_v23  ;;  %9055 = vmatprep.mubr.msk.f32.mxu1 %vm12793_vm15, %v12741_v63  ;;  %vm12800_vm14 = vmmov %vm12561_vm0 }
 0x300   : > { %9223 = vmatprep.mubr.msk.f32.mxu0 %vm12561_vm0, %v12743_v20  ;;  %vm12801_vm15 = vmmov %vm12561_vm0 }
 0x302   : > { %9056 = vmatmul.mubr.msk.f32.gmra.mrb[58].mxu1 %vm12794_vm13, %v12744_v8  ;;  %vm12802_vm13 = vmmov %vm12561_vm0 }
 0x303   : > { %9224 = vmatmul.mubr.msk.f32.gmra.mrb[90].mxu0 %vm12795_vm12, %v12746_v0  ;;  %9058 = vmatprep.mubr.msk.f32.mxu1 %vm12797_vm1, %v12796_v53  ;;  %vm12803_vm12 = vmmov %vm12561_vm0 }
 0x304   : > { %9226 = vmatprep.mubr.msk.f32.mxu0 %vm12799_vm11, %v12798_v32  ;;  %vm12804_vm1 = vmmov %vm12561_vm0 }
 0x305   : > { %vm12805_vm11 = vmmov %vm12561_vm0 }
 0x306   : > { %9059 = vmatmul.mubr.msk.f32.gmra.mrb[60].mxu1 %vm12800_vm14, %v11548_v55  ;;  %vm12806_vm14 = vmmov %vm12561_vm0  ;;  %v7787_v55 = vld [vmem:[%s12396_s3 + $0x118] sm:$0xff] }
 0x307   : > { %9227 = vmatmul.mubr.msk.f32.gmra.mrb[92].mxu0 %vm12801_vm15, %v11554_v37  ;;  %9061 = vmatprep.mubr.msk.f32.mxu1 %vm12561_vm0, %v4598_v50  ;;  %vm12807_vm15 = vmmov %vm12561_vm0  ;;  %v9468_v37 = vpack.c.bf16 %v7787_v55, %v7786_v1 }
 0x308   : > { %9229 = vmatprep.mubr.msk.f32.mxu0 %vm12802_vm13, %v5616_v40  ;;  %vm12808_vm13 = vmmov %vm12561_vm0 }
 0x30a   : > { %9062 = vmatmul.mubr.msk.f32.gmra.mrb[62].mxu1 %vm12803_vm12, %v4599_v19  ;;  %vm12809_vm12 = vmmov %vm12561_vm0 }
 0x30b   : > { %9230 = vmatmul.mubr.msk.f32.gmra.mrb[94].mxu0 %vm12804_vm1, %v5617_v28  ;;  %9240 = vmatprep.mubr.msk.f32.mxu1 %vm12805_vm11, %v11853_v60  ;;  %vm12810_vm1 = vmmov %vm12561_vm0 }
 0x30c   : > { %vm12811_vm11 = vmmov %vm12561_vm0 }
 0x30e   : > { %9241 = vmatmul.mubr.msk.f32.vlgmr.msra.gmra.mrb[64].mxu1 %vm12806_vm14, %v11857_v59  ;;  %vm12812_vm14 = vmmov %vm12561_vm0 }
 0x30f   : > { %9459 = vmatpush3.bf16.msra.mxu1 %v11732_v42  ;;  %9243 = vmatprep.mubr.msk.f32.mxu1 %vm12807_vm15, %v11867_v16  ;;  %vm12813_vm15 = vmmov %vm12561_vm0 }
 0x310   : > { %9461 = vmatprep.subr.bf16.mxu1 %v9460_v22 }
 0x312   : > { %9244 = vmatmul.mubr.msk.f32.gmra.mrb[66].mxu1 %vm12561_vm0, %v11874_v2 }
 0x313   : > { %9246 = vmatprep.mubr.msk.f32.mxu1 %vm12808_vm13, %v11878_v9  ;;  %9463 = vmatpush3.bf16.msra.mxu1 %v9460_v22  ;;  %vm12814_vm13 = vmmov %vm12561_vm0 }
 0x314   : > { %9465 = vmatprep.subr.bf16.mxu1 %v11872_v52 }
 0x316   : > { %9247 = vmatmul.mubr.msk.f32.gmra.mrb[68].mxu1 %vm12809_vm12, %v11883_v56  ;;  %vm12815_vm12 = vmmov %vm12561_vm0 }
 0x317   : > { %9249 = vmatprep.mubr.msk.f32.mxu1 %vm12810_vm1, %v11887_v13  ;;  %vm12816_vm1 = vmmov %vm12561_vm0 }
 0x31a   : > { %9250 = vmatmul.mubr.msk.f32.gmra.mrb[70].mxu1 %vm12811_vm11, %v11891_v31  ;;  %vm12817_vm11 = vmmov %vm12561_vm0 }
 0x31b   : > { %9252 = vmatprep.mubr.msk.f32.mxu1 %vm12812_vm14, %v11895_v24  ;;  %vm12818_vm14 = vmmov %vm12561_vm0 }
 0x31e   : > { %9253 = vmatmul.mubr.msk.f32.gmra.mrb[72].mxu1 %vm12813_vm15, %v11899_v49  ;;  %vm12819_vm15 = vmmov %vm12561_vm0 }
 0x31f   : > { %9255 = vmatprep.mubr.msk.f32.mxu1 %vm12561_vm0, %v11903_v58 }
 0x322   : > { %9256 = vmatmul.mubr.msk.f32.gmra.mrb[74].mxu1 %vm12814_vm13, %v11907_v36  ;;  %vm12820_vm13 = vmmov %vm12561_vm0 }
 0x323   : > { %9258 = vmatprep.mubr.msk.f32.mxu1 %vm12815_vm12, %v11911_v14  ;;  %vm12821_vm12 = vmmov %vm12561_vm0 }
 0x326   : > { %9259 = vmatmul.mubr.msk.f32.gmra.mrb[76].mxu1 %vm12816_vm1, %v11915_v47  ;;  %vm12822_vm1 = vmmov %vm12561_vm0 }
 0x327   : > { %9261 = vmatprep.mubr.msk.f32.mxu1 %vm12817_vm11, %v11919_v38  ;;  %vm12823_vm11 = vmmov %vm12561_vm0 }
 0x32a   : > { %9262 = vmatmul.mubr.msk.f32.gmra.mrb[78].mxu1 %vm12818_vm14, %v11923_v3  ;;  %vm12824_vm14 = vmmov %vm12561_vm0 }
 0x32b   : > { %9264 = vmatprep.mubr.msk.f32.mxu1 %vm12819_vm15, %v11927_v51  ;;  %vm12825_vm15 = vmmov %vm12561_vm0 }
 0x32e   : > { %9265 = vmatmul.mubr.msk.f32.gmra.mrb[80].mxu1 %vm12561_vm0, %v11931_v15 }
 0x32f   : > { %9267 = vmatprep.mubr.msk.f32.mxu1 %vm12820_vm13, %v11935_v21  ;;  %vm12826_vm13 = vmmov %vm12561_vm0 }
 0x332   : > { %9268 = vmatmul.mubr.msk.f32.gmra.mrb[82].mxu1 %vm12821_vm12, %v11939_v34  ;;  %vm12827_vm12 = vmmov %vm12561_vm0 }
 0x333   : > { %9270 = vmatprep.mubr.msk.f32.mxu1 %vm12822_vm1, %v11943_v7  ;;  %vm12828_vm1 = vmmov %vm12561_vm0 }
 0x336   : > { %9271 = vmatmul.mubr.msk.f32.gmra.mrb[84].mxu1 %vm12823_vm11, %v11947_v48  ;;  %vm12829_vm11 = vmmov %vm12561_vm0 }
 0x337   : > { %9273 = vmatprep.mubr.msk.f32.mxu1 %vm12824_vm14, %v11951_v10  ;;  %vm12830_vm14 = vmmov %vm12561_vm0 }
 0x33a   : > { %9274 = vmatmul.mubr.msk.f32.gmra.mrb[86].mxu1 %vm12825_vm15, %v11955_v5  ;;  %vm12831_vm15 = vmmov %vm12561_vm0 }
 0x33b   : > { %9276 = vmatprep.mubr.msk.f32.mxu1 %vm12561_vm0, %v11959_v45 }
 0x33e   : > { %9277 = vmatmul.mubr.msk.f32.gmra.mrb[88].mxu1 %vm12826_vm13, %v11963_v18  ;;  %vm12832_vm13 = vmmov %vm12561_vm0 }
 0x33f   : > { %9279 = vmatprep.mubr.msk.f32.mxu1 %vm12827_vm12, %v11967_v57  ;;  %vm12833_vm12 = vmmov %vm12561_vm0 }
 0x342   : > { %9280 = vmatmul.mubr.msk.f32.gmra.mrb[90].mxu1 %vm12828_vm1, %v11971_v29  ;;  %vm12834_vm1 = vmmov %vm12561_vm0 }
 0x343   : > { %9282 = vmatprep.mubr.msk.f32.mxu1 %vm12829_vm11, %v11975_v35  ;;  %vm12835_vm11 = vmmov %vm12561_vm0 }
 0x346   : > { %9283 = vmatmul.mubr.msk.f32.gmra.mrb[92].mxu1 %vm12830_vm14, %v11979_v12  ;;  %vm12836_vm14 = vmmov %vm12561_vm0 }
 0x347   : > { %9285 = vmatprep.mubr.msk.f32.mxu1 %vm12831_vm15, %v11983_v26  ;;  %vm12837_vm15 = vmmov %vm12561_vm0 }
 0x34a   : > { %9286 = vmatmul.mubr.msk.f32.gmra.mrb[94].mxu1 %vm12561_vm0, %v11987_v6 }
 0x34b   : > { %9296 = vmatprep.mubr.msk.f32.mxu1 %vm12832_vm13, %v6008_v44  ;;  %vm12838_vm13 = vmmov %vm12561_vm0 }
 0x34e   : > { %9297 = vmatmul.mubr.msk.f32.vlgmr.msra.gmra.mrb[64].mxu1 %vm12833_vm12, %v6009_v46  ;;  %vm12839_vm12 = vmmov %vm12561_vm0 }
 0x34f   : > { %9467 = vmatpush3.bf16.msra.mxu1 %v11872_v52  ;;  %9299 = vmatprep.mubr.msk.f32.mxu1 %vm12834_vm1, %v11853_v60  ;;  %vm12840_vm1 = vmmov %vm12561_vm0 }
 0x350   : > { %9469 = vmatprep.subr.bf16.mxu1 %v9468_v37 }
 0x352   : > { %9300 = vmatmul.mubr.msk.f32.gmra.mrb[66].mxu1 %vm12835_vm11, %v11857_v59  ;;  %vm12841_vm11 = vmmov %vm12561_vm0 }
 0x353   : > { %9302 = vmatprep.mubr.msk.f32.mxu1 %vm12836_vm14, %v11867_v16  ;;  %9471 = vmatpush3.bf16.msra.mxu1 %v9468_v37  ;;  %vm12842_vm14 = vmmov %vm12561_vm0 }
 0x356   : > { %9303 = vmatmul.mubr.msk.f32.gmra.mrb[68].mxu1 %vm12837_vm15, %v11874_v2  ;;  %vm12843_vm15 = vmmov %vm12561_vm0 }
 0x357   : > { %9305 = vmatprep.mubr.msk.f32.mxu1 %vm12561_vm0, %v11878_v9 }
 0x35a   : > { %9306 = vmatmul.mubr.msk.f32.gmra.mrb[70].mxu1 %vm12838_vm13, %v11883_v56  ;;  %vm12844_vm13 = vmmov %vm12561_vm0 }
 0x35b   : > { %9308 = vmatprep.mubr.msk.f32.mxu1 %vm12839_vm12, %v11887_v13  ;;  %vm12845_vm12 = vmmov %vm12561_vm0 }
 0x35e   : > { %9309 = vmatmul.mubr.msk.f32.gmra.mrb[72].mxu1 %vm12840_vm1, %v11891_v31  ;;  %vm12846_vm1 = vmmov %vm12561_vm0 }
 0x35f   : > { %9311 = vmatprep.mubr.msk.f32.mxu1 %vm12841_vm11, %v11895_v24  ;;  %vm12847_vm11 = vmmov %vm12561_vm0 }
 0x362   : > { %9312 = vmatmul.mubr.msk.f32.gmra.mrb[74].mxu1 %vm12842_vm14, %v11899_v49  ;;  %vm12848_vm14 = vmmov %vm12561_vm0 }
 0x363   : > { %9314 = vmatprep.mubr.msk.f32.mxu1 %vm12843_vm15, %v11903_v58  ;;  %vm12849_vm15 = vmmov %vm12561_vm0 }
 0x366   : > { %9315 = vmatmul.mubr.msk.f32.gmra.mrb[76].mxu1 %vm12561_vm0, %v11907_v36 }
 0x367   : > { %9317 = vmatprep.mubr.msk.f32.mxu1 %vm12844_vm13, %v11911_v14  ;;  %vm12850_vm13 = vmmov %vm12561_vm0 }
 0x36a   : > { %9318 = vmatmul.mubr.msk.f32.gmra.mrb[78].mxu1 %vm12845_vm12, %v11915_v47  ;;  %vm12851_vm12 = vmmov %vm12561_vm0 }
 0x36b   : > { %9320 = vmatprep.mubr.msk.f32.mxu1 %vm12846_vm1, %v11919_v38  ;;  %vm12852_vm1 = vmmov %vm12561_vm0 }
 0x36e   : > { %9321 = vmatmul.mubr.msk.f32.gmra.mrb[80].mxu1 %vm12847_vm11, %v11923_v3  ;;  %vm12853_vm11 = vmmov %vm12561_vm0 }
 0x36f   : > { %9323 = vmatprep.mubr.msk.f32.mxu1 %vm12848_vm14, %v11927_v51  ;;  %vm12854_vm14 = vmmov %vm12561_vm0 }
 0x372   : > { %9324 = vmatmul.mubr.msk.f32.gmra.mrb[82].mxu1 %vm12849_vm15, %v11931_v15  ;;  %vm12855_vm15 = vmmov %vm12561_vm0 }
 0x373   : > { %9326 = vmatprep.mubr.msk.f32.mxu1 %vm12561_vm0, %v11935_v21 }
 0x376   : > { %9327 = vmatmul.mubr.msk.f32.gmra.mrb[84].mxu1 %vm12850_vm13, %v11939_v34  ;;  %vm12856_vm13 = vmmov %vm12561_vm0 }
 0x377   : > { %9329 = vmatprep.mubr.msk.f32.mxu1 %vm12851_vm12, %v11943_v7  ;;  %vm12857_vm12 = vmmov %vm12561_vm0 }
 0x37a   : > { %9330 = vmatmul.mubr.msk.f32.gmra.mrb[86].mxu1 %vm12852_vm1, %v11947_v48  ;;  %vm12858_vm1 = vmmov %vm12561_vm0 }
 0x37b   : > { %9332 = vmatprep.mubr.msk.f32.mxu1 %vm12853_vm11, %v11951_v10  ;;  %vm12859_vm11 = vmmov %vm12561_vm0 }
 0x37e   : > { %9333 = vmatmul.mubr.msk.f32.gmra.mrb[88].mxu1 %vm12854_vm14, %v11955_v5  ;;  %vm12860_vm14 = vmmov %vm12561_vm0 }
 0x37f   : > { %9335 = vmatprep.mubr.msk.f32.mxu1 %vm12855_vm15, %v11959_v45  ;;  %vm12861_vm15 = vmmov %vm12561_vm0 }
 0x382   : > { %9336 = vmatmul.mubr.msk.f32.gmra.mrb[90].mxu1 %vm12561_vm0, %v11963_v18 }
 0x383   : > { %9338 = vmatprep.mubr.msk.f32.mxu1 %vm12856_vm13, %v11967_v57  ;;  %vm12862_vm13 = vmmov %vm12561_vm0 }
 0x386   : > { %9339 = vmatmul.mubr.msk.f32.gmra.mrb[92].mxu1 %vm12857_vm12, %v11971_v29  ;;  %vm12863_vm12 = vmmov %vm12561_vm0 }
 0x387   : > { %9341 = vmatprep.mubr.msk.f32.mxu1 %vm12858_vm1, %v11975_v35  ;;  %vm12864_vm1 = vmmov %vm12561_vm0 }
 0x38a   : > { %9342 = vmatmul.mubr.msk.f32.gmra.mrb[94].mxu1 %vm12859_vm11, %v11979_v12  ;;  %vm12865_vm11 = vmmov %vm12561_vm0 }
 0x38b   : > { %9352 = vmatprep.mubr.msk.f32.mxu1 %vm12860_vm14, %v11867_v16  ;;  %vm12866_vm14 = vmmov %vm12561_vm0 }
 0x38e   : > { %9353 = vmatmul.mubr.msk.f32.vlgmr.msra.gmra.mrb[64].mxu1 %vm12861_vm15, %v11874_v2  ;;  %vm12867_vm15 = vmmov %vm12561_vm0 }
 0x38f   : > { %9355 = vmatprep.mubr.msk.f32.mxu1 %vm12561_vm0, %v11878_v9 }
 0x392   : > { %9356 = vmatmul.mubr.msk.f32.gmra.mrb[66].mxu1 %vm12862_vm13, %v11883_v56  ;;  %vm12868_vm13 = vmmov %vm12561_vm0 }
 0x393   : > { %9358 = vmatprep.mubr.msk.f32.mxu1 %vm12863_vm12, %v11887_v13  ;;  %vm12869_vm12 = vmmov %vm12561_vm0 }
 0x396   : > { %9359 = vmatmul.mubr.msk.f32.gmra.mrb[68].mxu1 %vm12864_vm1, %v11891_v31  ;;  %vm12871_vm1 = vmmov %vm12561_vm0 }
 0x397   : > { %9361 = vmatprep.mubr.msk.f32.mxu1 %vm12865_vm11, %v11895_v24  ;;  %vm12872_vm11 = vmmov %vm12561_vm0 }
 0x39a   : > { %9362 = vmatmul.mubr.msk.f32.gmra.mrb[70].mxu1 %vm12866_vm14, %v11899_v49  ;;  %vm12874_vm14 = vmmov %vm12561_vm0 }
 0x39b   : > { %9364 = vmatprep.mubr.msk.f32.mxu1 %vm12867_vm15, %v11903_v58  ;;  %vm12877_vm15 = vmmov %vm12561_vm0 }
 0x39e   : > { %9365 = vmatmul.mubr.msk.f32.gmra.mrb[72].mxu1 %vm12561_vm0, %v11907_v36 }
 0x39f   : > { %9367 = vmatprep.mubr.msk.f32.mxu1 %vm12868_vm13, %v11911_v14  ;;  %vm12882_vm13 = vmmov %vm12561_vm0 }
 0x3a1   : > { %v9018_v33 = vpop.f32.mrb[32].mxu1 }
 0x3a2   : > { %v9186_v61 = vpop.f32.mrb[64].mxu0  ;;  %v4767_v17 = vpop.f32.mrb[33].mxu1  ;;  %9368 = vmatmul.mubr.msk.f32.gmra.mrb[74].mxu1 %vm12869_vm12, %v11915_v47  ;;  %vm12885_vm12 = vmmov %vm12561_vm0 }
 0x3a3   : > { %v12082_v39 = vadd.f32 %v9186_v61, %v9018_v33  ;;  %v5785_v23 = vpop.f32.mrb[65].mxu0  ;;  %v4958_v20 = vsel %vm10803_vm2, %v4767_v17, 0.0  ;;  %9370 = vmatprep.mubr.msk.f32.mxu1 %vm12871_vm1, %v11919_v38  ;;  %vm12875_vm2 = vmmov %vm12561_vm0 }
 0x3a4   : > { %v12090_v11 = vadd.f32 %v5785_v23, %v4958_v20  ;;  %vm12888_vm1 = vmmov %vm12561_vm0 }
 0x3a5   : > { %v9021_v54 = vpop.f32.mrb[34].mxu1 }
 0x3a6   : > { %v9189_v8 = vpop.f32.mrb[66].mxu0  ;;  %v4777_v25 = vpop.f32.mrb[35].mxu1  ;;  %9371 = vmatmul.mubr.msk.f32.gmra.mrb[76].mxu1 %vm12872_vm11, %v11923_v3  ;;  %vm12891_vm11 = vmmov %vm12561_vm0 }
 0x3a7   : > { %v12092_v0 = vadd.f32 %v9189_v8, %v9021_v54  ;;  %v5795_v27 = vpop.f32.mrb[67].mxu0  ;;  %v4960_v42 = vsel %vm10818_vm3, %v4777_v25, 0.0  ;;  %9373 = vmatprep.mubr.msk.f32.mxu1 %vm12874_vm14, %v11927_v51  ;;  %vm12878_vm3 = vmmov %vm12561_vm0 }
 0x3a8   : > { %v12100_v53 = vadd.f32 %v5795_v27, %v4960_v42  ;;  %vm12894_vm14 = vmmov %vm12561_vm0 }
 0x3a9   : > { %v9024_v32 = vpop.f32.mrb[36].mxu1 }
 0x3aa   : > { %v9192_v40 = vpop.f32.mrb[68].mxu0  ;;  %v4787_v19 = vpop.f32.mrb[37].mxu1  ;;  %9374 = vmatmul.mubr.msk.f32.gmra.mrb[78].mxu1 %vm12875_vm2, %v11931_v15 }
 0x3ab   : > { %v12102_v50 = vadd.f32 %v9192_v40, %v9024_v32  ;;  %v5805_v28 = vpop.f32.mrb[69].mxu0  ;;  %v4962_v41 = vsel %vm10833_vm4, %v4787_v19, 0.0  ;;  %9376 = vmatprep.mubr.msk.f32.mxu1 %vm12877_vm15, %v11935_v21  ;;  %vm12880_vm4 = vmmov %vm12561_vm0 }
 0x3ac   : > { %v12110_v60 = vadd.f32 %v5805_v28, %v4962_v41  ;;  %v12896_v41 = vld [vmem:[#allocation13_spill] sm:$0xff]  ;;  %vm12898_vm15 = vmmov %vm12561_vm0 }
 0x3ad   : > { %v9027_v22 = vpop.f32.mrb[38].mxu1  ;;  %vm12897_vm2 = vnez %v12896_v41 }
 0x3ae   : > { %v9195_v59 = vpop.f32.mrb[70].mxu0  ;;  %v4797_v43 = vpop.f32.mrb[39].mxu1  ;;  %9377 = vmatmul.mubr.msk.f32.gmra.mrb[80].mxu1 %vm12878_vm3, %v11939_v34 }
 0x3af   : > { %v12112_v62 = vadd.f32 %v9195_v59, %v9027_v22  ;;  %v5815_v16 = vpop.f32.mrb[71].mxu0  ;;  %v4964_v2 = vsel %vm10848_vm5, %v4797_v43, 0.0  ;;  %9379 = vmatprep.mubr.msk.f32.mxu1 %vm12561_vm0, %v11943_v7  ;;  %vm12883_vm5 = vmmov %vm12561_vm0  ;;  %v6635_v22 = vld [vmem:[#allocation3 + $0x121] sm:$0xff] }
 0x3b0   : > { %v12120_v9 = vadd.f32 %v5815_v16, %v4964_v2 }
 0x3b1   : > { %v9030_v56 = vpop.f32.mrb[40].mxu1 }
 0x3b2   : > { %v9198_v13 = vpop.f32.mrb[72].mxu0  ;;  %v4807_v24 = vpop.f32.mrb[41].mxu1  ;;  %9380 = vmatmul.mubr.msk.f32.gmra.mrb[82].mxu1 %vm12880_vm4, %v11947_v48 }
 0x3b3   : > { %v12122_v31 = vadd.f32 %v9198_v13, %v9030_v56  ;;  %v5825_v49 = vpop.f32.mrb[73].mxu0  ;;  %v4966_v36 = vsel %vm10863_vm6, %v4807_v24, 0.0  ;;  %9382 = vmatprep.mubr.msk.f32.mxu1 %vm12882_vm13, %v11951_v10  ;;  %vm12886_vm6 = vmmov %vm12561_vm0  ;;  %v12900_v56 = vld [vmem:[#allocation14_spill] sm:$0xff] }
 0x3b4   : > { %v12130_v14 = vadd.f32 %v5825_v49, %v4966_v36  ;;  %vm12901_vm3 = vnez %v12900_v56 }
 0x3b5   : > { %v9033_v47 = vpop.f32.mrb[42].mxu1 }
 0x3b6   : > { %v9201_v38 = vpop.f32.mrb[74].mxu0  ;;  %v4817_v51 = vpop.f32.mrb[43].mxu1  ;;  %9383 = vmatmul.mubr.msk.f32.gmra.mrb[84].mxu1 %vm12883_vm5, %v11955_v5 }
 0x3b7   : > { %v12132_v3 = vadd.f32 %v9201_v38, %v9033_v47  ;;  %v5835_v15 = vpop.f32.mrb[75].mxu0  ;;  %v4968_v34 = vsel %vm10878_vm7, %v4817_v51, 0.0  ;;  %9385 = vmatprep.mubr.msk.f32.mxu1 %vm12885_vm12, %v11959_v45  ;;  %vm12889_vm7 = vmmov %vm12561_vm0  ;;  %v12902_v38 = vld [vmem:[#allocation15_spill] sm:$0xff] }
 0x3b8   : > { %v12140_v7 = vadd.f32 %v5835_v15, %v4968_v34 }
 0x3b9   : > { %v9036_v48 = vpop.f32.mrb[44].mxu1 }
 0x3ba   : > { %v9204_v10 = vpop.f32.mrb[76].mxu0  ;;  %v4827_v1 = vpop.f32.mrb[45].mxu1  ;;  %9386 = vmatmul.mubr.msk.f32.gmra.mrb[86].mxu1 %vm12886_vm6, %v11963_v18 }
 0x3bb   : > { %v12142_v44 = vadd.f32 %v9204_v10, %v9036_v48  ;;  %v5845_v55 = vpop.f32.mrb[77].mxu0  ;;  %v4970_v5 = vsel %vm10893_vm8, %v4827_v1, 0.0  ;;  %9388 = vmatprep.mubr.msk.f32.mxu1 %vm12888_vm1, %v11967_v57  ;;  %vm12892_vm8 = vmmov %vm12561_vm0  ;;  %vm7097_vm1 = vcmask 23552  }
 0x3bc   : > { %v12150_v46 = vadd.f32 %v5845_v55, %v4970_v5  ;;  %v12904_v55 = vld [vmem:[#allocation16_spill] sm:$0xff] }
 0x3bd   : > { %v9039_v45 = vpop.f32.mrb[46].mxu1  ;;  %vm12905_vm4 = vnez %v12904_v55 }
 0x3be   : > { %v9207_v33 = vpop.f32.mrb[78].mxu0  ;;  %v4837_v17 = vpop.f32.mrb[47].mxu1  ;;  %9389 = vmatmul.mubr.msk.f32.gmra.mrb[88].mxu1 %vm12889_vm7, %v11971_v29 }
 0x3bf   : > { %v12152_v61 = vadd.f32 %v9207_v33, %v9039_v45  ;;  %v5855_v23 = vpop.f32.mrb[79].mxu0  ;;  %v4972_v18 = vsel %vm10908_vm9, %v4837_v17, 0.0  ;;  %9391 = vmatprep.mubr.msk.f32.mxu1 %vm12891_vm11, %v11975_v35  ;;  %v6634_v35 = vld [vmem:[#allocation3 + $0x119] sm:$0xff]  ;;  %vm12895_vm9 = vmmov %vm12561_vm0 }
 0x3c0   : > { %v12160_v20 = vadd.f32 %v5855_v23, %v4972_v18  ;;  %v12906_v18 = vld [vmem:[#allocation17_spill] sm:$0xff] }
 0x3c1   : > { %v9042_v57 = vpop.f32.mrb[48].mxu1  ;;  %vm12907_vm13 = vnez %v12906_v18 }
 0x3c2   : > { %v9210_v54 = vpop.f32.mrb[80].mxu0  ;;  %v4847_v25 = vpop.f32.mrb[49].mxu1  ;;  %9392 = vmatmul.mubr.msk.f32.gmra.mrb[90].mxu1 %vm12892_vm8, %v11979_v12 }
 0x3c3   : > { %v12162_v8 = vadd.f32 %v9210_v54, %v9042_v57  ;;  %v5865_v27 = vpop.f32.mrb[81].mxu0  ;;  %v4974_v29 = vsel %vm10923_vm10, %v4847_v25, 0.0  ;;  %9394 = vmatprep.mubr.msk.f32.mxu1 %vm12894_vm14, %v11983_v26  ;;  %vm12899_vm10 = vmmov %vm12561_vm0  ;;  %vm12903_vm0 = vnez %v12902_v38 }
 0x3c4   : > { %v12170_v42 = vadd.f32 %v5865_v27, %v4974_v29 }
 0x3c5   : > { %v9045_v32 = vpop.f32.mrb[50].mxu1 }
 0x3c6   : > { %v9213_v40 = vpop.f32.mrb[82].mxu0  ;;  %v4857_v28 = vpop.f32.mrb[51].mxu1  ;;  %9395 = vmatmul.mubr.msk.f32.gmra.mrb[92].mxu1 %vm12895_vm9, %v11987_v6 }
 0x3c7   : > { %v12172_v19 = vadd.f32 %v9213_v40, %v9045_v32  ;;  %v5875_v30 = vpop.f32.mrb[83].mxu0  ;;  %v4976_v12 = vsel %vm12897_vm2, %v4857_v28, 0.0  ;;  %9397 = vmatprep.mubr.msk.f32.mxu1 %vm12898_vm15, %v6634_v35  ;;  %v12908_v32 = vld [vmem:[#allocation18_spill] sm:$0xff] }
 0x3c8   : > { %v12179_v59 = vadd.f32 %v5875_v30, %v4976_v12  ;;  %vm12909_vm5 = vnez %v12908_v32 }
 0x3c9   : > { %v9048_v26 = vpop.f32.mrb[52].mxu1 }
 0x3ca   : > { %v9216_v43 = vpop.f32.mrb[84].mxu0  ;;  %v4867_v52 = vpop.f32.mrb[53].mxu1  ;;  %9398 = vmatmul.mubr.msk.f32.gmra.mrb[94].mxu1 %vm12899_vm10, %v6635_v22 }
 0x3cb   : > { %v12181_v16 = vadd.f32 %v9216_v43, %v9048_v26  ;;  %v5885_v2 = vpop.f32.mrb[85].mxu0  ;;  %v4978_v13 = vsel %vm12901_vm3, %v4867_v52, 0.0  ;;  %v12910_v43 = vld [vmem:[#allocation19_spill] sm:$0xff] }
 0x3cc   : > { %v12186_v6 = vadd.f32 %v5885_v2, %v4978_v13  ;;  %vm12911_vm12 = vnez %v12910_v43  ;;  %v12912_v13 = vld [vmem:[#allocation20_spill] sm:$0xff] }
 0x3cd   : > { %v9051_v24 = vpop.f32.mrb[54].mxu1  ;;  %vm12913_vm6 = vnez %v12912_v13 }
 0x3ce   : > { %v9219_v49 = vpop.f32.mrb[86].mxu0  ;;  %v4877_v36 = vpop.f32.mrb[55].mxu1 }
 0x3cf   : > { %v12188_v58 = vadd.f32 %v9219_v49, %v9051_v24  ;;  %v5895_v47 = vpop.f32.mrb[87].mxu0  ;;  %v4980_v51 = vsel %vm12903_vm0, %v4877_v36, 0.0  ;;  %v12223_v49 = vld [vmem:[%s12397_s4] ss:$0 sm:$0xff] }
 0x3d0   : > { %v12192_v15 = vadd.f32 %v5895_v47, %v4980_v51 }
 0x3d1   : > { %v9054_v21 = vpop.f32.mrb[56].mxu1 }
 0x3d2   : > { %v9222_v34 = vpop.f32.mrb[88].mxu0  ;;  %v4887_v10 = vpop.f32.mrb[57].mxu1 }
 0x3d3   : > { %v12194_v48 = vadd.f32 %v9222_v34, %v9054_v21  ;;  %v5905_v1 = vpop.f32.mrb[89].mxu0  ;;  %v4982_v37 = vsel %vm12905_vm4, %v4887_v10, 0.0  ;;  %v12914_v10 = vld [vmem:[#allocation21_spill] sm:$0xff] }
 0x3d4   : > { %v12198_v5 = vadd.f32 %v5905_v1, %v4982_v37  ;;  %vm12915_vm7 = vnez %v12914_v10 }
 0x3d5   : > { %v9057_v45 = vpop.f32.mrb[58].mxu1 }
 0x3d6   : > { %v9225_v33 = vpop.f32.mrb[90].mxu0  ;;  %v4897_v23 = vpop.f32.mrb[59].mxu1 }
 0x3d7   : > { %v12200_v17 = vadd.f32 %v9225_v33, %v9057_v45  ;;  %v5915_v63 = vpop.f32.mrb[91].mxu0  ;;  %v4984_v57 = vsel %vm12907_vm13, %v4897_v23, 0.0  ;;  %v12916_v23 = vld [vmem:[#allocation22_spill] sm:$0xff] }
 0x3d8   : > { %v12204_v54 = vadd.f32 %v5915_v63, %v4984_v57  ;;  %vm12917_vm11 = vnez %v12916_v23 }
 0x3d9   : > { %v9060_v25 = vpop.f32.mrb[60].mxu1 }
 0x3da   : > { %v9228_v27 = vpop.f32.mrb[92].mxu0  ;;  %v4907_v29 = vpop.f32.mrb[61].mxu1 }
 0x3db   : > { %v12206_v4 = vadd.f32 %v9228_v27, %v9060_v25  ;;  %v5925_v35 = vpop.f32.mrb[93].mxu0  ;;  %v4986_v40 = vsel %vm12909_vm5, %v4907_v29, 0.0  ;;  %v12918_v29 = vld [vmem:[#allocation23_spill] sm:$0xff] }
 0x3dc   : > { %v12210_v28 = vadd.f32 %v5925_v35, %v4986_v40  ;;  %vm12919_vm8 = vnez %v12918_v29 }
 0x3dd   : > { %v9063_v30 = vpop.f32.mrb[62].mxu1 }
 0x3de   : > { %v9231_v41 = vpop.f32.mrb[94].mxu0  ;;  %v4917_v22 = vpop.f32.mrb[63].mxu1 }
 0x3df   : > { %v12212_v12 = vadd.f32 %v9231_v41, %v9063_v30  ;;  %v5935_v26 = vpop.f32.mrb[95].mxu0  ;;  %v4988_v52 = vsel %vm12911_vm12, %v4917_v22, 0.0  ;;  %v12920_v22 = vld [vmem:[#allocation24_spill] sm:$0xff] }
 0x3e0   : > { %v12216_v2 = vadd.f32 %v5935_v26, %v4988_v52  ;;  %vm12921_vm14 = vnez %v12920_v22 }
 0x461   : > { %v9354_v56 = vpop.f32.mrb[64].mxu1 }
 0x462   : > { %v6995_v24 = vsel %vm12913_vm6, %v9354_v56, 0.0  ;;  %v6803_v36 = vpop.f32.mrb[65].mxu1 }
 0x463   : > { %v7027_v47 = vadd.f32 %v6995_v24, %v12082_v39  ;;  %v7026_v38 = vadd.f32 %v6803_v36, %v12090_v11  ;;  %v12922_v24 = vld [vmem:[#allocation25_spill] sm:$0xff] }
 0x464   : > { %vm12923_vm9 = vnez %v12922_v24 }
 0x465   : > { %v7066_v51 = vadd.f32 %v12223_v49, %v7027_v47  ;;  %v7065_v21 = vadd.f32 %v12223_v49, %v7026_v38  ;;  %v9357_v34 = vpop.f32.mrb[66].mxu1 }
 0x466   : > { %v6997_v39 = vsel %vm12915_vm7, %v9357_v34, 0.0  ;;  %v6813_v11 = vpop.f32.mrb[67].mxu1  ;;  %v12924_v34 = vld [vmem:[#allocation26_spill] sm:$0xff] }
 0x467   : > { %7099 = vst.msk [vmem:[%s12232_s7 + $0x8] sm:$0xff] %vm7097_vm1, %v7066_v51  ;;  %7098 = vst.msk [vmem:[%s12232_s7] sm:$0xff] %vm7097_vm1, %v7065_v21  ;;  %v7029_v1 = vadd.f32 %v6997_v39, %v12092_v0  ;;  %v7028_v55 = vadd.f32 %v6813_v11, %v12100_v53  ;;  %vm12925_vm2 = vnez %v12924_v34 }
 0x469   : > { %v7068_v37 = vadd.f32 %v12223_v49, %v7029_v1  ;;  %v7067_v45 = vadd.f32 %v12223_v49, %v7028_v55  ;;  %v9360_v33 = vpop.f32.mrb[68].mxu1 }
 0x46a   : > { %v6999_v63 = vsel %vm12917_vm11, %v9360_v33, 0.0  ;;  %v6823_v18 = vpop.f32.mrb[69].mxu1 }
 0x46b   : > { %7101 = vst.msk [vmem:[%s12232_s7 + $0x18] sm:$0xff] %vm7097_vm1, %v7068_v37  ;;  %7100 = vst.msk [vmem:[%s12232_s7 + $0x10] sm:$0xff] %vm7097_vm1, %v7067_v45  ;;  %v7031_v57 = vadd.f32 %v6999_v63, %v12102_v50  ;;  %v7030_v0 = vadd.f32 %v6823_v18, %v12110_v60  ;;  %v12926_v37 = vld [vmem:[#allocation27_spill] sm:$0xff] }
 0x46c   : > { %vm12927_vm15 = vnez %v12926_v37 }
 0x46d   : > { %v7070_v53 = vadd.f32 %v12223_v49, %v7031_v57  ;;  %v7069_v25 = vadd.f32 %v12223_v49, %v7030_v0  ;;  %v9363_v27 = vpop.f32.mrb[70].mxu1  ;;  %v12928_v57 = vld [vmem:[#allocation28_spill] sm:$0xff] }
 0x46e   : > { %v7001_v35 = vsel %vm12919_vm8, %v9363_v27, 0.0  ;;  %v6833_v32 = vpop.f32.mrb[71].mxu1  ;;  %vm12929_vm10 = vnez %v12928_v57 }
 0x46f   : > { %7103 = vst.msk [vmem:[%s12232_s7 + $0x28] sm:$0xff] %vm7097_vm1, %v7070_v53  ;;  %7102 = vst.msk [vmem:[%s12232_s7 + $0x20] sm:$0xff] %vm7097_vm1, %v7069_v25  ;;  %v7033_v40 = vadd.f32 %v7001_v35, %v12112_v62  ;;  %v7032_v50 = vadd.f32 %v6833_v32, %v12120_v9  ;;  %v12930_v35 = vld [vmem:[#allocation29_spill] sm:$0xff] }
 0x470   : > { %vm12931_vm3 = vnez %v12930_v35 }
 0x471   : > { %v7072_v60 = vadd.f32 %v12223_v49, %v7033_v40  ;;  %v7071_v30 = vadd.f32 %v12223_v49, %v7032_v50  ;;  %v9366_v41 = vpop.f32.mrb[72].mxu1 }
 0x472   : > { %v7003_v26 = vsel %vm12921_vm14, %v9366_v41, 0.0  ;;  %v6843_v43 = vpop.f32.mrb[73].mxu1  ;;  %v12932_v41 = vld [vmem:[#allocation30_spill] sm:$0xff] }
 0x473   : > { %7105 = vst.msk [vmem:[%s12232_s7 + $0x38] sm:$0xff] %vm7097_vm1, %v7072_v60  ;;  %7104 = vst.msk [vmem:[%s12232_s7 + $0x30] sm:$0xff] %vm7097_vm1, %v7071_v30  ;;  %v7035_v52 = vadd.f32 %v7003_v26, %v12122_v31  ;;  %v7034_v62 = vadd.f32 %v6843_v43, %v12130_v14  ;;  %vm12933_vm0 = vnez %v12932_v41 }
 0x475   : > { %v7074_v9 = vadd.f32 %v12223_v49, %v7035_v52  ;;  %v7073_v56 = vadd.f32 %v12223_v49, %v7034_v62  ;;  %v9369_v13 = vpop.f32.mrb[74].mxu1 }
 0x476   : > { %v7005_v36 = vsel %vm12923_vm9, %v9369_v13, 0.0  ;;  %v6853_v47 = vpop.f32.mrb[75].mxu1 }
 0x477   : > { %7107 = vst.msk [vmem:[%s12232_s7 + $0x48] sm:$0xff] %vm7097_vm1, %v7074_v9  ;;  %7106 = vst.msk [vmem:[%s12232_s7 + $0x40] sm:$0xff] %vm7097_vm1, %v7073_v56  ;;  %v7037_v38 = vadd.f32 %v7005_v36, %v12132_v3  ;;  %v7036_v31 = vadd.f32 %v6853_v47, %v12140_v7  ;;  %v12934_v9 = vld [vmem:[#allocation31_spill] sm:$0xff] }
 0x478   : > { %vm12935_vm4 = vnez %v12934_v9 }
 0x479   : > { %v7076_v14 = vadd.f32 %v12223_v49, %v7037_v38  ;;  %v7075_v51 = vadd.f32 %v12223_v49, %v7036_v31  ;;  %v9372_v21 = vpop.f32.mrb[76].mxu1  ;;  %v12936_v38 = vld [vmem:[#allocation32_spill] sm:$0xff] }
 0x47a   : > { %v7007_v10 = vsel %vm12925_vm2, %v9372_v21, 0.0  ;;  %v6863_v39 = vpop.f32.mrb[77].mxu1  ;;  %vm12937_vm13 = vnez %v12936_v38 }
 0x47b   : > { %7109 = vst.msk [vmem:[%s12232_s7 + $0x58] sm:$0xff] %vm7097_vm1, %v7076_v14  ;;  %7108 = vst.msk [vmem:[%s12232_s7 + $0x50] sm:$0xff] %vm7097_vm1, %v7075_v51  ;;  %v7039_v11 = vadd.f32 %v7007_v10, %v12142_v44  ;;  %v7038_v3 = vadd.f32 %v6863_v39, %v12150_v46  ;;  %v12938_v10 = vld [vmem:[#allocation33_spill] sm:$0xff] }
 0x47c   : > { %vm12939_vm5 = vnez %v12938_v10 }
 0x47d   : > { %v7078_v7 = vadd.f32 %v12223_v49, %v7039_v11  ;;  %v7077_v1 = vadd.f32 %v12223_v49, %v7038_v3  ;;  %v9375_v55 = vpop.f32.mrb[78].mxu1 }
 0x47e   : > { %v7009_v45 = vsel %vm12927_vm15, %v9375_v55, 0.0  ;;  %v6873_v33 = vpop.f32.mrb[79].mxu1  ;;  %v12940_v55 = vld [vmem:[#allocation34_spill] sm:$0xff] }
 0x47f   : > { %7111 = vst.msk [vmem:[%s12232_s7 + $0x68] sm:$0xff] %vm7097_vm1, %v7078_v7  ;;  %7110 = vst.msk [vmem:[%s12232_s7 + $0x60] sm:$0xff] %vm7097_vm1, %v7077_v1  ;;  %v7041_v23 = vadd.f32 %v7009_v45, %v12152_v61  ;;  %v7040_v44 = vadd.f32 %v6873_v33, %v12160_v20  ;;  %vm12941_vm12 = vnez %v12940_v55 }
 0x481   : > { %v7080_v46 = vadd.f32 %v12223_v49, %v7041_v23  ;;  %v7079_v63 = vadd.f32 %v12223_v49, %v7040_v44  ;;  %v9378_v18 = vpop.f32.mrb[80].mxu1 }
 0x482   : > { %v7011_v0 = vsel %vm12929_vm10, %v9378_v18, 0.0  ;;  %v6883_v53 = vpop.f32.mrb[81].mxu1 }
 0x483   : > { %7113 = vst.msk [vmem:[%s12232_s7 + $0x78] sm:$0xff] %vm7097_vm1, %v7080_v46  ;;  %7112 = vst.msk [vmem:[%s12232_s7 + $0x70] sm:$0xff] %vm7097_vm1, %v7079_v63  ;;  %v7043_v25 = vadd.f32 %v7011_v0, %v12162_v8  ;;  %v7042_v61 = vadd.f32 %v6883_v53, %v12170_v42  ;;  %v12942_v46 = vld [vmem:[#allocation36_spill] sm:$0xff] }
 0x484   : > { %vm12943_vm6 = vnez %v12942_v46 }
 0x485   : > { %v7082_v20 = vadd.f32 %v12223_v49, %v7043_v25  ;;  %v7081_v27 = vadd.f32 %v12223_v49, %v7042_v61  ;;  %v9381_v29 = vpop.f32.mrb[82].mxu1 }
 0x486   : > { %v7013_v32 = vsel %vm12931_vm3, %v9381_v29, 0.0  ;;  %v6893_v40 = vpop.f32.mrb[83].mxu1 }
 0x487   : > { %7115 = vst.msk [vmem:[%s12232_s7 + $0x88] sm:$0xff] %vm7097_vm1, %v7082_v20  ;;  %7114 = vst.msk [vmem:[%s12232_s7 + $0x80] sm:$0xff] %vm7097_vm1, %v7081_v27  ;;  %v7045_v50 = vadd.f32 %v7013_v32, %v12172_v19  ;;  %v7044_v8 = vadd.f32 %v6893_v40, %v12179_v59 }
 0x489   : > { %v7084_v42 = vadd.f32 %v12223_v49, %v7045_v50  ;;  %v7083_v60 = vadd.f32 %v12223_v49, %v7044_v8  ;;  %v9384_v30 = vpop.f32.mrb[84].mxu1 }
 0x48a   : > { %v7015_v22 = vsel %vm12933_vm0, %v9384_v30, 0.0  ;;  %v6903_v26 = vpop.f32.mrb[85].mxu1 }
 0x48b   : > { %7117 = vst.msk [vmem:[%s12232_s7 + $0x98] sm:$0xff] %vm7097_vm1, %v7084_v42  ;;  %7116 = vst.msk [vmem:[%s12232_s7 + $0x90] sm:$0xff] %vm7097_vm1, %v7083_v60  ;;  %v7047_v43 = vadd.f32 %v7015_v22, %v12181_v16  ;;  %v7046_v19 = vadd.f32 %v6903_v26, %v12186_v6 }
 0x48d   : > { %v7086_v59 = vadd.f32 %v12223_v49, %v7047_v43  ;;  %v7085_v52 = vadd.f32 %v12223_v49, %v7046_v19  ;;  %v9387_v62 = vpop.f32.mrb[86].mxu1 }
 0x48e   : > { %v7017_v56 = vsel %vm12935_vm4, %v9387_v62, 0.0  ;;  %v6913_v13 = vpop.f32.mrb[87].mxu1 }
 0x48f   : > { %7119 = vst.msk [vmem:[%s12232_s7 + $0xa8] sm:$0xff] %vm7097_vm1, %v7086_v59  ;;  %7118 = vst.msk [vmem:[%s12232_s7 + $0xa0] sm:$0xff] %vm7097_vm1, %v7085_v52  ;;  %v7049_v24 = vadd.f32 %v7017_v56, %v12188_v58  ;;  %v7048_v16 = vadd.f32 %v6913_v13, %v12192_v15 }
 0x491   : > { %v7088_v6 = vadd.f32 %v12223_v49, %v7049_v24  ;;  %v7087_v36 = vadd.f32 %v12223_v49, %v7048_v16  ;;  %v9390_v47 = vpop.f32.mrb[88].mxu1 }
 0x492   : > { %v7019_v31 = vsel %vm12937_vm13, %v9390_v47, 0.0  ;;  %v6923_v14 = vpop.f32.mrb[89].mxu1 }
 0x493   : > { %7121 = vst.msk [vmem:[%s12232_s7 + $0xb8] sm:$0xff] %vm7097_vm1, %v7088_v6  ;;  %7120 = vst.msk [vmem:[%s12232_s7 + $0xb0] sm:$0xff] %vm7097_vm1, %v7087_v36  ;;  %v7051_v51 = vadd.f32 %v7019_v31, %v12194_v48  ;;  %v7050_v58 = vadd.f32 %v6923_v14, %v12198_v5 }
 0x495   : > { %v7090_v15 = vadd.f32 %v12223_v49, %v7051_v51  ;;  %v7089_v21 = vadd.f32 %v12223_v49, %v7050_v58  ;;  %v9393_v34 = vpop.f32.mrb[90].mxu1 }
 0x496   : > { %v7021_v39 = vsel %vm12939_vm5, %v9393_v34, 0.0  ;;  %v6933_v11 = vpop.f32.mrb[91].mxu1 }
 0x497   : > { %7123 = vst.msk [vmem:[%s12232_s7 + $0xc8] sm:$0xff] %vm7097_vm1, %v7090_v15  ;;  %7122 = vst.msk [vmem:[%s12232_s7 + $0xc0] sm:$0xff] %vm7097_vm1, %v7089_v21  ;;  %v7053_v3 = vadd.f32 %v7021_v39, %v12200_v17  ;;  %v7052_v48 = vadd.f32 %v6933_v11, %v12204_v54 }
 0x499   : > { %v7092_v5 = vadd.f32 %v12223_v49, %v7053_v3  ;;  %v7091_v7 = vadd.f32 %v12223_v49, %v7052_v48  ;;  %v9396_v1 = vpop.f32.mrb[92].mxu1 }
 0x49a   : > { %v7023_v37 = vsel %vm12941_vm12, %v9396_v1, 0.0  ;;  %v6943_v45 = vpop.f32.mrb[93].mxu1 }
 0x49b   : > { %7125 = vst.msk [vmem:[%s12232_s7 + $0xd8] sm:$0xff] %vm7097_vm1, %v7092_v5  ;;  %7124 = vst.msk [vmem:[%s12232_s7 + $0xd0] sm:$0xff] %vm7097_vm1, %v7091_v7  ;;  %v7055_v17 = vadd.f32 %v7023_v37, %v12206_v4  ;;  %v7054_v54 = vadd.f32 %v6943_v45, %v12210_v28 }
 0x49d   : > { %v7094_v33 = vadd.f32 %v12223_v49, %v7055_v17  ;;  %v7093_v23 = vadd.f32 %v12223_v49, %v7054_v54  ;;  %v9399_v44 = vpop.f32.mrb[94].mxu1 }
 0x49e   : > { %v7025_v63 = vsel %vm12943_vm6, %v9399_v44, 0.0  ;;  %v6953_v18 = vpop.f32.mrb[95].mxu1 }
 0x49f   : > { %7127 = vst.msk [vmem:[%s12232_s7 + $0xe8] sm:$0xff] %vm7097_vm1, %v7094_v33  ;;  %7126 = vst.msk [vmem:[%s12232_s7 + $0xe0] sm:$0xff] %vm7097_vm1, %v7093_v23  ;;  %v7057_v57 = vadd.f32 %v7025_v63, %v12212_v12  ;;  %v7056_v0 = vadd.f32 %v6953_v18, %v12216_v2 }
 0x4a1   : > { %v7096_v4 = vadd.f32 %v12223_v49, %v7057_v57  ;;  %v7095_v28 = vadd.f32 %v12223_v49, %v7056_v0 }
 0x4a3   : > { %7129 = vst.msk [vmem:[%s12232_s7 + $0xf8] sm:$0xff] %vm7097_vm1, %v7096_v4  ;;  %7128 = vst.msk [vmem:[%s12232_s7 + $0xf0] sm:$0xff] %vm7097_vm1, %v7095_v28 }
 0x4a4 PF: > { %s15_s18 = sadd.s32 1, %s9871_s18  }
 0x4a5   : > { %p12_p4 = scmp.ge.s32.totalorder %s15_s18, 4  }
 0x4a7   :  { %14 = sbr.rel (!%p12_p4) target bundleno = 1 (0x1), region = 86 }

</bundles_post_ra>
